<compile_context>
chip_gen: v7x
topology: tpu7x:2x2x1
jax: 0.10.0
libtpu: 0.0.40
codegen_flags: <defaults>
</compile_context>

<pallas_src>
import jax
import jax.numpy as jnp
from jax import lax
from jax.experimental import pallas as pl
from jax.experimental.pallas import tpu as pltpu  # noqa: F401  (TPU backend)

# ------------------------- model configuration (small) ----------------------
IMAGE_SIZE = 16
PATCH = 4
CHANNELS = 3
DIM = 32
DEPTH = 2
HEADS = 4
MLP_DIM = 64
NUM_CLASSES = 10
BATCH = 2

NUM_PATCHES = (IMAGE_SIZE // PATCH) ** 2          # 16
PATCH_DIM = CHANNELS * PATCH * PATCH              # 48
SEQ = NUM_PATCHES + 1                             # 17 (cls token + patches)
SEQ_P = 24                                        # padded seq (multiple of 8)
HEAD_DIM = DIM // HEADS                           # 8
MLP_PAD = 128                                     # lane-dense hidden width
OUT_PAD = 128                                     # lane-dense classifier width
CLS_ROWS = 8                                      # sublane-aligned head slice per image
SCALE = DIM ** (-0.5)                             # dim**-0.5, as in the torch code
LN_EPS = 1e-5
_SQRT1_2 = 0.7071067811865476
NEG_INF = -1e30


# ------------------------------- math helpers -------------------------------
def _erf(x):
    # Abramowitz & Stegun 7.1.26, max abs error ~1.5e-7 -> f32-exact erf.
    a1, a2, a3, a4, a5 = 0.254829592, -0.284496736, 1.421413741, -1.453152027, 1.061405429
    p = 0.3275911
    sign = jnp.where(x >= 0.0, 1.0, -1.0)
    ax = jnp.abs(x)
    t = 1.0 / (1.0 + p * ax)
    poly = ((((a5 * t + a4) * t + a3) * t + a2) * t + a1) * t
    return sign * (1.0 - poly * jnp.exp(-ax * ax))


def _gelu(x):
    # Exact (erf-based) GELU, matching torch.nn.GELU() default.
    return 0.5 * x * (1.0 + _erf(x * _SQRT1_2))


def _layernorm(x, g, b):
    mu = jnp.mean(x, axis=-1, keepdims=True)
    xc = x - mu
    var = jnp.mean(xc * xc, axis=-1, keepdims=True)
    return xc * lax.rsqrt(var + LN_EPS) * g + b


# --------------------------------- kernel -----------------------------------
def vit_kernel(patches_ref, posc_ref, w_emb_ref, b_emb_ref,
               ln1_g_ref, ln1_b_ref, w_qkv_ref,
               w_ao_ref, b_ao_ref, ln2_g_ref, ln2_b_ref,
               w_f1_ref, b_f1_ref, w_f2_ref, b_f2_ref,
               wh1_ref, bh1_ref, wh2_ref, bh2_ref,
               bd_mask_ref, attn_bias_ref,
               out_ref):
    f32 = jnp.float32
    bsp = patches_ref.shape[0]          # B * SEQ_P (static)
    nb = bsp // SEQ_P                   # batch size (static)

    # Patch embedding; cls token + positional embedding are folded into posc
    # (cls rows of `patches` are zero, so the matmul contributes only b_emb
    #  there, which posc cancels and replaces with cls + pos[0]).
    x = (jnp.dot(patches_ref[...], w_emb_ref[...], preferred_element_type=f32)
         + b_emb_ref[...] + posc_ref[...])                            # (BSP, DIM)

    for l in range(DEPTH):
        # --------- attention block: x = x + Attn(LN(x)) ---------
        h = _layernorm(x, ln1_g_ref[l], ln1_b_ref[l])

        # Fused QKV projection: one (BSP,32)x(32,96) matmul.
        qkv = jnp.dot(h, w_qkv_ref[l], preferred_element_type=f32)    # (BSP, 3*DIM)
        q_all = qkv[:, :DIM]                                          # (BSP, DIM)
        k_all = qkv[:, DIM:2 * DIM]
        v_all = qkv[:, 2 * DIM:]

        # Block-diagonal K / V over (head, image): row j = h*BSP + r' holds
        # k_all[r'] masked to head h's DIM slice.  bd_mask: (HEADS*BSP, DIM),
        # 1 iff row-head == col-head.  Read the constant at point of use.
        k_bd = jnp.concatenate([k_all] * HEADS, axis=0) * bd_mask_ref[...]
        v_bd = jnp.concatenate([v_all] * HEADS, axis=0) * bd_mask_ref[...]

        # All heads x all images QK^T in ONE matmul: (BSP, HEADS*BSP).
        # Column block (h, image) == head-h dots of that image's keys.
        dots = lax.dot_general(q_all, k_bd, (((1,), (1,)), ((), ())),
                               preferred_element_type=f32) * SCALE
        # Additive bias: 0 for (same image, valid key) columns, -1e30 for
        # pad-key and cross-image columns -> exp underflows to exactly 0.
        dots = dots + attn_bias_ref[...]

        # Segmented softmax: global row max is a valid per-segment shift.
        m = jnp.max(dots, axis=-1, keepdims=True)
        e = jnp.exp(dots - m)                                         # (BSP, HEADS*BSP)

        # Per-(row, head) denominators, already broadcast over each head's
        # lanes: e @ bd_mask -> (BSP, DIM).  Masked columns of e are exact 0.
        denom = jnp.dot(e, bd_mask_ref[...], preferred_element_type=f32)

        # e @ V_bd lands each head's (unnormalized) output at its own lane
        # offset -> heads already concatenated; normalize on the small slab.
        o = jnp.dot(e, v_bd, preferred_element_type=f32) / denom      # (BSP, DIM)

        x = x + jnp.dot(o, w_ao_ref[l],
                        preferred_element_type=f32) + b_ao_ref[l]

        # --------- feed-forward block: x = x + FF(LN(x)) ---------
        # MLP hidden padded to 128 lanes (zeros) -> lane-dense GELU / loads.
        h = _layernorm(x, ln2_g_ref[l], ln2_b_ref[l])
        h1 = _gelu(jnp.dot(h, w_f1_ref[l],
                           preferred_element_type=f32) + b_f1_ref[l])  # (BSP, MLP_PAD)
        x = x + jnp.dot(h1, w_f2_ref[l],
                        preferred_element_type=f32) + b_f2_ref[l]

    # --------- classification head: only on the 8-row slices that contain
    # each image's cls row (sublane aligned); output is 128-lane dense.
    x_cls = jnp.concatenate(
        [x[bi * SEQ_P: bi * SEQ_P + CLS_ROWS, :] for bi in range(nb)],
        axis=0)                                                        # (nb*8, DIM)
    y = _gelu(jnp.dot(x_cls, wh1_ref[...],
                      preferred_element_type=f32) + bh1_ref[...])      # (nb*8, MLP_PAD)
    out_ref[...] = jnp.dot(y, wh2_ref[...],
                           preferred_element_type=f32) + bh2_ref[...]  # (nb*8, OUT_PAD)


# --------------------------------- wrapper ----------------------------------
def _patchify(img):
    # 'b c (h p1) (w p2) -> b (h w) (p1 p2 c)'
    b = img.shape[0]
    x = img.reshape(b, CHANNELS, IMAGE_SIZE // PATCH, PATCH,
                    IMAGE_SIZE // PATCH, PATCH)
    x = x.transpose(0, 2, 4, 3, 5, 1)          # b, h, w, p1, p2, c
    return x.reshape(b, NUM_PATCHES, PATCH_DIM)


def _attn_constants(nb):
    bsp = nb * SEQ_P
    cols = jnp.arange(HEADS * bsp)
    col_head = cols // bsp                    # head of block-diag row/column
    col_img = (cols % bsp) // SEQ_P           # source image of the key
    col_pos = cols % SEQ_P                    # key position within its image
    rows = jnp.arange(bsp)
    row_img = rows // SEQ_P

    # bd_mask: (HEADS*BSP, DIM), 1 iff row's head == dim-column's head.
    dim_head = jnp.arange(DIM) // HEAD_DIM
    bd_mask = (col_head[:, None] == dim_head[None, :]).astype(jnp.float32)

    # attn_bias: (BSP, HEADS*BSP), 0 for (same image, valid key), else -1e30.
    # NOTE: scales as B^2; fine at this batch size, tile via a grid if larger.
    valid = (row_img[:, None] == col_img[None, :]) & (col_pos[None, :] < SEQ)
    attn_bias = jnp.where(valid, 0.0, NEG_INF).astype(jnp.float32)
    return bd_mask, attn_bias


@jax.jit
def vit_forward(img, params):
    b = img.shape[0]
    patches = _patchify(img).astype(jnp.float32)

    # (B, SEQ_P, PATCH_DIM): row 0 reserved (zeros) for cls, rows >= SEQ zero pad.
    patches_ext = jnp.zeros((b, SEQ_P, PATCH_DIM), jnp.float32)
    patches_ext = patches_ext.at[:, 1:SEQ, :].set(patches)
    patches_flat = patches_ext.reshape(b * SEQ_P, PATCH_DIM)

    # Per-row additive term: pos embedding, with the cls row carrying
    # (cls + pos[0] - b_emb) so the kernel's "+ b_emb" cancels exactly there.
    posc = jnp.zeros((SEQ_P, DIM), jnp.float32)
    posc = posc.at[:SEQ, :].set(params["pos"])
    posc = posc.at[0, :].set(params["cls"][0] + params["pos"][0] - params["b_emb"][0])
    posc = jnp.tile(posc[None], (b, 1, 1)).reshape(b * SEQ_P, DIM)

    # Zero-pad MLP hidden (64 -> 128) and classifier head (10 -> 128) for
    # lane-dense compute/stores.  Numerically exact (padded weights are zero).
    w_f1_p = jnp.zeros((DEPTH, DIM, MLP_PAD), jnp.float32).at[:, :, :MLP_DIM].set(params["w_f1"])
    b_f1_p = jnp.zeros((DEPTH, 1, MLP_PAD), jnp.float32).at[:, :, :MLP_DIM].set(params["b_f1"])
    w_f2_p = jnp.zeros((DEPTH, MLP_PAD, DIM), jnp.float32).at[:, :MLP_DIM, :].set(params["w_f2"])
    wh1_p = jnp.zeros((DIM, MLP_PAD), jnp.float32).at[:, :MLP_DIM].set(params["wh1"])
    bh1_p = jnp.zeros((1, MLP_PAD), jnp.float32).at[:, :MLP_DIM].set(params["bh1"])
    wh2_p = jnp.zeros((MLP_PAD, OUT_PAD), jnp.float32).at[:MLP_DIM, :NUM_CLASSES].set(params["wh2"])
    bh2_p = jnp.zeros((1, OUT_PAD), jnp.float32).at[:, :NUM_CLASSES].set(params["bh2"])

    bd_mask, attn_bias = _attn_constants(b)

    out = pl.pallas_call(
        vit_kernel,
        out_shape=jax.ShapeDtypeStruct((b * CLS_ROWS, OUT_PAD), jnp.float32),
    )(patches_flat, posc, params["w_emb"], params["b_emb"],
      params["ln1_g"], params["ln1_b"], params["w_qkv"],
      params["w_ao"], params["b_ao"], params["ln2_g"], params["ln2_b"],
      w_f1_p, b_f1_p, w_f2_p, params["b_f2"],
      wh1_p, bh1_p, wh2_p, bh2_p,
      bd_mask, attn_bias)

    # Take the cls row of each image and the first NUM_CLASSES lanes.
    return out.reshape(b, CLS_ROWS, OUT_PAD)[:, 0, :NUM_CLASSES]      # (B, NUM_CLASSES)


# ------------------------------ reference (JAX) ------------------------------
def vit_reference(img, p):
    b = img.shape[0]
    x = _patchify(img).astype(jnp.float32)
    x = x @ p["w_emb"] + p["b_emb"]
    cls = jnp.broadcast_to(p["cls"][None], (b, 1, DIM))
    x = jnp.concatenate([cls, x], axis=1) + p["pos"][None]
    for l in range(DEPTH):
        h = _layernorm(x, p["ln1_g"][l], p["ln1_b"][l])
        qkv = h @ p["w_qkv"][l]
        q, k, v = qkv[..., :DIM], qkv[..., DIM:2 * DIM], qkv[..., 2 * DIM:]
        q = q.reshape(b, SEQ, HEADS, HEAD_DIM).transpose(0, 2, 1, 3)
        k = k.reshape(b, SEQ, HEADS, HEAD_DIM).transpose(0, 2, 1, 3)
        v = v.reshape(b, SEQ, HEADS, HEAD_DIM).transpose(0, 2, 1, 3)
        dots = jnp.einsum('bhid,bhjd->bhij', q, k) * SCALE
        attn = jax.nn.softmax(dots, axis=-1)
        o = jnp.einsum('bhij,bhjd->bhid', attn, v)
        o = o.transpose(0, 2, 1, 3).reshape(b, SEQ, DIM)
        x = x + (o @ p["w_ao"][l] + p["b_ao"][l])
        h = _layernorm(x, p["ln2_g"][l], p["ln2_b"][l])
        x = x + (_gelu(h @ p["w_f1"][l] + p["b_f1"][l]) @ p["w_f2"][l] + p["b_f2"][l])
    cls_out = x[:, 0]
    return _gelu(cls_out @ p["wh1"] + p["bh1"]) @ p["wh2"] + p["bh2"]


# --------------------------------- params -----------------------------------
def init_params(key):
    keys = iter(jax.random.split(key, 32))

    def nrm(shape, scale=0.1):
        return (scale * jax.random.normal(next(keys), shape)).astype(jnp.float32)

    p = {}
    p["cls"] = nrm((1, DIM), 1.0)                       # torch.randn(1, 1, dim)
    p["pos"] = nrm((SEQ, DIM), 1.0)                     # torch.randn(1, num_patches+1, dim)
    p["w_emb"] = nrm((PATCH_DIM, DIM))
    p["b_emb"] = nrm((1, DIM), 0.01)
    p["ln1_g"] = jnp.ones((DEPTH, 1, DIM), jnp.float32)
    p["ln1_b"] = jnp.zeros((DEPTH, 1, DIM), jnp.float32)
    p["w_qkv"] = nrm((DEPTH, DIM, 3 * DIM))             # to_qkv (bias=False)
    p["w_ao"] = nrm((DEPTH, DIM, DIM))                  # to_out
    p["b_ao"] = nrm((DEPTH, 1, DIM), 0.01)
    p["ln2_g"] = jnp.ones((DEPTH, 1, DIM), jnp.float32)
    p["ln2_b"] = jnp.zeros((DEPTH, 1, DIM), jnp.float32)
    p["w_f1"] = nrm((DEPTH, DIM, MLP_DIM))
    p["b_f1"] = nrm((DEPTH, 1, MLP_DIM), 0.01)
    p["w_f2"] = nrm((DEPTH, MLP_DIM, DIM))
    p["b_f2"] = nrm((DEPTH, 1, DIM), 0.01)
    p["wh1"] = nrm((DIM, MLP_DIM))
    p["bh1"] = nrm((1, MLP_DIM), 0.01)
    p["wh2"] = nrm((MLP_DIM, NUM_CLASSES))
    p["bh2"] = nrm((1, NUM_CLASSES), 0.01)
    return p


# ----------------------------------- main ------------------------------------
if __name__ == "__main__":
    root = jax.random.PRNGKey(0)
    k_img, k_par = jax.random.split(root)
    img = jax.random.normal(k_img, (BATCH, CHANNELS, IMAGE_SIZE, IMAGE_SIZE),
                            dtype=jnp.float32)
    params = init_params(k_par)

    y = vit_forward(img, params)
    y = jax.block_until_ready(y)
    assert y.shape == (BATCH, NUM_CLASSES)

    y_ref = jax.block_until_ready(vit_reference(img, params))
    assert jnp.all(jnp.isfinite(y))
    assert jnp.allclose(y, y_ref, atol=2e-3, rtol=2e-3), (y, y_ref)

    print("KERNEL_OK")
</pallas_src>

<mosaic_0001>
module attributes {stable_mosaic.version = 11 : i64} {
  func.func @vit_kernel(%arg0: memref<48x48xf32, #tpu.memory_space<vmem>>, %arg1: memref<48x32xf32, #tpu.memory_space<vmem>>, %arg2: memref<48x32xf32, #tpu.memory_space<vmem>>, %arg3: memref<1x32xf32, #tpu.memory_space<vmem>>, %arg4: memref<2x1x32xf32, #tpu.memory_space<vmem>>, %arg5: memref<2x1x32xf32, #tpu.memory_space<vmem>>, %arg6: memref<2x32x96xf32, #tpu.memory_space<vmem>>, %arg7: memref<2x32x32xf32, #tpu.memory_space<vmem>>, %arg8: memref<2x1x32xf32, #tpu.memory_space<vmem>>, %arg9: memref<2x1x32xf32, #tpu.memory_space<vmem>>, %arg10: memref<2x1x32xf32, #tpu.memory_space<vmem>>, %arg11: memref<2x32x128xf32, #tpu.memory_space<vmem>>, %arg12: memref<2x1x128xf32, #tpu.memory_space<vmem>>, %arg13: memref<2x128x32xf32, #tpu.memory_space<vmem>>, %arg14: memref<2x1x32xf32, #tpu.memory_space<vmem>>, %arg15: memref<32x128xf32, #tpu.memory_space<vmem>>, %arg16: memref<1x128xf32, #tpu.memory_space<vmem>>, %arg17: memref<128x128xf32, #tpu.memory_space<vmem>>, %arg18: memref<1x128xf32, #tpu.memory_space<vmem>>, %arg19: memref<192x32xf32, #tpu.memory_space<vmem>>, %arg20: memref<48x192xf32, #tpu.memory_space<vmem>>, %arg21: memref<16x128xf32, #tpu.memory_space<vmem>>) attributes {dimension_semantics = [], scalar_prefetch = 0 : i64, scratch_operands = 0 : i64, tpu.core_type = #tpu.core_type<tc>} {
    %c0 = arith.constant 0 : index
    %c0_0 = arith.constant 0 : index
    %0 = vector.load %arg0[%c0, %c0_0] : memref<48x48xf32, #tpu.memory_space<vmem>>, vector<48x48xf32>
    %c0_1 = arith.constant 0 : index
    %c0_2 = arith.constant 0 : index
    %1 = vector.load %arg2[%c0_1, %c0_2] : memref<48x32xf32, #tpu.memory_space<vmem>>, vector<48x32xf32>
    %cst = arith.constant dense<0.000000e+00> : vector<48x32xf32>
    %2 = tpu.matmul %0, %1, %cst {dimension_numbers = #tpu.dot_dimension_numbers<[1], [0], [0], [1], [0, 0, 1, 1], [], []>} : vector<48x48xf32>, vector<48x32xf32>, vector<48x32xf32> -> vector<48x32xf32>
    %c0_3 = arith.constant 0 : index
    %c0_4 = arith.constant 0 : index
    %3 = vector.load %arg3[%c0_3, %c0_4] : memref<1x32xf32, #tpu.memory_space<vmem>>, vector<1x32xf32>
    %4 = vector.broadcast %3 : vector<1x32xf32> to vector<48x32xf32>
    %5 = arith.addf %2, %4 : vector<48x32xf32>
    %c0_5 = arith.constant 0 : index
    %c0_6 = arith.constant 0 : index
    %6 = vector.load %arg1[%c0_5, %c0_6] : memref<48x32xf32, #tpu.memory_space<vmem>>, vector<48x32xf32>
    %7 = arith.addf %5, %6 : vector<48x32xf32>
    %c0_7 = arith.constant 0 : index
    %c0_8 = arith.constant 0 : index
    %c0_9 = arith.constant 0 : index
    %8 = vector.load %arg4[%c0_7, %c0_8, %c0_9] : memref<2x1x32xf32, #tpu.memory_space<vmem>>, vector<1x1x32xf32>
    %9 = vector.shape_cast %8 : vector<1x1x32xf32> to vector<1x32xf32>
    %c0_10 = arith.constant 0 : index
    %c0_11 = arith.constant 0 : index
    %c0_12 = arith.constant 0 : index
    %10 = vector.load %arg5[%c0_10, %c0_11, %c0_12] : memref<2x1x32xf32, #tpu.memory_space<vmem>>, vector<1x1x32xf32>
    %11 = vector.shape_cast %10 : vector<1x1x32xf32> to vector<1x32xf32>
    %cst_13 = arith.constant dense<0.000000e+00> : vector<48xf32>
    %12 = vector.multi_reduction <add>, %7, %cst_13 [1] : vector<48x32xf32> to vector<48xf32>
    %13 = vector.shape_cast %12 : vector<48xf32> to vector<48x1xf32>
    %cst_14 = arith.constant 3.200000e+01 : f32
    %14 = vector.broadcast %cst_14 : f32 to vector<48x1xf32>
    %15 = arith.divf %13, %14 : vector<48x1xf32>
    %16 = vector.broadcast %15 : vector<48x1xf32> to vector<48x32xf32>
    %17 = arith.subf %7, %16 : vector<48x32xf32>
    %18 = arith.mulf %17, %17 : vector<48x32xf32>
    %cst_15 = arith.constant dense<0.000000e+00> : vector<48xf32>
    %19 = vector.multi_reduction <add>, %18, %cst_15 [1] : vector<48x32xf32> to vector<48xf32>
    %20 = vector.shape_cast %19 : vector<48xf32> to vector<48x1xf32>
    %cst_16 = arith.constant 3.200000e+01 : f32
    %21 = vector.broadcast %cst_16 : f32 to vector<48x1xf32>
    %22 = arith.divf %20, %21 : vector<48x1xf32>
    %cst_17 = arith.constant 9.99999974E-6 : f32
    %23 = vector.broadcast %cst_17 : f32 to vector<48x1xf32>
    %24 = arith.addf %22, %23 : vector<48x1xf32>
    %25 = math.rsqrt %24 : vector<48x1xf32>
    %26 = vector.broadcast %25 : vector<48x1xf32> to vector<48x32xf32>
    %27 = arith.mulf %17, %26 : vector<48x32xf32>
    %28 = vector.broadcast %9 : vector<1x32xf32> to vector<48x32xf32>
    %29 = arith.mulf %27, %28 : vector<48x32xf32>
    %30 = vector.broadcast %11 : vector<1x32xf32> to vector<48x32xf32>
    %31 = arith.addf %29, %30 : vector<48x32xf32>
    %c0_18 = arith.constant 0 : index
    %c0_19 = arith.constant 0 : index
    %c0_20 = arith.constant 0 : index
    %32 = vector.load %arg6[%c0_18, %c0_19, %c0_20] : memref<2x32x96xf32, #tpu.memory_space<vmem>>, vector<1x32x96xf32>
    %33 = vector.shape_cast %32 : vector<1x32x96xf32> to vector<32x96xf32>
    %cst_21 = arith.constant dense<0.000000e+00> : vector<48x96xf32>
    %34 = tpu.matmul %31, %33, %cst_21 {dimension_numbers = #tpu.dot_dimension_numbers<[1], [0], [0], [1], [0, 0, 1, 1], [], []>} : vector<48x32xf32>, vector<32x96xf32>, vector<48x96xf32> -> vector<48x96xf32>
    %35 = vector.extract_strided_slice %34 {offsets = [0, 0], sizes = [48, 32], strides = [1, 1]} : vector<48x96xf32> to vector<48x32xf32>
    %36 = vector.extract_strided_slice %34 {offsets = [0, 32], sizes = [48, 32], strides = [1, 1]} : vector<48x96xf32> to vector<48x32xf32>
    %37 = vector.extract_strided_slice %34 {offsets = [0, 64], sizes = [48, 32], strides = [1, 1]} : vector<48x96xf32> to vector<48x32xf32>
    %38 = tpu.concatenate %36, %36, %36, %36 in 0 : vector<48x32xf32>, vector<48x32xf32>, vector<48x32xf32>, vector<48x32xf32> -> vector<192x32xf32>
    %c0_22 = arith.constant 0 : index
    %c0_23 = arith.constant 0 : index
    %39 = vector.load %arg19[%c0_22, %c0_23] : memref<192x32xf32, #tpu.memory_space<vmem>>, vector<192x32xf32>
    %40 = arith.mulf %38, %39 : vector<192x32xf32>
    %41 = tpu.concatenate %37, %37, %37, %37 in 0 : vector<48x32xf32>, vector<48x32xf32>, vector<48x32xf32>, vector<48x32xf32> -> vector<192x32xf32>
    %c0_24 = arith.constant 0 : index
    %c0_25 = arith.constant 0 : index
    %42 = vector.load %arg19[%c0_24, %c0_25] : memref<192x32xf32, #tpu.memory_space<vmem>>, vector<192x32xf32>
    %43 = arith.mulf %41, %42 : vector<192x32xf32>
    %cst_26 = arith.constant dense<0.000000e+00> : vector<48x192xf32>
    %44 = tpu.matmul %35, %40, %cst_26 {dimension_numbers = #tpu.dot_dimension_numbers<[1], [1], [0], [0], [0, 0, 1, 0], [], []>} : vector<48x32xf32>, vector<192x32xf32>, vector<48x192xf32> -> vector<48x192xf32>
    %cst_27 = arith.constant 0.176776692 : f32
    %45 = vector.broadcast %cst_27 : f32 to vector<48x192xf32>
    %46 = arith.mulf %44, %45 : vector<48x192xf32>
    %c0_28 = arith.constant 0 : index
    %c0_29 = arith.constant 0 : index
    %47 = vector.load %arg20[%c0_28, %c0_29] : memref<48x192xf32, #tpu.memory_space<vmem>>, vector<48x192xf32>
    %48 = arith.addf %46, %47 : vector<48x192xf32>
    %cst_30 = arith.constant dense<0xFF800000> : vector<48xf32>
    %49 = vector.multi_reduction <maximumf>, %48, %cst_30 [1] : vector<48x192xf32> to vector<48xf32>
    %50 = vector.shape_cast %49 : vector<48xf32> to vector<48x1xf32>
    %51 = vector.broadcast %50 : vector<48x1xf32> to vector<48x192xf32>
    %52 = arith.subf %48, %51 : vector<48x192xf32>
    %53 = math.exp %52 : vector<48x192xf32>
    %c0_31 = arith.constant 0 : index
    %c0_32 = arith.constant 0 : index
    %54 = vector.load %arg19[%c0_31, %c0_32] : memref<192x32xf32, #tpu.memory_space<vmem>>, vector<192x32xf32>
    %cst_33 = arith.constant dense<0.000000e+00> : vector<48x32xf32>
    %55 = tpu.matmul %53, %54, %cst_33 {dimension_numbers = #tpu.dot_dimension_numbers<[1], [0], [0], [1], [0, 0, 1, 1], [], []>} : vector<48x192xf32>, vector<192x32xf32>, vector<48x32xf32> -> vector<48x32xf32>
    %cst_34 = arith.constant dense<0.000000e+00> : vector<48x32xf32>
    %56 = tpu.matmul %53, %43, %cst_34 {dimension_numbers = #tpu.dot_dimension_numbers<[1], [0], [0], [1], [0, 0, 1, 1], [], []>} : vector<48x192xf32>, vector<192x32xf32>, vector<48x32xf32> -> vector<48x32xf32>
    %57 = arith.divf %56, %55 : vector<48x32xf32>
    %c0_35 = arith.constant 0 : index
    %c0_36 = arith.constant 0 : index
    %c0_37 = arith.constant 0 : index
    %58 = vector.load %arg7[%c0_35, %c0_36, %c0_37] : memref<2x32x32xf32, #tpu.memory_space<vmem>>, vector<1x32x32xf32>
    %59 = vector.shape_cast %58 : vector<1x32x32xf32> to vector<32x32xf32>
    %cst_38 = arith.constant dense<0.000000e+00> : vector<48x32xf32>
    %60 = tpu.matmul %57, %59, %cst_38 {dimension_numbers = #tpu.dot_dimension_numbers<[1], [0], [0], [1], [0, 0, 1, 1], [], []>} : vector<48x32xf32>, vector<32x32xf32>, vector<48x32xf32> -> vector<48x32xf32>
    %61 = arith.addf %7, %60 : vector<48x32xf32>
    %c0_39 = arith.constant 0 : index
    %c0_40 = arith.constant 0 : index
    %c0_41 = arith.constant 0 : index
    %62 = vector.load %arg8[%c0_39, %c0_40, %c0_41] : memref<2x1x32xf32, #tpu.memory_space<vmem>>, vector<1x1x32xf32>
    %63 = vector.shape_cast %62 : vector<1x1x32xf32> to vector<1x32xf32>
    %64 = vector.broadcast %63 : vector<1x32xf32> to vector<48x32xf32>
    %65 = arith.addf %61, %64 : vector<48x32xf32>
    %c0_42 = arith.constant 0 : index
    %c0_43 = arith.constant 0 : index
    %c0_44 = arith.constant 0 : index
    %66 = vector.load %arg9[%c0_42, %c0_43, %c0_44] : memref<2x1x32xf32, #tpu.memory_space<vmem>>, vector<1x1x32xf32>
    %67 = vector.shape_cast %66 : vector<1x1x32xf32> to vector<1x32xf32>
    %c0_45 = arith.constant 0 : index
    %c0_46 = arith.constant 0 : index
    %c0_47 = arith.constant 0 : index
    %68 = vector.load %arg10[%c0_45, %c0_46, %c0_47] : memref<2x1x32xf32, #tpu.memory_space<vmem>>, vector<1x1x32xf32>
    %69 = vector.shape_cast %68 : vector<1x1x32xf32> to vector<1x32xf32>
    %cst_48 = arith.constant dense<0.000000e+00> : vector<48xf32>
    %70 = vector.multi_reduction <add>, %65, %cst_48 [1] : vector<48x32xf32> to vector<48xf32>
    %71 = vector.shape_cast %70 : vector<48xf32> to vector<48x1xf32>
    %cst_49 = arith.constant 3.200000e+01 : f32
    %72 = vector.broadcast %cst_49 : f32 to vector<48x1xf32>
    %73 = arith.divf %71, %72 : vector<48x1xf32>
    %74 = vector.broadcast %73 : vector<48x1xf32> to vector<48x32xf32>
    %75 = arith.subf %65, %74 : vector<48x32xf32>
    %76 = arith.mulf %75, %75 : vector<48x32xf32>
    %cst_50 = arith.constant dense<0.000000e+00> : vector<48xf32>
    %77 = vector.multi_reduction <add>, %76, %cst_50 [1] : vector<48x32xf32> to vector<48xf32>
    %78 = vector.shape_cast %77 : vector<48xf32> to vector<48x1xf32>
    %cst_51 = arith.constant 3.200000e+01 : f32
    %79 = vector.broadcast %cst_51 : f32 to vector<48x1xf32>
    %80 = arith.divf %78, %79 : vector<48x1xf32>
    %cst_52 = arith.constant 9.99999974E-6 : f32
    %81 = vector.broadcast %cst_52 : f32 to vector<48x1xf32>
    %82 = arith.addf %80, %81 : vector<48x1xf32>
    %83 = math.rsqrt %82 : vector<48x1xf32>
    %84 = vector.broadcast %83 : vector<48x1xf32> to vector<48x32xf32>
    %85 = arith.mulf %75, %84 : vector<48x32xf32>
    %86 = vector.broadcast %67 : vector<1x32xf32> to vector<48x32xf32>
    %87 = arith.mulf %85, %86 : vector<48x32xf32>
    %88 = vector.broadcast %69 : vector<1x32xf32> to vector<48x32xf32>
    %89 = arith.addf %87, %88 : vector<48x32xf32>
    %c0_53 = arith.constant 0 : index
    %c0_54 = arith.constant 0 : index
    %c0_55 = arith.constant 0 : index
    %90 = vector.load %arg11[%c0_53, %c0_54, %c0_55] : memref<2x32x128xf32, #tpu.memory_space<vmem>>, vector<1x32x128xf32>
    %91 = vector.shape_cast %90 : vector<1x32x128xf32> to vector<32x128xf32>
    %cst_56 = arith.constant dense<0.000000e+00> : vector<48x128xf32>
    %92 = tpu.matmul %89, %91, %cst_56 {dimension_numbers = #tpu.dot_dimension_numbers<[1], [0], [0], [1], [0, 0, 1, 1], [], []>} : vector<48x32xf32>, vector<32x128xf32>, vector<48x128xf32> -> vector<48x128xf32>
    %c0_57 = arith.constant 0 : index
    %c0_58 = arith.constant 0 : index
    %c0_59 = arith.constant 0 : index
    %93 = vector.load %arg12[%c0_57, %c0_58, %c0_59] : memref<2x1x128xf32, #tpu.memory_space<vmem>>, vector<1x1x128xf32>
    %94 = vector.shape_cast %93 : vector<1x1x128xf32> to vector<1x128xf32>
    %95 = vector.broadcast %94 : vector<1x128xf32> to vector<48x128xf32>
    %96 = arith.addf %92, %95 : vector<48x128xf32>
    %cst_60 = arith.constant 5.000000e-01 : f32
    %97 = vector.broadcast %cst_60 : f32 to vector<48x128xf32>
    %98 = arith.mulf %97, %96 : vector<48x128xf32>
    %cst_61 = arith.constant 0.707106769 : f32
    %99 = vector.broadcast %cst_61 : f32 to vector<48x128xf32>
    %100 = arith.mulf %96, %99 : vector<48x128xf32>
    %cst_62 = arith.constant 0.000000e+00 : f32
    %101 = vector.broadcast %cst_62 : f32 to vector<48x128xf32>
    %102 = arith.cmpf oge, %100, %101 : vector<48x128xf32>
    %cst_63 = arith.constant 1.000000e+00 : f32
    %cst_64 = arith.constant -1.000000e+00 : f32
    %103 = vector.broadcast %cst_63 : f32 to vector<48x128xf32>
    %104 = vector.broadcast %cst_64 : f32 to vector<48x128xf32>
    %105 = arith.select %102, %103, %104 : vector<48x128xi1>, vector<48x128xf32>
    %106 = math.absf %100 : vector<48x128xf32>
    %cst_65 = arith.constant 0.327591091 : f32
    %107 = vector.broadcast %cst_65 : f32 to vector<48x128xf32>
    %108 = arith.mulf %107, %106 : vector<48x128xf32>
    %cst_66 = arith.constant 1.000000e+00 : f32
    %109 = vector.broadcast %cst_66 : f32 to vector<48x128xf32>
    %110 = arith.addf %109, %108 : vector<48x128xf32>
    %cst_67 = arith.constant 1.000000e+00 : f32
    %111 = vector.broadcast %cst_67 : f32 to vector<48x128xf32>
    %112 = arith.divf %111, %110 : vector<48x128xf32>
    %cst_68 = arith.constant 1.06140542 : f32
    %113 = vector.broadcast %cst_68 : f32 to vector<48x128xf32>
    %114 = arith.mulf %113, %112 : vector<48x128xf32>
    %cst_69 = arith.constant -1.45315206 : f32
    %115 = vector.broadcast %cst_69 : f32 to vector<48x128xf32>
    %116 = arith.addf %114, %115 : vector<48x128xf32>
    %117 = arith.mulf %116, %112 : vector<48x128xf32>
    %cst_70 = arith.constant 1.42141378 : f32
    %118 = vector.broadcast %cst_70 : f32 to vector<48x128xf32>
    %119 = arith.addf %117, %118 : vector<48x128xf32>
    %120 = arith.mulf %119, %112 : vector<48x128xf32>
    %cst_71 = arith.constant -0.284496725 : f32
    %121 = vector.broadcast %cst_71 : f32 to vector<48x128xf32>
    %122 = arith.addf %120, %121 : vector<48x128xf32>
    %123 = arith.mulf %122, %112 : vector<48x128xf32>
    %cst_72 = arith.constant 0.254829586 : f32
    %124 = vector.broadcast %cst_72 : f32 to vector<48x128xf32>
    %125 = arith.addf %123, %124 : vector<48x128xf32>
    %126 = arith.mulf %125, %112 : vector<48x128xf32>
    %cst_73 = arith.constant 0.000000e+00 : f32
    %127 = vector.broadcast %cst_73 : f32 to vector<48x128xf32>
    %128 = arith.subf %127, %106 : vector<48x128xf32>
    %129 = arith.mulf %128, %106 : vector<48x128xf32>
    %130 = math.exp %129 : vector<48x128xf32>
    %131 = arith.mulf %126, %130 : vector<48x128xf32>
    %cst_74 = arith.constant 1.000000e+00 : f32
    %132 = vector.broadcast %cst_74 : f32 to vector<48x128xf32>
    %133 = arith.subf %132, %131 : vector<48x128xf32>
    %134 = arith.mulf %105, %133 : vector<48x128xf32>
    %cst_75 = arith.constant 1.000000e+00 : f32
    %135 = vector.broadcast %cst_75 : f32 to vector<48x128xf32>
    %136 = arith.addf %135, %134 : vector<48x128xf32>
    %137 = arith.mulf %98, %136 : vector<48x128xf32>
    %c0_76 = arith.constant 0 : index
    %c0_77 = arith.constant 0 : index
    %c0_78 = arith.constant 0 : index
    %138 = vector.load %arg13[%c0_76, %c0_77, %c0_78] : memref<2x128x32xf32, #tpu.memory_space<vmem>>, vector<1x128x32xf32>
    %139 = vector.shape_cast %138 : vector<1x128x32xf32> to vector<128x32xf32>
    %cst_79 = arith.constant dense<0.000000e+00> : vector<48x32xf32>
    %140 = tpu.matmul %137, %139, %cst_79 {dimension_numbers = #tpu.dot_dimension_numbers<[1], [0], [0], [1], [0, 0, 1, 1], [], []>} : vector<48x128xf32>, vector<128x32xf32>, vector<48x32xf32> -> vector<48x32xf32>
    %141 = arith.addf %65, %140 : vector<48x32xf32>
    %c0_80 = arith.constant 0 : index
    %c0_81 = arith.constant 0 : index
    %c0_82 = arith.constant 0 : index
    %142 = vector.load %arg14[%c0_80, %c0_81, %c0_82] : memref<2x1x32xf32, #tpu.memory_space<vmem>>, vector<1x1x32xf32>
    %143 = vector.shape_cast %142 : vector<1x1x32xf32> to vector<1x32xf32>
    %144 = vector.broadcast %143 : vector<1x32xf32> to vector<48x32xf32>
    %145 = arith.addf %141, %144 : vector<48x32xf32>
    %c1 = arith.constant 1 : index
    %c0_83 = arith.constant 0 : index
    %c0_84 = arith.constant 0 : index
    %146 = vector.load %arg4[%c1, %c0_83, %c0_84] : memref<2x1x32xf32, #tpu.memory_space<vmem>>, vector<1x1x32xf32>
    %147 = vector.shape_cast %146 : vector<1x1x32xf32> to vector<1x32xf32>
    %c1_85 = arith.constant 1 : index
    %c0_86 = arith.constant 0 : index
    %c0_87 = arith.constant 0 : index
    %148 = vector.load %arg5[%c1_85, %c0_86, %c0_87] : memref<2x1x32xf32, #tpu.memory_space<vmem>>, vector<1x1x32xf32>
    %149 = vector.shape_cast %148 : vector<1x1x32xf32> to vector<1x32xf32>
    %cst_88 = arith.constant dense<0.000000e+00> : vector<48xf32>
    %150 = vector.multi_reduction <add>, %145, %cst_88 [1] : vector<48x32xf32> to vector<48xf32>
    %151 = vector.shape_cast %150 : vector<48xf32> to vector<48x1xf32>
    %cst_89 = arith.constant 3.200000e+01 : f32
    %152 = vector.broadcast %cst_89 : f32 to vector<48x1xf32>
    %153 = arith.divf %151, %152 : vector<48x1xf32>
    %154 = vector.broadcast %153 : vector<48x1xf32> to vector<48x32xf32>
    %155 = arith.subf %145, %154 : vector<48x32xf32>
    %156 = arith.mulf %155, %155 : vector<48x32xf32>
    %cst_90 = arith.constant dense<0.000000e+00> : vector<48xf32>
    %157 = vector.multi_reduction <add>, %156, %cst_90 [1] : vector<48x32xf32> to vector<48xf32>
    %158 = vector.shape_cast %157 : vector<48xf32> to vector<48x1xf32>
    %cst_91 = arith.constant 3.200000e+01 : f32
    %159 = vector.broadcast %cst_91 : f32 to vector<48x1xf32>
    %160 = arith.divf %158, %159 : vector<48x1xf32>
    %cst_92 = arith.constant 9.99999974E-6 : f32
    %161 = vector.broadcast %cst_92 : f32 to vector<48x1xf32>
    %162 = arith.addf %160, %161 : vector<48x1xf32>
    %163 = math.rsqrt %162 : vector<48x1xf32>
    %164 = vector.broadcast %163 : vector<48x1xf32> to vector<48x32xf32>
    %165 = arith.mulf %155, %164 : vector<48x32xf32>
    %166 = vector.broadcast %147 : vector<1x32xf32> to vector<48x32xf32>
    %167 = arith.mulf %165, %166 : vector<48x32xf32>
    %168 = vector.broadcast %149 : vector<1x32xf32> to vector<48x32xf32>
    %169 = arith.addf %167, %168 : vector<48x32xf32>
    %c1_93 = arith.constant 1 : index
    %c0_94 = arith.constant 0 : index
    %c0_95 = arith.constant 0 : index
    %170 = vector.load %arg6[%c1_93, %c0_94, %c0_95] : memref<2x32x96xf32, #tpu.memory_space<vmem>>, vector<1x32x96xf32>
    %171 = vector.shape_cast %170 : vector<1x32x96xf32> to vector<32x96xf32>
    %cst_96 = arith.constant dense<0.000000e+00> : vector<48x96xf32>
    %172 = tpu.matmul %169, %171, %cst_96 {dimension_numbers = #tpu.dot_dimension_numbers<[1], [0], [0], [1], [0, 0, 1, 1], [], []>} : vector<48x32xf32>, vector<32x96xf32>, vector<48x96xf32> -> vector<48x96xf32>
    %173 = vector.extract_strided_slice %172 {offsets = [0, 0], sizes = [48, 32], strides = [1, 1]} : vector<48x96xf32> to vector<48x32xf32>
    %174 = vector.extract_strided_slice %172 {offsets = [0, 32], sizes = [48, 32], strides = [1, 1]} : vector<48x96xf32> to vector<48x32xf32>
    %175 = vector.extract_strided_slice %172 {offsets = [0, 64], sizes = [48, 32], strides = [1, 1]} : vector<48x96xf32> to vector<48x32xf32>
    %176 = tpu.concatenate %174, %174, %174, %174 in 0 : vector<48x32xf32>, vector<48x32xf32>, vector<48x32xf32>, vector<48x32xf32> -> vector<192x32xf32>
    %c0_97 = arith.constant 0 : index
    %c0_98 = arith.constant 0 : index
    %177 = vector.load %arg19[%c0_97, %c0_98] : memref<192x32xf32, #tpu.memory_space<vmem>>, vector<192x32xf32>
    %178 = arith.mulf %176, %177 : vector<192x32xf32>
    %179 = tpu.concatenate %175, %175, %175, %175 in 0 : vector<48x32xf32>, vector<48x32xf32>, vector<48x32xf32>, vector<48x32xf32> -> vector<192x32xf32>
    %c0_99 = arith.constant 0 : index
    %c0_100 = arith.constant 0 : index
    %180 = vector.load %arg19[%c0_99, %c0_100] : memref<192x32xf32, #tpu.memory_space<vmem>>, vector<192x32xf32>
    %181 = arith.mulf %179, %180 : vector<192x32xf32>
    %cst_101 = arith.constant dense<0.000000e+00> : vector<48x192xf32>
    %182 = tpu.matmul %173, %178, %cst_101 {dimension_numbers = #tpu.dot_dimension_numbers<[1], [1], [0], [0], [0, 0, 1, 0], [], []>} : vector<48x32xf32>, vector<192x32xf32>, vector<48x192xf32> -> vector<48x192xf32>
    %cst_102 = arith.constant 0.176776692 : f32
    %183 = vector.broadcast %cst_102 : f32 to vector<48x192xf32>
    %184 = arith.mulf %182, %183 : vector<48x192xf32>
    %c0_103 = arith.constant 0 : index
    %c0_104 = arith.constant 0 : index
    %185 = vector.load %arg20[%c0_103, %c0_104] : memref<48x192xf32, #tpu.memory_space<vmem>>, vector<48x192xf32>
    %186 = arith.addf %184, %185 : vector<48x192xf32>
    %cst_105 = arith.constant dense<0xFF800000> : vector<48xf32>
    %187 = vector.multi_reduction <maximumf>, %186, %cst_105 [1] : vector<48x192xf32> to vector<48xf32>
    %188 = vector.shape_cast %187 : vector<48xf32> to vector<48x1xf32>
    %189 = vector.broadcast %188 : vector<48x1xf32> to vector<48x192xf32>
    %190 = arith.subf %186, %189 : vector<48x192xf32>
    %191 = math.exp %190 : vector<48x192xf32>
    %c0_106 = arith.constant 0 : index
    %c0_107 = arith.constant 0 : index
    %192 = vector.load %arg19[%c0_106, %c0_107] : memref<192x32xf32, #tpu.memory_space<vmem>>, vector<192x32xf32>
    %cst_108 = arith.constant dense<0.000000e+00> : vector<48x32xf32>
    %193 = tpu.matmul %191, %192, %cst_108 {dimension_numbers = #tpu.dot_dimension_numbers<[1], [0], [0], [1], [0, 0, 1, 1], [], []>} : vector<48x192xf32>, vector<192x32xf32>, vector<48x32xf32> -> vector<48x32xf32>
    %cst_109 = arith.constant dense<0.000000e+00> : vector<48x32xf32>
    %194 = tpu.matmul %191, %181, %cst_109 {dimension_numbers = #tpu.dot_dimension_numbers<[1], [0], [0], [1], [0, 0, 1, 1], [], []>} : vector<48x192xf32>, vector<192x32xf32>, vector<48x32xf32> -> vector<48x32xf32>
    %195 = arith.divf %194, %193 : vector<48x32xf32>
    %c1_110 = arith.constant 1 : index
    %c0_111 = arith.constant 0 : index
    %c0_112 = arith.constant 0 : index
    %196 = vector.load %arg7[%c1_110, %c0_111, %c0_112] : memref<2x32x32xf32, #tpu.memory_space<vmem>>, vector<1x32x32xf32>
    %197 = vector.shape_cast %196 : vector<1x32x32xf32> to vector<32x32xf32>
    %cst_113 = arith.constant dense<0.000000e+00> : vector<48x32xf32>
    %198 = tpu.matmul %195, %197, %cst_113 {dimension_numbers = #tpu.dot_dimension_numbers<[1], [0], [0], [1], [0, 0, 1, 1], [], []>} : vector<48x32xf32>, vector<32x32xf32>, vector<48x32xf32> -> vector<48x32xf32>
    %199 = arith.addf %145, %198 : vector<48x32xf32>
    %c1_114 = arith.constant 1 : index
    %c0_115 = arith.constant 0 : index
    %c0_116 = arith.constant 0 : index
    %200 = vector.load %arg8[%c1_114, %c0_115, %c0_116] : memref<2x1x32xf32, #tpu.memory_space<vmem>>, vector<1x1x32xf32>
    %201 = vector.shape_cast %200 : vector<1x1x32xf32> to vector<1x32xf32>
    %202 = vector.broadcast %201 : vector<1x32xf32> to vector<48x32xf32>
    %203 = arith.addf %199, %202 : vector<48x32xf32>
    %c1_117 = arith.constant 1 : index
    %c0_118 = arith.constant 0 : index
    %c0_119 = arith.constant 0 : index
    %204 = vector.load %arg9[%c1_117, %c0_118, %c0_119] : memref<2x1x32xf32, #tpu.memory_space<vmem>>, vector<1x1x32xf32>
    %205 = vector.shape_cast %204 : vector<1x1x32xf32> to vector<1x32xf32>
    %c1_120 = arith.constant 1 : index
    %c0_121 = arith.constant 0 : index
    %c0_122 = arith.constant 0 : index
    %206 = vector.load %arg10[%c1_120, %c0_121, %c0_122] : memref<2x1x32xf32, #tpu.memory_space<vmem>>, vector<1x1x32xf32>
    %207 = vector.shape_cast %206 : vector<1x1x32xf32> to vector<1x32xf32>
    %cst_123 = arith.constant dense<0.000000e+00> : vector<48xf32>
    %208 = vector.multi_reduction <add>, %203, %cst_123 [1] : vector<48x32xf32> to vector<48xf32>
    %209 = vector.shape_cast %208 : vector<48xf32> to vector<48x1xf32>
    %cst_124 = arith.constant 3.200000e+01 : f32
    %210 = vector.broadcast %cst_124 : f32 to vector<48x1xf32>
    %211 = arith.divf %209, %210 : vector<48x1xf32>
    %212 = vector.broadcast %211 : vector<48x1xf32> to vector<48x32xf32>
    %213 = arith.subf %203, %212 : vector<48x32xf32>
    %214 = arith.mulf %213, %213 : vector<48x32xf32>
    %cst_125 = arith.constant dense<0.000000e+00> : vector<48xf32>
    %215 = vector.multi_reduction <add>, %214, %cst_125 [1] : vector<48x32xf32> to vector<48xf32>
    %216 = vector.shape_cast %215 : vector<48xf32> to vector<48x1xf32>
    %cst_126 = arith.constant 3.200000e+01 : f32
    %217 = vector.broadcast %cst_126 : f32 to vector<48x1xf32>
    %218 = arith.divf %216, %217 : vector<48x1xf32>
    %cst_127 = arith.constant 9.99999974E-6 : f32
    %219 = vector.broadcast %cst_127 : f32 to vector<48x1xf32>
    %220 = arith.addf %218, %219 : vector<48x1xf32>
    %221 = math.rsqrt %220 : vector<48x1xf32>
    %222 = vector.broadcast %221 : vector<48x1xf32> to vector<48x32xf32>
    %223 = arith.mulf %213, %222 : vector<48x32xf32>
    %224 = vector.broadcast %205 : vector<1x32xf32> to vector<48x32xf32>
    %225 = arith.mulf %223, %224 : vector<48x32xf32>
    %226 = vector.broadcast %207 : vector<1x32xf32> to vector<48x32xf32>
    %227 = arith.addf %225, %226 : vector<48x32xf32>
    %c1_128 = arith.constant 1 : index
    %c0_129 = arith.constant 0 : index
    %c0_130 = arith.constant 0 : index
    %228 = vector.load %arg11[%c1_128, %c0_129, %c0_130] : memref<2x32x128xf32, #tpu.memory_space<vmem>>, vector<1x32x128xf32>
    %229 = vector.shape_cast %228 : vector<1x32x128xf32> to vector<32x128xf32>
    %cst_131 = arith.constant dense<0.000000e+00> : vector<48x128xf32>
    %230 = tpu.matmul %227, %229, %cst_131 {dimension_numbers = #tpu.dot_dimension_numbers<[1], [0], [0], [1], [0, 0, 1, 1], [], []>} : vector<48x32xf32>, vector<32x128xf32>, vector<48x128xf32> -> vector<48x128xf32>
    %c1_132 = arith.constant 1 : index
    %c0_133 = arith.constant 0 : index
    %c0_134 = arith.constant 0 : index
    %231 = vector.load %arg12[%c1_132, %c0_133, %c0_134] : memref<2x1x128xf32, #tpu.memory_space<vmem>>, vector<1x1x128xf32>
    %232 = vector.shape_cast %231 : vector<1x1x128xf32> to vector<1x128xf32>
    %233 = vector.broadcast %232 : vector<1x128xf32> to vector<48x128xf32>
    %234 = arith.addf %230, %233 : vector<48x128xf32>
    %cst_135 = arith.constant 5.000000e-01 : f32
    %235 = vector.broadcast %cst_135 : f32 to vector<48x128xf32>
    %236 = arith.mulf %235, %234 : vector<48x128xf32>
    %cst_136 = arith.constant 0.707106769 : f32
    %237 = vector.broadcast %cst_136 : f32 to vector<48x128xf32>
    %238 = arith.mulf %234, %237 : vector<48x128xf32>
    %cst_137 = arith.constant 0.000000e+00 : f32
    %239 = vector.broadcast %cst_137 : f32 to vector<48x128xf32>
    %240 = arith.cmpf oge, %238, %239 : vector<48x128xf32>
    %cst_138 = arith.constant 1.000000e+00 : f32
    %cst_139 = arith.constant -1.000000e+00 : f32
    %241 = vector.broadcast %cst_138 : f32 to vector<48x128xf32>
    %242 = vector.broadcast %cst_139 : f32 to vector<48x128xf32>
    %243 = arith.select %240, %241, %242 : vector<48x128xi1>, vector<48x128xf32>
    %244 = math.absf %238 : vector<48x128xf32>
    %cst_140 = arith.constant 0.327591091 : f32
    %245 = vector.broadcast %cst_140 : f32 to vector<48x128xf32>
    %246 = arith.mulf %245, %244 : vector<48x128xf32>
    %cst_141 = arith.constant 1.000000e+00 : f32
    %247 = vector.broadcast %cst_141 : f32 to vector<48x128xf32>
    %248 = arith.addf %247, %246 : vector<48x128xf32>
    %cst_142 = arith.constant 1.000000e+00 : f32
    %249 = vector.broadcast %cst_142 : f32 to vector<48x128xf32>
    %250 = arith.divf %249, %248 : vector<48x128xf32>
    %cst_143 = arith.constant 1.06140542 : f32
    %251 = vector.broadcast %cst_143 : f32 to vector<48x128xf32>
    %252 = arith.mulf %251, %250 : vector<48x128xf32>
    %cst_144 = arith.constant -1.45315206 : f32
    %253 = vector.broadcast %cst_144 : f32 to vector<48x128xf32>
    %254 = arith.addf %252, %253 : vector<48x128xf32>
    %255 = arith.mulf %254, %250 : vector<48x128xf32>
    %cst_145 = arith.constant 1.42141378 : f32
    %256 = vector.broadcast %cst_145 : f32 to vector<48x128xf32>
    %257 = arith.addf %255, %256 : vector<48x128xf32>
    %258 = arith.mulf %257, %250 : vector<48x128xf32>
    %cst_146 = arith.constant -0.284496725 : f32
    %259 = vector.broadcast %cst_146 : f32 to vector<48x128xf32>
    %260 = arith.addf %258, %259 : vector<48x128xf32>
    %261 = arith.mulf %260, %250 : vector<48x128xf32>
    %cst_147 = arith.constant 0.254829586 : f32
    %262 = vector.broadcast %cst_147 : f32 to vector<48x128xf32>
    %263 = arith.addf %261, %262 : vector<48x128xf32>
    %264 = arith.mulf %263, %250 : vector<48x128xf32>
    %cst_148 = arith.constant 0.000000e+00 : f32
    %265 = vector.broadcast %cst_148 : f32 to vector<48x128xf32>
    %266 = arith.subf %265, %244 : vector<48x128xf32>
    %267 = arith.mulf %266, %244 : vector<48x128xf32>
    %268 = math.exp %267 : vector<48x128xf32>
    %269 = arith.mulf %264, %268 : vector<48x128xf32>
    %cst_149 = arith.constant 1.000000e+00 : f32
    %270 = vector.broadcast %cst_149 : f32 to vector<48x128xf32>
    %271 = arith.subf %270, %269 : vector<48x128xf32>
    %272 = arith.mulf %243, %271 : vector<48x128xf32>
    %cst_150 = arith.constant 1.000000e+00 : f32
    %273 = vector.broadcast %cst_150 : f32 to vector<48x128xf32>
    %274 = arith.addf %273, %272 : vector<48x128xf32>
    %275 = arith.mulf %236, %274 : vector<48x128xf32>
    %c1_151 = arith.constant 1 : index
    %c0_152 = arith.constant 0 : index
    %c0_153 = arith.constant 0 : index
    %276 = vector.load %arg13[%c1_151, %c0_152, %c0_153] : memref<2x128x32xf32, #tpu.memory_space<vmem>>, vector<1x128x32xf32>
    %277 = vector.shape_cast %276 : vector<1x128x32xf32> to vector<128x32xf32>
    %cst_154 = arith.constant dense<0.000000e+00> : vector<48x32xf32>
    %278 = tpu.matmul %275, %277, %cst_154 {dimension_numbers = #tpu.dot_dimension_numbers<[1], [0], [0], [1], [0, 0, 1, 1], [], []>} : vector<48x128xf32>, vector<128x32xf32>, vector<48x32xf32> -> vector<48x32xf32>
    %279 = arith.addf %203, %278 : vector<48x32xf32>
    %c1_155 = arith.constant 1 : index
    %c0_156 = arith.constant 0 : index
    %c0_157 = arith.constant 0 : index
    %280 = vector.load %arg14[%c1_155, %c0_156, %c0_157] : memref<2x1x32xf32, #tpu.memory_space<vmem>>, vector<1x1x32xf32>
    %281 = vector.shape_cast %280 : vector<1x1x32xf32> to vector<1x32xf32>
    %282 = vector.broadcast %281 : vector<1x32xf32> to vector<48x32xf32>
    %283 = arith.addf %279, %282 : vector<48x32xf32>
    %284 = vector.extract_strided_slice %283 {offsets = [0, 0], sizes = [8, 32], strides = [1, 1]} : vector<48x32xf32> to vector<8x32xf32>
    %285 = vector.extract_strided_slice %283 {offsets = [24, 0], sizes = [8, 32], strides = [1, 1]} : vector<48x32xf32> to vector<8x32xf32>
    %286 = tpu.concatenate %284, %285 in 0 : vector<8x32xf32>, vector<8x32xf32> -> vector<16x32xf32>
    %c0_158 = arith.constant 0 : index
    %c0_159 = arith.constant 0 : index
    %287 = vector.load %arg15[%c0_158, %c0_159] : memref<32x128xf32, #tpu.memory_space<vmem>>, vector<32x128xf32>
    %cst_160 = arith.constant dense<0.000000e+00> : vector<16x128xf32>
    %288 = tpu.matmul %286, %287, %cst_160 {dimension_numbers = #tpu.dot_dimension_numbers<[1], [0], [0], [1], [0, 0, 1, 1], [], []>} : vector<16x32xf32>, vector<32x128xf32>, vector<16x128xf32> -> vector<16x128xf32>
    %c0_161 = arith.constant 0 : index
    %c0_162 = arith.constant 0 : index
    %289 = vector.load %arg16[%c0_161, %c0_162] : memref<1x128xf32, #tpu.memory_space<vmem>>, vector<1x128xf32>
    %290 = vector.broadcast %289 : vector<1x128xf32> to vector<16x128xf32>
    %291 = arith.addf %288, %290 : vector<16x128xf32>
    %cst_163 = arith.constant 5.000000e-01 : f32
    %292 = vector.broadcast %cst_163 : f32 to vector<16x128xf32>
    %293 = arith.mulf %292, %291 : vector<16x128xf32>
    %cst_164 = arith.constant 0.707106769 : f32
    %294 = vector.broadcast %cst_164 : f32 to vector<16x128xf32>
    %295 = arith.mulf %291, %294 : vector<16x128xf32>
    %cst_165 = arith.constant 0.000000e+00 : f32
    %296 = vector.broadcast %cst_165 : f32 to vector<16x128xf32>
    %297 = arith.cmpf oge, %295, %296 : vector<16x128xf32>
    %cst_166 = arith.constant 1.000000e+00 : f32
    %cst_167 = arith.constant -1.000000e+00 : f32
    %298 = vector.broadcast %cst_166 : f32 to vector<16x128xf32>
    %299 = vector.broadcast %cst_167 : f32 to vector<16x128xf32>
    %300 = arith.select %297, %298, %299 : vector<16x128xi1>, vector<16x128xf32>
    %301 = math.absf %295 : vector<16x128xf32>
    %cst_168 = arith.constant 0.327591091 : f32
    %302 = vector.broadcast %cst_168 : f32 to vector<16x128xf32>
    %303 = arith.mulf %302, %301 : vector<16x128xf32>
    %cst_169 = arith.constant 1.000000e+00 : f32
    %304 = vector.broadcast %cst_169 : f32 to vector<16x128xf32>
    %305 = arith.addf %304, %303 : vector<16x128xf32>
    %cst_170 = arith.constant 1.000000e+00 : f32
    %306 = vector.broadcast %cst_170 : f32 to vector<16x128xf32>
    %307 = arith.divf %306, %305 : vector<16x128xf32>
    %cst_171 = arith.constant 1.06140542 : f32
    %308 = vector.broadcast %cst_171 : f32 to vector<16x128xf32>
    %309 = arith.mulf %308, %307 : vector<16x128xf32>
    %cst_172 = arith.constant -1.45315206 : f32
    %310 = vector.broadcast %cst_172 : f32 to vector<16x128xf32>
    %311 = arith.addf %309, %310 : vector<16x128xf32>
    %312 = arith.mulf %311, %307 : vector<16x128xf32>
    %cst_173 = arith.constant 1.42141378 : f32
    %313 = vector.broadcast %cst_173 : f32 to vector<16x128xf32>
    %314 = arith.addf %312, %313 : vector<16x128xf32>
    %315 = arith.mulf %314, %307 : vector<16x128xf32>
    %cst_174 = arith.constant -0.284496725 : f32
    %316 = vector.broadcast %cst_174 : f32 to vector<16x128xf32>
    %317 = arith.addf %315, %316 : vector<16x128xf32>
    %318 = arith.mulf %317, %307 : vector<16x128xf32>
    %cst_175 = arith.constant 0.254829586 : f32
    %319 = vector.broadcast %cst_175 : f32 to vector<16x128xf32>
    %320 = arith.addf %318, %319 : vector<16x128xf32>
    %321 = arith.mulf %320, %307 : vector<16x128xf32>
    %cst_176 = arith.constant 0.000000e+00 : f32
    %322 = vector.broadcast %cst_176 : f32 to vector<16x128xf32>
    %323 = arith.subf %322, %301 : vector<16x128xf32>
    %324 = arith.mulf %323, %301 : vector<16x128xf32>
    %325 = math.exp %324 : vector<16x128xf32>
    %326 = arith.mulf %321, %325 : vector<16x128xf32>
    %cst_177 = arith.constant 1.000000e+00 : f32
    %327 = vector.broadcast %cst_177 : f32 to vector<16x128xf32>
    %328 = arith.subf %327, %326 : vector<16x128xf32>
    %329 = arith.mulf %300, %328 : vector<16x128xf32>
    %cst_178 = arith.constant 1.000000e+00 : f32
    %330 = vector.broadcast %cst_178 : f32 to vector<16x128xf32>
    %331 = arith.addf %330, %329 : vector<16x128xf32>
    %332 = arith.mulf %293, %331 : vector<16x128xf32>
    %c0_179 = arith.constant 0 : index
    %c0_180 = arith.constant 0 : index
    %333 = vector.load %arg17[%c0_179, %c0_180] : memref<128x128xf32, #tpu.memory_space<vmem>>, vector<128x128xf32>
    %cst_181 = arith.constant dense<0.000000e+00> : vector<16x128xf32>
    %334 = tpu.matmul %332, %333, %cst_181 {dimension_numbers = #tpu.dot_dimension_numbers<[1], [0], [0], [1], [0, 0, 1, 1], [], []>} : vector<16x128xf32>, vector<128x128xf32>, vector<16x128xf32> -> vector<16x128xf32>
    %c0_182 = arith.constant 0 : index
    %c0_183 = arith.constant 0 : index
    %335 = vector.load %arg18[%c0_182, %c0_183] : memref<1x128xf32, #tpu.memory_space<vmem>>, vector<1x128xf32>
    %336 = vector.broadcast %335 : vector<1x128xf32> to vector<16x128xf32>
    %337 = arith.addf %334, %336 : vector<16x128xf32>
    %c0_184 = arith.constant 0 : index
    %c0_185 = arith.constant 0 : index
    %338 = vector.load %arg21[%c0_184, %c0_185] : memref<16x128xf32, #tpu.memory_space<vmem>>, vector<16x128xf32>
    tpu.vector_store %arg21[%c0_184, %c0_185], %337 {strides = array<i32>} : memref<16x128xf32, #tpu.memory_space<vmem>>, vector<16x128xf32>,
    return
  }
}

</mosaic_0001>

<bundles_post_ra>
// kernel: vit_forward.1
= control target key start
LH: loop header
LB: loop body
LE: loop exit
PB: predicated region body
PF: predicated region fallthrough
CT: control target
= control target key end

     0   :  { %vm87_vm0 = vcmask 392192   ;;  %vm215_vm1 = vcmask 261120   ;;  %s5206_s30 = smov 32   ;;  %vm951_vm3 = vcmask 523264   ;;  %s7324_s2 = inlined_call_operand.vmem [shape: f32[48,32], index: 2, kind: input, shape index: {}]   ;;  %s7325_s0 = inlined_call_operand.vmem [shape: f32[48,48], index: 0, kind: input, shape index: {}]   ;;  %s7326_s3 = inlined_call_operand.vmem [shape: f32[1,32], index: 3, kind: input, shape index: {}]   ;;  %s7327_s1 = inlined_call_operand.vmem [shape: f32[48,32], index: 1, kind: input, shape index: {}]   ;;  %s7328_s6 = inlined_call_operand.vmem [shape: f32[2,32,96], index: 6, kind: input, shape index: {}]   ;;  %s7329_s19 = inlined_call_operand.vmem [shape: f32[192,32], index: 19, kind: input, shape index: {}]   ;;  %s7330_s4 = inlined_call_operand.vmem [shape: f32[2,1,32], index: 4, kind: input, shape index: {}]   ;;  %s7331_s5 = inlined_call_operand.vmem [shape: f32[2,1,32], index: 5, kind: input, shape index: {}]   ;;  %s7332_s20 = inlined_call_operand.vmem [shape: f32[48,192], index: 20, kind: input, shape index: {}]   ;;  %s7333_s7 = inlined_call_operand.vmem [shape: f32[2,32,32], index: 7, kind: input, shape index: {}]   ;;  %s7334_s8 = inlined_call_operand.vmem [shape: f32[2,1,32], index: 8, kind: input, shape index: {}]   ;;  %s7335_s11 = inlined_call_operand.vmem [shape: f32[2,32,128], index: 11, kind: input, shape index: {}]   ;;  %s7336_s9 = inlined_call_operand.vmem [shape: f32[2,1,32], index: 9, kind: input, shape index: {}]   ;;  %s7337_s10 = inlined_call_operand.vmem [shape: f32[2,1,32], index: 10, kind: input, shape index: {}]   ;;  %s7338_s13 = inlined_call_operand.vmem [shape: f32[2,128,32], index: 13, kind: input, shape index: {}]   ;;  %s7339_s12 = inlined_call_operand.vmem [shape: f32[2,1,128], index: 12, kind: input, shape index: {}]   ;;  %s7340_s14 = inlined_call_operand.vmem [shape: f32[2,1,32], index: 14, kind: input, shape index: {}]   ;;  %s7341_s15 = inlined_call_operand.vmem [shape: f32[32,128], index: 15, kind: input, shape index: {}]   ;;  %s7342_s17 = inlined_call_operand.vmem [shape: f32[128,128], index: 17, kind: input, shape index: {}]   ;;  %s7343_s16 = inlined_call_operand.vmem [shape: f32[1,128], index: 16, kind: input, shape index: {}]   ;;  %s7344_s18 = inlined_call_operand.vmem [shape: f32[1,128], index: 18, kind: input, shape index: {}]   ;;  %s7345_s21 = inlined_call_operand.vmem [shape: f32[16,128], index: 21, kind: output, shape index: {}]  }
   0x1   :  { %7402 = sst [smem:[#allocation46_spill]] %s7324_s2  ;;  %vm5811_vm2 = vmpackc.low %vm215_vm1, %vm215_vm1 }
   0x2   :  { %7403 = sst [smem:[#allocation47_spill]] %s7325_s0  ;;  %s7408_s26 = sld [smem:[#allocation46_spill]] }
   0x3   :  { %7404 = sst [smem:[#allocation48_spill]] %s7326_s3  ;;  %s7409_s3 = sld [smem:[#allocation47_spill]] }
   0x4   :  { %7405 = sst [smem:[#allocation49_spill]] %s7327_s1  ;;  %s7410_s0 = sld [smem:[#allocation48_spill]] }
   0x5   :  { %7406 = sst [smem:[#allocation50_spill]] %s7328_s6  ;;  %s7411_s27 = sld [smem:[#allocation49_spill]] }
   0x6   :  { %7407 = sst [smem:[#allocation51_spill]] %s7329_s19  ;;  %s7412_s24 = sld [smem:[#allocation50_spill]] }
   0x7   :  { %s7413_s6 = sld [smem:[#allocation51_spill]]  ;;  %s5208_s19 = smov 96  }
   0x8   :  { %v74_v0 = vld [vmem:[%s7408_s26] sm:$0xff]  ;;  %v75_v1 = vld [vmem:[%s7408_s26 + $0x8] sm:$0xff]  ;;  %v76_v2 = vld [vmem:[%s7408_s26 + $0x10] sm:$0xff] }
   0x9   :  { %v4368_v3 = vpack.c.bf16 %v75_v1, %v74_v0  ;;  %v77_v4 = vld [vmem:[%s7408_s26 + $0x18] sm:$0xff]  ;;  %v78_v6 = vld [vmem:[%s7408_s26 + $0x20] sm:$0xff]  ;;  %v79_v7 = vld [vmem:[%s7408_s26 + $0x28] sm:$0xff] }
   0xa   :  { %v4372_v5 = vpack.c.bf16 %v77_v4, %v76_v2  ;;  %v68_v8 = vld [vmem:[%s7409_s3] sm:$0xff]  ;;  %v4376_v9 = vpack.c.bf16 %v79_v7, %v78_v6  ;;  %v69_v10 = vld [vmem:[%s7409_s3 + $0x8] sm:$0xff]  ;;  %v70_v11 = vld [vmem:[%s7409_s3 + $0x10] sm:$0xff] }
   0xb   :  { %4369 = vmatprep.subr.bf16.mxu0 %v4368_v3  ;;  %4129 = vmatprep.mubr.msk.f32.mxu0 %vm87_vm0, %v68_v8  ;;  %v71_v12 = vld [vmem:[%s7409_s3 + $0x18] sm:$0xff]  ;;  %v72_v13 = vld [vmem:[%s7409_s3 + $0x20] sm:$0xff]  ;;  %v73_v14 = vld [vmem:[%s7409_s3 + $0x28] sm:$0xff] }
   0xc   :  { %4371 = vmatpush3.bf16.msra.mxu0 %v4368_v3  ;;  %v3797_v15 = vld [vmem:[%s7410_s0] ss:$0 sm:$0xff]  ;;  %v202_v21 = vld [vmem:[%s7411_s27 + $0x8] sm:$0xff]  ;;  %v204_v25 = vld [vmem:[%s7411_s27 + $0x18] sm:$0xff] }
   0xd   :  { %4373 = vmatprep.subr.bf16.mxu0 %v4372_v5  ;;  %v201_v18 = vld [vmem:[%s7411_s27] sm:$0xff]  ;;  %v203_v27 = vld [vmem:[%s7411_s27 + $0x10] sm:$0xff]  ;;  %v206_v35 = vld [vmem:[%s7411_s27 + $0x28] sm:$0xff] }
   0xe   :  { %v205_v37 = vld [vmem:[%s7411_s27 + $0x20] sm:$0xff] }
  0x10   :  { %4375 = vmatpush3.bf16.msra.mxu0 %v4372_v5 }
  0x11   :  { %4377 = vmatprep.subr.bf16.mxu0 %v4376_v9 }
  0x14   :  { %4379 = vmatpush3.bf16.msra.mxu0 %v4376_v9 }
  0x17   :  { %4130 = vmatmul.mubr.msk.f32.vlgmr.msra.gmra.mrb[0].mxu0 %vm87_vm0, %v69_v10 }
  0x18   :  { %4132 = vmatprep.mubr.msk.f32.mxu0 %vm87_vm0, %v70_v11 }
  0x1b   :  { %4133 = vmatmul.mubr.msk.f32.gmra.mrb[2].mxu0 %vm87_vm0, %v71_v12  ;;  %v319_v12 = vld [vmem:[%s7412_s24] sm:$0xff] }
  0x1c   :  { %4135 = vmatprep.mubr.msk.f32.mxu0 %vm87_vm0, %v72_v13  ;;  %v320_v13 = vld [vmem:[%s7412_s24 + $0x8] sm:$0xff] }
  0x1f   :  { %4136 = vmatmul.mubr.msk.f32.gmra.mrb[4].mxu0 %vm87_vm0, %v73_v14  ;;  %v4380_v14 = vpack.c.bf16 %v320_v13, %v319_v12 }
  0x21   :  { %4381 = vmatprep.subr.bf16.mxu1 %v4380_v14 }
  0x22   :  { %4383 = vmatpush3.bf16.msra.mxu1 %v4380_v14 }
  0xea   :  { %v4131_v16 = vpop.f32.mrb[0].mxu0 }
  0xeb   :  { %v172_v17 = vpop.f32.mrb[1].mxu0  ;;  %v178_v19 = vadd.f32 %v4131_v16, %v3797_v15  ;;  %v322_v16 = vld [vmem:[%s7412_s24 + $0x18] sm:$0xff] }
  0xec   :  { %v173_v20 = vadd.f32 %v3797_v15, %v172_v17 }
  0xed   :  { %v5381_v28 = vadd.f32 %v202_v21, %v178_v19  ;;  %v5467_v19 = vld [vmem:[%s7413_s6] sm:$0xff] }
  0xee   :  { %v5373_v22 = vadd.f32 %v201_v18, %v173_v20  ;;  %v4134_v23 = vpop.f32.mrb[2].mxu0  ;;  %v5460_v18 = vld [vmem:[%s7413_s6 + $0x8] sm:$0xff]  ;;  %v5472_v20 = vld [vmem:[%s7413_s6 + $0x10] sm:$0xff]  ;;  %v5479_v21 = vld [vmem:[%s7413_s6 + $0x20] sm:$0xff] }
  0xef   :  { %v188_v24 = vadd.f32 %v4134_v23, %v3797_v15  ;;  %v182_v26 = vpop.f32.mrb[3].mxu0  ;;  %v219_v40 = vsel %vm215_vm1, %v5381_v28, 0.0  ;;  %v5486_v23 = vld [vmem:[%s7413_s6 + $0x18] sm:$0xff] }
  0xf0   :  { %v183_v29 = vadd.f32 %v3797_v15, %v182_v26  ;;  %v216_v30 = vsel %vm215_vm1, %v5373_v22, 0.0  ;;  %v5507_v26 = vld [vmem:[%s7413_s6 + $0x40] sm:$0xff] }
  0xf1   :  { %217 = vadd.xlane.f32.xlu0 %v216_v30  ;;  %v5385_v31 = vadd.f32 %v204_v25, %v188_v24  ;;  %v5493_v24 = vld [vmem:[%s7413_s6 + $0x30] sm:$0xff]  ;;  %v5500_v25 = vld [vmem:[%s7413_s6 + $0x28] sm:$0xff] }
  0xf2   :  { %v5387_v32 = vadd.f32 %v203_v27, %v183_v29  ;;  %v4137_v33 = vpop.f32.mrb[4].mxu0  ;;  %v5514_v27 = vld [vmem:[%s7413_s6 + $0x38] sm:$0xff]  ;;  %v5521_v29 = vld [vmem:[%s7413_s6 + $0x50] sm:$0xff]  ;;  %v5528_v30 = vld [vmem:[%s7413_s6 + $0x48] sm:$0xff] }
  0xf3   :  { %v198_v34 = vadd.f32 %v4137_v33, %v3797_v15  ;;  %v192_v36 = vpop.f32.mrb[5].mxu0  ;;  %v225_v43 = vsel %vm215_vm1, %v5385_v31, 0.0  ;;  %v5535_v33 = vld [vmem:[%s7413_s6 + $0x60] sm:$0xff] }
  0xf4   :  { %v193_v38 = vadd.f32 %v3797_v15, %v192_v36  ;;  %v222_v39 = vsel %vm215_vm1, %v5387_v32, 0.0  ;;  %v321_v15 = vld [vmem:[%s7412_s24 + $0x10] sm:$0xff]  ;;  %v5556_v36 = vld [vmem:[%s7413_s6 + $0x68] sm:$0xff] }
  0xf5   :  { %223 = vadd.xlane.f32.xlu1 %v222_v39  ;;  %220 = vadd.xlane.f32.xlu0 %v219_v40  ;;  %v5399_v41 = vadd.f32 %v206_v35, %v198_v34  ;;  %v4384_v17 = vpack.c.bf16 %v322_v16, %v321_v15  ;;  %v5542_v34 = vld [vmem:[%s7413_s6 + $0x58] sm:$0xff]  ;;  %v5549_v35 = vld [vmem:[%s7413_s6 + $0x70] sm:$0xff] }
  0xf6   :  { %v5401_v42 = vadd.f32 %v205_v37, %v193_v38  ;;  %v5565_v37 = vld [vmem:[%s7413_s6 + $0x78] sm:$0xff]  ;;  %v5572_v38 = vld [vmem:[%s7413_s6 + $0x80] sm:$0xff] }
  0xf7   :  { %v231_v45 = vsel %vm215_vm1, %v5399_v41, 0.0  ;;  %4385 = vmatprep.subr.bf16.mxu1 %v4384_v17 }
  0xf8   :  { %v228_v44 = vsel %vm215_vm1, %v5401_v42, 0.0  ;;  %4387 = vmatpush3.bf16.msra.mxu1 %v4384_v17 }
  0xf9   :  { %226 = vadd.xlane.f32.xlu1 %v225_v43  ;;  %229 = vadd.xlane.f32.xlu0 %v228_v44 }
  0xfd   :  { %232 = vadd.xlane.f32.xlu1 %v231_v45 }
 0x17e   :  { %v218_v46 = vpop.xlane.xlu0 %217 }
 0x17f   :  { %v235_v47 = vmul.f32 0.03125, %v218_v46 }
 0x181   :  { %v5410_v48 = vsub.f32 %v5373_v22, %v235_v47 }
 0x182   :  { %v224_v49 = vpop.xlane.xlu1 %223  ;;  %v221_v50 = vpop.xlane.xlu0 %220 }
 0x183   :  { %v237_v51 = vmul.f32 0.03125, %v224_v49  ;;  %v236_v52 = vmul.f32 0.03125, %v221_v50  ;;  %v247_v53 = vmul.f32 %v5410_v48, %v5410_v48 }
 0x185   :  { %v5415_v54 = vsub.f32 %v5387_v32, %v237_v51  ;;  %v5418_v55 = vsub.f32 %v5381_v28, %v236_v52  ;;  %v253_v56 = vsel %vm215_vm1, %v247_v53, 0.0 }
 0x186   :  { %v227_v57 = vpop.xlane.xlu1 %226  ;;  %254 = vadd.xlane.f32.xlu0 %v253_v56  ;;  %v230_v58 = vpop.xlane.xlu0 %229 }
 0x187   :  { %v238_v59 = vmul.f32 0.03125, %v227_v57  ;;  %v239_v60 = vmul.f32 0.03125, %v230_v58  ;;  %v249_v61 = vmul.f32 %v5415_v54, %v5415_v54  ;;  %v248_v62 = vmul.f32 %v5418_v55, %v5418_v55 }
 0x189   :  { %v5426_v63 = vsub.f32 %v5385_v31, %v238_v59  ;;  %v5429_v0 = vsub.f32 %v5401_v42, %v239_v60  ;;  %v259_v1 = vsel %vm215_vm1, %v249_v61, 0.0  ;;  %v256_v2 = vsel %vm215_vm1, %v248_v62, 0.0 }
 0x18a   :  { %v233_v3 = vpop.xlane.xlu1 %232  ;;  %260 = vadd.xlane.f32.xlu0 %v259_v1  ;;  %257 = vadd.xlane.f32.xlu1 %v256_v2  ;;  %v3804_v1 = vld [vmem:[%s7330_s4] ss:$0 sm:$0xff] }
 0x18b   :  { %v240_v4 = vmul.f32 0.03125, %v233_v3  ;;  %v250_v5 = vmul.f32 %v5426_v63, %v5426_v63  ;;  %v251_v6 = vmul.f32 %v5429_v0, %v5429_v0  ;;  %v3805_v3 = vld [vmem:[%s7331_s5] ss:$0 sm:$0xff] }
 0x18d   :  { %v5438_v7 = vsub.f32 %v5399_v41, %v240_v4  ;;  %v262_v8 = vsel %vm215_vm1, %v250_v5, 0.0  ;;  %v265_v9 = vsel %vm215_vm1, %v251_v6, 0.0 }
 0x18e   :  { %263 = vadd.xlane.f32.xlu1 %v262_v8  ;;  %266 = vadd.xlane.f32.xlu0 %v265_v9 }
 0x18f   :  { %v252_v10 = vmul.f32 %v5438_v7, %v5438_v7 }
 0x191   :  { %v268_v11 = vsel %vm215_vm1, %v252_v10, 0.0 }
 0x192   :  { %269 = vadd.xlane.f32.xlu1 %v268_v11 }
 0x1a3   :  { %486 = vrot.lane.b32.xlu1 %v5460_v18, %s5206_s30 }
 0x1a4   :  { %484 = vrot.lane.b32.xlu0 %v5467_v19, %s5206_s30 }
 0x1a7   :  { %488 = vrot.lane.b32.xlu1 %v5472_v20, %s5206_s30 }
 0x1a8   :  { %492 = vrot.lane.b32.xlu0 %v5479_v21, %s5206_s30 }
 0x1ab   :  { %490 = vrot.lane.b32.xlu1 %v5486_v23, %s5206_s30 }
 0x1ac   :  { %496 = vrot.lane.b32.xlu0 %v5493_v24, %s5206_s30 }
 0x1af   :  { %494 = vrot.lane.b32.xlu1 %v5500_v25, %s5206_s30 }
 0x1b0   :  { %500 = vrot.lane.b32.xlu0 %v5507_v26, %s5206_s30 }
 0x1b3   :  { %498 = vrot.lane.b32.xlu1 %v5514_v27, %s5206_s30 }
 0x1b4   :  { %504 = vrot.lane.b32.xlu0 %v5521_v29, %s5206_s30 }
 0x1b7   :  { %502 = vrot.lane.b32.xlu1 %v5528_v30, %s5206_s30 }
 0x1b8   :  { %508 = vrot.lane.b32.xlu0 %v5535_v33, %s5206_s30 }
 0x1bb   :  { %506 = vrot.lane.b32.xlu1 %v5542_v34, %s5206_s30 }
 0x1bc   :  { %512 = vrot.lane.b32.xlu0 %v5549_v35, %s5206_s30 }
 0x1bf   :  { %510 = vrot.lane.b32.xlu1 %v5556_v36, %s5206_s30 }
 0x1c3   :  { %514 = vrot.lane.b32.xlu1 %v5565_v37, %s5206_s30 }
 0x1c7   :  { %516 = vrot.lane.b32.xlu1 %v5572_v38, %s5206_s30 }
 0x213   :  { %v255_v39 = vpop.xlane.xlu0 %254 }
 0x214   :  { %v271_v40 = vmul.f32 0.03125, %v255_v39 }
 0x216   :  { %v277_v43 = vadd.f32 1e-05, %v271_v40 }
 0x217   :  { %v258_v44 = vpop.xlane.xlu1 %257  ;;  %v261_v45 = vpop.xlane.xlu0 %260 }
 0x218   :  { %5018 = vrsqrt.f32 %v277_v43  ;;  %v272_v46 = vmul.f32 0.03125, %v258_v44  ;;  %v273_v47 = vmul.f32 0.03125, %v261_v45 }
 0x21a   :  { %v278_v49 = vadd.f32 1e-05, %v272_v46  ;;  %v279_v50 = vadd.f32 1e-05, %v273_v47 }
 0x21b   :  { %v264_v51 = vpop.xlane.xlu1 %263  ;;  %v267_v52 = vpop.xlane.xlu0 %266 }
 0x21c   :  { %5020 = vrsqrt.f32 %v278_v49  ;;  %v274_v53 = vmul.f32 0.03125, %v264_v51  ;;  %v275_v56 = vmul.f32 0.03125, %v267_v52 }
 0x21d   :  { %5022 = vrsqrt.f32 %v279_v50 }
 0x21e   :  { %v280_v57 = vadd.f32 1e-05, %v274_v53  ;;  %v281_v58 = vadd.f32 1e-05, %v275_v56 }
 0x21f   :  { %v270_v59 = vpop.xlane.xlu1 %269  ;;  %v5600_v49 = vpop.permute.xlu0 %484 }
 0x220   :  { %5024 = vrsqrt.f32 %v280_v57  ;;  %v276_v60 = vmul.f32 0.03125, %v270_v59  ;;  %7417 = vst [vmem:[#allocation5_spill] sm:$0xff] %v5600_v49  ;;  %v5620_v59 = vpack.c.bf16 %v5460_v18, %v5467_v19 }
 0x221   :  { %5026 = vrsqrt.f32 %v281_v58 }
 0x222   :  { %v5019_v61 = vpop.eup %5018  ;;  %v282_v62 = vadd.f32 1e-05, %v276_v60 }
 0x223   :  { %v289_v2 = vmul.f32 %v5019_v61, %v5410_v48  ;;  %v7351_v61 = vmov 0.0|0.0  }
 0x224   :  { %5028 = vrsqrt.f32 %v282_v62  ;;  %4388 = vmatprep.subr.bf16.mxu1 %v7351_v61  ;;  %4436 = vmatprep.subr.bf16.mxu0 %v7351_v61  ;;  %v5628_v62 = vpack.c.bf16 %v5486_v23, %v5472_v20 }
 0x225   :  { %v301_v4 = vmul.f32 %v3804_v1, %v289_v2  ;;  %4438 = vmatpush1.bf16.msra.mxu0 %v5620_v59 }
 0x226   :  { %v5021_v5 = vpop.eup %5020  ;;  %4439 = vmatprep.subr.bf16.mxu0 %v7351_v61 }
 0x227   :  { %v5023_v6 = vpop.eup %5022  ;;  %v313_v8 = vadd.f32 %v3805_v3, %v301_v4  ;;  %v290_v9 = vmul.f32 %v5021_v5, %v5418_v55 }
 0x228   :  { %v291_v10 = vmul.f32 %v5023_v6, %v5415_v54 }
 0x229   :  { %4146 = vmatprep.mubr.msk.f32.mxu1 %vm215_vm1, %v313_v8  ;;  %v302_v11 = vmul.f32 %v3804_v1, %v290_v9  ;;  %4441 = vmatpush1.bf16.msra.mxu0 %v5628_v62 }
 0x22a   :  { %v5025_v12 = vpop.eup %5024  ;;  %v303_v13 = vmul.f32 %v3804_v1, %v291_v10  ;;  %4442 = vmatprep.subr.bf16.mxu0 %v7351_v61 }
 0x22b   :  { %v5027_v14 = vpop.eup %5026  ;;  %v314_v48 = vadd.f32 %v3805_v3, %v302_v11  ;;  %v292_v15 = vmul.f32 %v5025_v12, %v5426_v63 }
 0x22c   :  { %v315_v16 = vadd.f32 %v3805_v3, %v303_v13  ;;  %v293_v17 = vmul.f32 %v5027_v14, %v5429_v0  ;;  %v5594_v0 = vpop.permute.xlu1 %486 }
 0x22d   :  { %4147 = vmatmul.mubr.msk.f32.vlgmr.msra.gmra.mrb[0].mxu1 %vm215_vm1, %v314_v48  ;;  %v304_v39 = vmul.f32 %v3804_v1, %v292_v15  ;;  %7414 = vst [vmem:[#allocation2_spill] sm:$0xff] %v5594_v0 }
 0x22e   :  { %v5029_v40 = vpop.eup %5028  ;;  %4149 = vmatprep.mubr.msk.f32.mxu1 %vm215_vm1, %v315_v16  ;;  %v305_v55 = vmul.f32 %v3804_v1, %v293_v17  ;;  %v5670_v17 = vpack.c.bf16 %v5514_v27, %v5493_v24 }
 0x22f   :  { %v316_v54 = vadd.f32 %v3805_v3, %v304_v39  ;;  %v294_v43 = vmul.f32 %v5029_v40, %v5438_v7  ;;  %v5604_v7 = vpop.permute.xlu0 %492 }
 0x230   :  { %v317_v44 = vadd.f32 %v3805_v3, %v305_v55  ;;  %v5596_v46 = vpop.permute.xlu1 %488  ;;  %7419 = vst [vmem:[#allocation7_spill] sm:$0xff] %v5604_v7 }
 0x231   :  { %4150 = vmatmul.mubr.msk.f32.gmra.mrb[2].mxu1 %vm215_vm1, %v316_v54  ;;  %v306_v45 = vmul.f32 %v3804_v1, %v294_v43  ;;  %7415 = vst [vmem:[#allocation3_spill] sm:$0xff] %v5596_v46 }
 0x232   :  { %4152 = vmatprep.mubr.msk.f32.mxu1 %vm215_vm1, %v317_v44 }
 0x233   :  { %v318_v63 = vadd.f32 %v3805_v3, %v306_v45  ;;  %v5608_v52 = vpop.permute.xlu0 %496  ;;  %v5638_v3 = vpack.c.bf16 %v5500_v25, %v5479_v21 }
 0x234   :  { %v5598_v47 = vpop.permute.xlu1 %490  ;;  %7421 = vst [vmem:[#allocation9_spill] sm:$0xff] %v5608_v52 }
 0x235   :  { %4153 = vmatmul.mubr.msk.f32.gmra.mrb[4].mxu1 %vm215_vm1, %v318_v63  ;;  %7416 = vst [vmem:[#allocation4_spill] sm:$0xff] %v5598_v47  ;;  %4444 = vmatpush1.bf16.msra.mxu0 %v5638_v3  ;;  %v5692_v63 = vld [vmem:[%s7413_s6 + $0x88] sm:$0xff] }
 0x236   :  { %4445 = vmatprep.subr.bf16.mxu0 %v7351_v61 }
 0x237   :  { %v5612_v56 = vpop.permute.xlu0 %500 }
 0x238   :  { %v5602_v50 = vpop.permute.xlu1 %494  ;;  %7423 = vst [vmem:[#allocation11_spill] sm:$0xff] %v5612_v56 }
 0x239   :  { %7418 = vst [vmem:[#allocation6_spill] sm:$0xff] %v5602_v50  ;;  %4447 = vmatpush1.bf16.msra.mxu0 %v5670_v17 }
 0x23b   :  { %v5616_v58 = vpop.permute.xlu0 %504 }
 0x23c   :  { %v5606_v51 = vpop.permute.xlu1 %498  ;;  %7425 = vst [vmem:[#allocation13_spill] sm:$0xff] %v5616_v58 }
 0x23d   :  { %7420 = vst [vmem:[#allocation8_spill] sm:$0xff] %v5606_v51 }
 0x23f   :  { %v5630_v1 = vpop.permute.xlu0 %508 }
 0x240   :  { %v5610_v53 = vpop.permute.xlu1 %502  ;;  %7427 = vst [vmem:[#allocation15_spill] sm:$0xff] %v5630_v1 }
 0x241   :  { %7422 = vst [vmem:[#allocation10_spill] sm:$0xff] %v5610_v53 }
 0x243   :  { %v5662_v13 = vpop.permute.xlu0 %512 }
 0x244   :  { %v5614_v57 = vpop.permute.xlu1 %506  ;;  %7429 = vst [vmem:[#allocation17_spill] sm:$0xff] %v5662_v13 }
 0x245   :  { %7424 = vst [vmem:[#allocation12_spill] sm:$0xff] %v5614_v57 }
 0x248   :  { %v5622_v60 = vpop.permute.xlu1 %510 }
 0x249   :  { %7426 = vst [vmem:[#allocation14_spill] sm:$0xff] %v5622_v60 }
 0x24c   :  { %v5655_v10 = vpop.permute.xlu1 %514 }
 0x24d   :  { %7428 = vst [vmem:[#allocation16_spill] sm:$0xff] %v5655_v10 }
 0x300   :  { %v5634_v2 = vpop.f32.mrb[0].mxu1 }
 0x301   :  { %v5640_v4 = vpop.f32.mrb[1].mxu1  ;;  %v557_v5 = vmul.f32 %v5634_v2, %v5594_v0  ;;  %v563_v6 = vmul.f32 %v5634_v2, %v5606_v51  ;;  %v5648_v8 = vmul.f32 %v5634_v2, %v5622_v60 }
 0x302   :  { %v5653_v9 = vmul.f32 %v5630_v1, %v5640_v4  ;;  %v556_v11 = vmul.f32 %v5600_v49, %v5640_v4  ;;  %v562_v12 = vmul.f32 %v5608_v52, %v5640_v4 }
 0x304   :  { %v5664_v14 = vpop.f32.mrb[2].mxu1  ;;  %v4778_v48 = vpack.i.bf16 %v557_v5, %v556_v11  ;;  %v4793_v15 = vpack.i.bf16 %v563_v6, %v562_v12  ;;  %v4808_v16 = vpack.i.bf16 %v5648_v8, %v5653_v9  ;;  %v5698_v11 = vpack.c.bf16 %v5528_v30, %v5507_v26 }
 0x305   :  { %v5672_v39 = vpop.f32.mrb[3].mxu1  ;;  %v559_v40 = vmul.f32 %v5664_v14, %v5598_v47  ;;  %v565_v55 = vmul.f32 %v5664_v14, %v5610_v53  ;;  %v571_v54 = vmul.f32 %v5664_v14, %v5655_v10 }
 0x306   :  { %v570_v43 = vmul.f32 %v5662_v13, %v5672_v39  ;;  %4779 = vrot.lane.b32.xlu0 %v4778_v48, %s5208_s19  ;;  %v558_v44 = vmul.f32 %v5596_v46, %v5672_v39  ;;  %v564_v45 = vmul.f32 %v5612_v56, %v5672_v39 }
 0x308   :  { %v5694_v5 = vpop.f32.mrb[4].mxu1  ;;  %v4783_v6 = vpack.i.bf16 %v559_v40, %v558_v44  ;;  %v4798_v8 = vpack.i.bf16 %v565_v55, %v564_v45  ;;  %v4813_v9 = vpack.i.bf16 %v571_v54, %v570_v43  ;;  %v5717_v54 = vld [vmem:[%s7413_s6 + $0x98] sm:$0xff]  ;;  %v5722_v43 = vld [vmem:[%s7413_s6 + $0x90] sm:$0xff]  ;;  %v7430_v44 = vmov 0.0|0.0  }
 0x309   :  { %v5700_v12 = vpop.f32.mrb[5].mxu1  ;;  %v561_v48 = vmul.f32 %v5694_v5, %v5602_v50  ;;  %v567_v61 = vmul.f32 %v5694_v5, %v5614_v57  ;;  %4448 = vmatprep.subr.bf16.mxu0 %v7430_v44  ;;  %v5775_v57 = vpack.c.bf16 %v5692_v63, %v5572_v38 }
 0x30a   :  { %4784 = vrot.lane.b32.xlu1 %v4783_v6, %s5208_s19  ;;  %518 = vrot.lane.b32.xlu0 %v5692_v63, %s5206_s30  ;;  %v560_v40 = vmul.f32 %v5604_v7, %v5700_v12  ;;  %v566_v55 = vmul.f32 %v5616_v58, %v5700_v12  ;;  %v5727_v7 = vpack.c.bf16 %v5542_v34, %v5521_v29  ;;  %v5737_v58 = vld [vmem:[%s7413_s6 + $0xa0] sm:$0xff] }
 0x30b   :  { %4450 = vmatpush1.bf16.msra.mxu0 %v5698_v11 }
 0x30c   :  { %v4788_v45 = vpack.i.bf16 %v561_v48, %v560_v40  ;;  %v4803_v6 = vpack.i.bf16 %v567_v61, %v566_v55  ;;  %4451 = vmatprep.subr.bf16.mxu0 %v7430_v44  ;;  %v5742_v61 = vpack.c.bf16 %v5556_v36, %v5535_v33  ;;  %v5751_v48 = vld [vmem:[%s7413_s6 + $0xa8] sm:$0xff]  ;;  %v5756_v40 = vpack.c.bf16 %v5565_v37, %v5549_v35  ;;  %v5765_v55 = vld [vmem:[%s7413_s6 + $0xb0] sm:$0xff] }
 0x30d   :  { %v5793_v50 = vpack.c.bf16 %v5751_v48, %v5737_v58 }
 0x30e   :  { %522 = vrot.lane.b32.xlu1 %v5717_v54, %s5206_s30  ;;  %520 = vrot.lane.b32.xlu0 %v5722_v43, %s5206_s30 }
 0x30f   :  { %4453 = vmatpush1.bf16.msra.mxu0 %v5727_v7 }
 0x310   :  { %4454 = vmatprep.subr.bf16.mxu0 %v7430_v44 }
 0x312   :  { %524 = vrot.lane.b32.xlu1 %v5737_v58, %s5206_s30  ;;  %4789 = vrot.lane.b32.xlu0 %v4788_v45, %s5208_s19  ;;  %v5770_v45 = vld [vmem:[%s7413_s6 + $0xb8] sm:$0xff]  ;;  %s5209_s6 = smov 64  }
 0x313   :  { %4456 = vmatpush1.bf16.msra.mxu0 %v5742_v61  ;;  %v5801_v13 = vpack.c.bf16 %v5770_v45, %v5765_v55 }
 0x314   :  { %4457 = vmatprep.subr.bf16.mxu0 %v7430_v44 }
 0x316   :  { %526 = vrot.lane.b32.xlu0 %v5751_v48, %s5206_s30  ;;  %4794 = vrot.lane.b32.xlu1 %v4793_v15, %s5208_s19  ;;  %v5785_v15 = vpack.c.bf16 %v5717_v54, %v5722_v43 }
 0x317   :  { %4459 = vmatpush1.bf16.msra.mxu0 %v5756_v40 }
 0x318   :  { %4460 = vmatprep.subr.bf16.mxu0 %v7430_v44 }
 0x31a   :  { %528 = vrot.lane.b32.xlu0 %v5765_v55, %s5206_s30  ;;  %530 = vrot.lane.b32.xlu1 %v5770_v45, %s5206_s30 }
 0x31b   :  { %4462 = vmatpush1.bf16.msra.mxu0 %v5775_v57 }
 0x31c   :  { %4463 = vmatprep.subr.bf16.mxu0 %v7430_v44 }
 0x31e   :  { %4799 = vrot.lane.b32.xlu0 %v4798_v8, %s5208_s19  ;;  %4804 = vrot.lane.b32.xlu1 %v4803_v6, %s5208_s19  ;;  %v5807_v8 = vpop.permute.xlu1 %516 }
 0x31f   :  { %4465 = vmatpush1.bf16.msra.mxu0 %v5785_v15  ;;  %7431 = vst [vmem:[#allocation18_spill] sm:$0xff] %v5807_v8  ;;  %v572_v52 = vmul.f32 %v5807_v8, %v5700_v12 }
 0x320   :  { %4466 = vmatprep.subr.bf16.mxu0 %v7430_v44 }
 0x322   :  { %4809 = vrot.lane.b32.xlu0 %v4808_v16, %s5208_s19  ;;  %4814 = vrot.lane.b32.xlu1 %v4813_v9, %s5208_s19  ;;  %v7432_v9 = vmov 0 }
 0x323   :  { %4468 = vmatpush1.bf16.msra.mxu0 %v5793_v50  ;;  %v7433_v9 = vsel %vm5811_vm2, 4294967295, %v7432_v9 }
 0x324   :  { %4469 = vmatprep.subr.bf16.mxu0 %v7430_v44  ;;  %7434 = vst [vmem:[#allocation19_spill] sm:$0xff] %v7433_v9 }
 0x327   :  { %4471 = vmatpush1.bf16.msra.mxu0 %v5801_v13 }
 0x328   :  { %4472 = vmatprep.subr.bf16.mxu0 %v7430_v44 }
 0x378   :  { %v4780_v6 = vpop.permute.xlu0 %4779 }
 0x379   :  { %v4782_v16 = vunpack.i.h.bf16 %v4780_v6  ;;  %v4781_v46 = vunpack.i.l.bf16 %v4780_v6 }
 0x37b   :  { %v4389_v56 = vpack.c.bf16 %v4782_v16, %v4781_v46 }
 0x37c   :  { %v4785_v10 = vpop.permute.xlu1 %4784  ;;  %v5815_v47 = vpop.permute.xlu0 %518 }
 0x37d   :  { %7435 = vst [vmem:[#allocation20_spill] sm:$0xff] %v5815_v47  ;;  %v573_v53 = vmul.f32 %v5694_v5, %v5815_v47  ;;  %4391 = vmatpush1.bf16.xpose.msk.msra.mxu1 %vm5811_vm2, %v4389_v56  ;;  %v4787_v6 = vunpack.i.h.bf16 %v4785_v10  ;;  %v4786_v1 = vunpack.i.l.bf16 %v4785_v10 }
 0x37e   :  { %4392 = vmatprep.subr.bf16.mxu1 %v7430_v44 }
 0x37f   :  { %v4818_v49 = vpack.i.bf16 %v573_v53, %v572_v52  ;;  %v4393_v56 = vpack.c.bf16 %v4787_v6, %v4786_v1 }
 0x380   :  { %v5824_v51 = vpop.permute.xlu1 %522  ;;  %v5826_v46 = vpop.permute.xlu0 %520 }
 0x381   :  { %7436 = vst [vmem:[#allocation21_spill] sm:$0xff] %v5824_v51  ;;  %v575_v16 = vmul.f32 %v5634_v2, %v5824_v51  ;;  %v574_v47 = vmul.f32 %v5826_v46, %v5640_v4  ;;  %4819 = vrot.lane.b32.xlu0 %v4818_v49, %s5208_s19 }
 0x383   :  { %v4823_v60 = vpack.i.bf16 %v575_v16, %v574_v47 }
 0x384   :  { %v5833_v8 = vpop.permute.xlu1 %524  ;;  %v4790_v0 = vpop.permute.xlu0 %4789 }
 0x385   :  { %7437 = vst [vmem:[#allocation22_spill] sm:$0xff] %v5833_v8  ;;  %4824 = vrot.lane.b32.xlu1 %v4823_v60, %s5208_s19  ;;  %4395 = vmatpush1.bf16.xpose.msk.msra.mxu1 %vm5811_vm2, %v4393_v56  ;;  %v4792_v52 = vunpack.i.h.bf16 %v4790_v0  ;;  %v4791_v53 = vunpack.i.l.bf16 %v4790_v0  ;;  %v576_v49 = vmul.f32 %v5833_v8, %v5672_v39 }
 0x386   :  { %4396 = vmatprep.subr.bf16.mxu1 %v7430_v44 }
 0x387   :  { %v4397_v1 = vpack.c.bf16 %v4792_v52, %v4791_v53 }
 0x388   :  { %v4795_v10 = vpop.permute.xlu1 %4794  ;;  %v5839_v51 = vpop.permute.xlu0 %526 }
 0x389   :  { %7438 = vst [vmem:[#allocation23_spill] sm:$0xff] %v5839_v51  ;;  %v577_v47 = vmul.f32 %v5664_v14, %v5839_v51  ;;  %v4797_v52 = vunpack.i.h.bf16 %v4795_v10  ;;  %v4796_v53 = vunpack.i.l.bf16 %v4795_v10 }
 0x38b   :  { %v4828_v6 = vpack.i.bf16 %v577_v47, %v576_v49  ;;  %v4401_v49 = vpack.c.bf16 %v4797_v52, %v4796_v53 }
 0x38c   :  { %v5845_v16 = vpop.permute.xlu1 %530  ;;  %v5847_v60 = vpop.permute.xlu0 %528 }
 0x38d   :  { %7439 = vst [vmem:[#allocation24_spill] sm:$0xff] %v5845_v16  ;;  %7440 = vst [vmem:[#allocation25_spill] sm:$0xff] %v5847_v60  ;;  %v579_v56 = vmul.f32 %v5694_v5, %v5845_v16  ;;  %v578_v0 = vmul.f32 %v5847_v60, %v5700_v12  ;;  %4829 = vrot.lane.b32.xlu0 %v4828_v6, %s5208_s19  ;;  %4399 = vmatpush1.bf16.xpose.msk.msra.mxu1 %vm5811_vm2, %v4397_v1  ;;  %v7373_v1 = vmov 0.0  }
 0x38e   :  { %4400 = vmatprep.subr.bf16.mxu1 %v7430_v44  ;;  %878 = vmatprep.mubr.f32.mxu1 %v7373_v1 }
 0x38f   :  { %v4833_v8 = vpack.i.bf16 %v579_v56, %v578_v0 }
 0x390   :  { %v4800_v47 = vpop.permute.xlu0 %4799 }
 0x391   :  { %580 = vrot.lane.b32.xlu0 %v5467_v19, %s5209_s6  ;;  %4834 = vrot.lane.b32.xlu1 %v4833_v8, %s5208_s19  ;;  %v4802_v10 = vunpack.i.h.bf16 %v4800_v47  ;;  %v4801_v19 = vunpack.i.l.bf16 %v4800_v47  ;;  %v4805_v8 = vpop.permute.xlu1 %4804 }
 0x392   :  { %v4806_v6 = vunpack.i.l.bf16 %v4805_v8 }
 0x395   :  { %584 = vrot.lane.b32.xlu0 %v5472_v20, %s5209_s6  ;;  %582 = vrot.lane.b32.xlu1 %v5460_v18, %s5209_s6  ;;  %v4405_v20 = vpack.c.bf16 %v4802_v10, %v4801_v19  ;;  %v4807_v18 = vunpack.i.h.bf16 %v4805_v8 }
 0x396   :  { %4403 = vmatpush1.bf16.xpose.msk.msra.mxu1 %vm5811_vm2, %v4401_v49 }
 0x397   :  { %4404 = vmatprep.subr.bf16.mxu1 %v7430_v44 }
 0x399   :  { %588 = vrot.lane.b32.xlu0 %v5479_v21, %s5209_s6  ;;  %586 = vrot.lane.b32.xlu1 %v5486_v23, %s5209_s6  ;;  %v4409_v21 = vpack.c.bf16 %v4807_v18, %v4806_v6  ;;  %v4810_v23 = vpop.permute.xlu0 %4809 }
 0x39d   :  { %592 = vrot.lane.b32.xlu0 %v5493_v24, %s5209_s6  ;;  %590 = vrot.lane.b32.xlu1 %v5500_v25, %s5209_s6  ;;  %v4812_v24 = vunpack.i.h.bf16 %v4810_v23  ;;  %v4811_v25 = vunpack.i.l.bf16 %v4810_v23 }
 0x39e   :  { %4407 = vmatpush1.bf16.xpose.msk.msra.mxu1 %vm5811_vm2, %v4405_v20 }
 0x39f   :  { %4408 = vmatprep.subr.bf16.mxu1 %v7430_v44 }
 0x3a1   :  { %596 = vrot.lane.b32.xlu0 %v5507_v26, %s5209_s6  ;;  %594 = vrot.lane.b32.xlu1 %v5514_v27, %s5209_s6  ;;  %v4413_v26 = vpack.c.bf16 %v4812_v24, %v4811_v25  ;;  %v4815_v27 = vpop.permute.xlu1 %4814 }
 0x3a5   :  { %600 = vrot.lane.b32.xlu0 %v5521_v29, %s5209_s6  ;;  %598 = vrot.lane.b32.xlu1 %v5528_v30, %s5209_s6  ;;  %v4817_v29 = vunpack.i.h.bf16 %v4815_v27  ;;  %v4816_v30 = vunpack.i.l.bf16 %v4815_v27 }
 0x3a6   :  { %4411 = vmatpush1.bf16.xpose.msk.msra.mxu1 %vm5811_vm2, %v4409_v21 }
 0x3a7   :  { %4412 = vmatprep.subr.bf16.mxu1 %v7430_v44 }
 0x3a9   :  { %604 = vrot.lane.b32.xlu0 %v5535_v33, %s5209_s6  ;;  %602 = vrot.lane.b32.xlu1 %v5542_v34, %s5209_s6  ;;  %v4417_v33 = vpack.c.bf16 %v4817_v29, %v4816_v30 }
 0x3ad   :  { %608 = vrot.lane.b32.xlu0 %v5549_v35, %s5209_s6  ;;  %606 = vrot.lane.b32.xlu1 %v5556_v36, %s5209_s6 }
 0x3ae   :  { %4415 = vmatpush1.bf16.xpose.msk.msra.mxu1 %vm5811_vm2, %v4413_v26 }
 0x3af   :  { %4416 = vmatprep.subr.bf16.mxu1 %v7430_v44 }
 0x3b1   :  { %612 = vrot.lane.b32.xlu0 %v5572_v38, %s5209_s6  ;;  %610 = vrot.lane.b32.xlu1 %v5565_v37, %s5209_s6 }
 0x3b5   :  { %614 = vrot.lane.b32.xlu1 %v5692_v63, %s5209_s6 }
 0x3b6   :  { %4419 = vmatpush1.bf16.xpose.msk.msra.mxu1 %vm5811_vm2, %v4417_v33 }
 0x3b7   :  { %4420 = vmatprep.subr.bf16.mxu1 %v7430_v44 }
 0x3b9   :  { %616 = vrot.lane.b32.xlu1 %v5722_v43, %s5209_s6 }
 0x3bd   :  { %618 = vrot.lane.b32.xlu1 %v5717_v54, %s5209_s6 }
 0x3c1   :  { %620 = vrot.lane.b32.xlu1 %v5737_v58, %s5209_s6 }
 0x3c5   :  { %622 = vrot.lane.b32.xlu1 %v5751_v48, %s5209_s6 }
 0x3c9   :  { %624 = vrot.lane.b32.xlu1 %v5765_v55, %s5209_s6 }
 0x3cd   :  { %626 = vrot.lane.b32.xlu1 %v5770_v45, %s5209_s6 }
 0x3f3   :  { %v4820_v34 = vpop.permute.xlu0 %4819 }
 0x3f4   :  { %v4822_v35 = vunpack.i.h.bf16 %v4820_v34  ;;  %v4821_v36 = vunpack.i.l.bf16 %v4820_v34 }
 0x3f6   :  { %v4421_v37 = vpack.c.bf16 %v4822_v35, %v4821_v36 }
 0x3f7   :  { %v4825_v38 = vpop.permute.xlu1 %4824 }
 0x3f8   :  { %4423 = vmatpush1.bf16.xpose.msk.msra.mxu1 %vm5811_vm2, %v4421_v37  ;;  %v4827_v58 = vunpack.i.h.bf16 %v4825_v38  ;;  %v4826_v63 = vunpack.i.l.bf16 %v4825_v38 }
 0x3f9   :  { %4424 = vmatprep.subr.bf16.mxu1 %v7430_v44 }
 0x3fa   :  { %v4425_v54 = vpack.c.bf16 %v4827_v58, %v4826_v63 }
 0x3ff   :  { %v4830_v43 = vpop.permute.xlu0 %4829 }
 0x400   :  { %4427 = vmatpush1.bf16.xpose.msk.msra.mxu1 %vm5811_vm2, %v4425_v54  ;;  %v4832_v48 = vunpack.i.h.bf16 %v4830_v43  ;;  %v4831_v55 = vunpack.i.l.bf16 %v4830_v43 }
 0x401   :  { %4428 = vmatprep.subr.bf16.mxu1 %v7430_v44 }
 0x402   :  { %v4429_v0 = vpack.c.bf16 %v4832_v48, %v4831_v55 }
 0x403   :  { %v4835_v45 = vpop.permute.xlu1 %4834  ;;  %v5928_v56 = vpop.permute.xlu0 %580 }
 0x404   :  { %v652_v49 = vmul.f32 %v5928_v56, %v5640_v4  ;;  %v4837_v10 = vunpack.i.h.bf16 %v4835_v45  ;;  %v4836_v19 = vunpack.i.l.bf16 %v4835_v45 }
 0x406   :  { %v4433_v23 = vpack.c.bf16 %v4837_v10, %v4836_v19 }
 0x407   :  { %v5930_v52 = vpop.permute.xlu1 %582  ;;  %v5932_v53 = vpop.permute.xlu0 %584 }
 0x408   :  { %7441 = vst [vmem:[#allocation26_spill] sm:$0xff] %v5932_v53  ;;  %v653_v47 = vmul.f32 %v5634_v2, %v5930_v52  ;;  %4431 = vmatpush1.bf16.xpose.msk.msra.mxu1 %vm5811_vm2, %v4429_v0  ;;  %v654_v6 = vmul.f32 %v5932_v53, %v5672_v39 }
 0x409   :  { %4432 = vmatprep.subr.bf16.mxu1 %v7430_v44 }
 0x40a   :  { %v4838_v20 = vpack.i.bf16 %v653_v47, %v652_v49 }
 0x40b   :  { %v5941_v8 = vpop.permute.xlu1 %586  ;;  %v5943_v18 = vpop.permute.xlu0 %588 }
 0x40c   :  { %7442 = vst [vmem:[#allocation27_spill] sm:$0xff] %v5941_v8  ;;  %7443 = vst [vmem:[#allocation28_spill] sm:$0xff] %v5943_v18  ;;  %v655_v21 = vmul.f32 %v5664_v14, %v5941_v8  ;;  %4839 = vrot.lane.b32.xlu0 %v4838_v20, %s5209_s6  ;;  %v656_v27 = vmul.f32 %v5943_v18, %v5700_v12 }
 0x40e   :  { %v4843_v24 = vpack.i.bf16 %v655_v21, %v654_v6 }
 0x40f   :  { %v5950_v25 = vpop.permute.xlu1 %590  ;;  %v5952_v26 = vpop.permute.xlu0 %592 }
 0x410   :  { %7444 = vst [vmem:[#allocation29_spill] sm:$0xff] %v5950_v25  ;;  %v657_v29 = vmul.f32 %v5694_v5, %v5950_v25  ;;  %4844 = vrot.lane.b32.xlu1 %v4843_v24, %s5209_s6  ;;  %4435 = vmatpush1.bf16.xpose.msk.msra.mxu1 %vm5811_vm2, %v4433_v23  ;;  %v658_v35 = vmul.f32 %v5952_v26, %v5640_v4  ;;  %v929_v25 = vld [vmem:[%s7332_s20 + $0x10] sm:$0xff] }
 0x412   :  { %v4863_v30 = vpack.i.bf16 %v657_v29, %v656_v27 }
 0x413   :  { %v5961_v33 = vpop.permute.xlu1 %594  ;;  %v5963_v34 = vpop.permute.xlu0 %596 }
 0x414   :  { %7445 = vst [vmem:[#allocation30_spill] sm:$0xff] %v5963_v34  ;;  %v659_v36 = vmul.f32 %v5634_v2, %v5961_v33  ;;  %v660_v63 = vmul.f32 %v5963_v34, %v5672_v39 }
 0x416   :  { %v4848_v37 = vpack.i.bf16 %v659_v36, %v658_v35 }
 0x417   :  { %v5969_v38 = vpop.permute.xlu1 %598  ;;  %v5971_v58 = vpop.permute.xlu0 %600  ;;  %3836 = vmatmul.mubr.msk.f32.vlgmr.msra.gmra.mrb[6].mxu1 %vm215_vm1, %v5640_v4 }
 0x418   :  { %7446 = vst [vmem:[#allocation31_spill] sm:$0xff] %v5969_v38  ;;  %7447 = vst [vmem:[#allocation32_spill] sm:$0xff] %v5971_v58  ;;  %v661_v54 = vmul.f32 %v5664_v14, %v5969_v38  ;;  %4849 = vrot.lane.b32.xlu1 %v4848_v37, %s5209_s6  ;;  %884 = vmatprep.mubr.f32.mxu1 %v7373_v1  ;;  %v662_v45 = vmul.f32 %v5971_v58, %v5700_v12 }
 0x41a   :  { %v4853_v43 = vpack.i.bf16 %v661_v54, %v660_v63 }
 0x41b   :  { %v5981_v48 = vpop.permute.xlu1 %602  ;;  %v5983_v55 = vpop.permute.xlu0 %604  ;;  %3837 = vmatmul.mubr.msk.f32.gmra.mrb[8].mxu1 %vm215_vm1, %v5634_v2 }
 0x41c   :  { %7448 = vst [vmem:[#allocation33_spill] sm:$0xff] %v5981_v48  ;;  %7449 = vst [vmem:[#allocation34_spill] sm:$0xff] %v5983_v55  ;;  %v663_v0 = vmul.f32 %v5694_v5, %v5981_v48  ;;  %4854 = vrot.lane.b32.xlu0 %v4853_v43, %s5209_s6  ;;  %890 = vmatprep.mubr.f32.mxu1 %v7373_v1  ;;  %v664_v19 = vmul.f32 %v5983_v55, %v5640_v4 }
 0x41e   :  { %v4868_v49 = vpack.i.bf16 %v663_v0, %v662_v45 }
 0x41f   :  { %v5993_v47 = vpop.permute.xlu1 %606  ;;  %v5995_v10 = vpop.permute.xlu0 %608  ;;  %3838 = vmatmul.mubr.msk.f32.gmra.mrb[10].mxu1 %vm215_vm1, %v5672_v39 }
 0x420   :  { %7450 = vst [vmem:[#allocation35_spill] sm:$0xff] %v5993_v47  ;;  %7451 = vst [vmem:[#allocation36_spill] sm:$0xff] %v5995_v10  ;;  %v665_v20 = vmul.f32 %v5634_v2, %v5993_v47  ;;  %896 = vmatprep.mubr.f32.mxu1 %v7373_v1  ;;  %v6010_v23 = vmul.f32 %v5995_v10, %v5672_v39  ;;  %v938_v10 = vld [vmem:[%s7332_s20 + $0x58] sm:$0xff] }
 0x422   :  { %v4858_v6 = vpack.i.bf16 %v665_v20, %v664_v19 }
 0x423   :  { %v6004_v21 = vpop.permute.xlu1 %610  ;;  %3839 = vmatmul.mubr.msk.f32.gmra.mrb[12].mxu1 %vm215_vm1, %v5664_v14  ;;  %v6018_v27 = vpop.permute.xlu0 %612 }
 0x424   :  { %7452 = vst [vmem:[#allocation37_spill] sm:$0xff] %v6004_v21  ;;  %v6014_v24 = vmul.f32 %v5664_v14, %v6004_v21  ;;  %4859 = vrot.lane.b32.xlu0 %v4858_v6, %s5209_s6  ;;  %902 = vmatprep.mubr.f32.mxu1 %v7373_v1  ;;  %7453 = vst [vmem:[#allocation38_spill] sm:$0xff] %v6018_v27  ;;  %v6028_v36 = vmul.f32 %v6018_v27, %v5700_v12 }
 0x427   :  { %v6022_v35 = vpop.permute.xlu1 %614  ;;  %3840 = vmatmul.mubr.msk.f32.gmra.mrb[14].mxu1 %vm215_vm1, %v5700_v12 }
 0x428   :  { %7454 = vst [vmem:[#allocation39_spill] sm:$0xff] %v6022_v35  ;;  %v6032_v37 = vmul.f32 %v5694_v5, %v6022_v35  ;;  %4864 = vrot.lane.b32.xlu0 %v4863_v30, %s5209_s6  ;;  %908 = vmatprep.mubr.f32.mxu1 %v7373_v1  ;;  %v927_v35 = vld [vmem:[%s7332_s20] sm:$0xff] }
 0x42b   :  { %v6038_v54 = vpop.permute.xlu1 %616  ;;  %3841 = vmatmul.mubr.msk.f32.gmra.mrb[16].mxu1 %vm215_vm1, %v5694_v5 }
 0x42c   :  { %7455 = vst [vmem:[#allocation40_spill] sm:$0xff] %v6038_v54  ;;  %4869 = vrot.lane.b32.xlu0 %v4868_v49, %s5209_s6  ;;  %v6047_v45 = vmul.f32 %v6038_v54, %v5640_v4  ;;  %v928_v4 = vld [vmem:[%s7332_s20 + $0x8] sm:$0xff] }
 0x42f   :  { %v6043_v43 = vpop.permute.xlu1 %618 }
 0x430   :  { %7456 = vst [vmem:[#allocation41_spill] sm:$0xff] %v6043_v43  ;;  %v6051_v30 = vmul.f32 %v5634_v2, %v6043_v43 }
 0x433   :  { %v6055_v19 = vpop.permute.xlu1 %620 }
 0x434   :  { %7457 = vst [vmem:[#allocation42_spill] sm:$0xff] %v6055_v19  ;;  %v6061_v49 = vmul.f32 %v6055_v19, %v5672_v39 }
 0x437   :  { %v6057_v20 = vpop.permute.xlu1 %622 }
 0x438   :  { %7458 = vst [vmem:[#allocation43_spill] sm:$0xff] %v6057_v20  ;;  %v6065_v6 = vmul.f32 %v5664_v14, %v6057_v20 }
 0x43b   :  { %v6069_v2 = vpop.permute.xlu1 %624 }
 0x43c   :  { %7459 = vst [vmem:[#allocation44_spill] sm:$0xff] %v6069_v2  ;;  %v6075_v0 = vmul.f32 %v6069_v2, %v5700_v12 }
 0x43f   :  { %v6071_v1 = vpop.permute.xlu1 %626 }
 0x440   :  { %7460 = vst [vmem:[#allocation45_spill] sm:$0xff] %v6071_v1  ;;  %v6079_v63 = vmul.f32 %v5694_v5, %v6071_v1 }
 0x4ea   :  { %v880_v14 = vpop.f32.mrb[6].mxu1 }
 0x4eb   :  { %v915_v29 = vmul.f32 0.17677669, %v880_v14  ;;  %v882_v9 = vpop.f32.mrb[7].mxu1  ;;  %v930_v14 = vld [vmem:[%s7332_s20 + $0x18] sm:$0xff] }
 0x4ec   :  { %v916_v12 = vmul.f32 0.17677669, %v882_v9 }
 0x4ed   :  { %v6091_v1 = vadd.f32 %v927_v35, %v915_v29 }
 0x4ee   :  { %v6089_v2 = vadd.f32 %v928_v4, %v916_v12  ;;  %v886_v5 = vpop.f32.mrb[8].mxu1 }
 0x4ef   :  { %v917_v27 = vmul.f32 0.17677669, %v886_v5  ;;  %v888_v39 = vpop.f32.mrb[9].mxu1 }
 0x4f0   :  { %v918_v18 = vmul.f32 0.17677669, %v888_v39  ;;  %v952_v9 = vsel %vm951_vm3, %v6089_v2, -inf }
 0x4f1   :  { %v953_v4 = vmax.f32 %v6091_v1, %v952_v9  ;;  %v6104_v35 = vadd.f32 %v929_v25, %v917_v27  ;;  %v934_v9 = vld [vmem:[%s7332_s20 + $0x38] sm:$0xff] }
 0x4f2   :  { %v6102_v12 = vadd.f32 %v930_v14, %v918_v18  ;;  %v892_v29 = vpop.f32.mrb[10].mxu1  ;;  %v933_v18 = vld [vmem:[%s7332_s20 + $0x30] sm:$0xff] }
 0x4f3   :  { %954 = vmax.xlane.f32.xlu0 %v953_v4  ;;  %v894_v5 = vpop.f32.mrb[11].mxu1 }
 0x4f4   :  { %v956_v48 = vsel %vm951_vm3, %v6102_v12, -inf }
 0x4f5   :  { %v957_v58 = vmax.f32 %v6104_v35, %v956_v48 }
 0x4f6   :  { %v898_v60 = vpop.f32.mrb[12].mxu1 }
 0x4f7   :  { %v921_v16 = vmul.f32 0.17677669, %v898_v60  ;;  %958 = vmax.xlane.f32.xlu1 %v957_v58  ;;  %v900_v39 = vpop.f32.mrb[13].mxu1 }
 0x4f8   :  { %v922_v25 = vmul.f32 0.17677669, %v900_v39  ;;  %v937_v39 = vld [vmem:[%s7332_s20 + $0x50] sm:$0xff] }
 0x4f9   :  { %v6117_v4 = vadd.f32 %v933_v18, %v921_v16 }
 0x4fa   :  { %v6115_v27 = vadd.f32 %v934_v9, %v922_v25  ;;  %v904_v14 = vpop.f32.mrb[14].mxu1 }
 0x4fb   :  { %v906_v20 = vpop.f32.mrb[15].mxu1 }
 0x4fc   :  { %v964_v60 = vsel %vm951_vm3, %v6115_v27, -inf }
 0x4fd   :  { %v965_v58 = vmax.f32 %v6117_v4, %v964_v60 }
 0x4fe   :  { %v910_v48 = vpop.f32.mrb[16].mxu1 }
 0x4ff   :  { %v925_v19 = vmul.f32 0.17677669, %v910_v48  ;;  %966 = vmax.xlane.f32.xlu1 %v965_v58  ;;  %v912_v21 = vpop.f32.mrb[17].mxu1  ;;  %v7461_v58 = vpack.i.bf16 %v6014_v24, %v6010_v23  ;;  %v7462_v48 = vpack.i.bf16 %v6032_v37, %v6028_v36  ;;  %v931_v23 = vld [vmem:[%s7332_s20 + $0x20] sm:$0xff] }
 0x500   :  { %v926_v16 = vmul.f32 0.17677669, %v912_v21  ;;  %v932_v21 = vld [vmem:[%s7332_s20 + $0x28] sm:$0xff] }
 0x501   :  { %v6130_v18 = vadd.f32 %v937_v39, %v925_v19  ;;  %v924_v39 = vmul.f32 0.17677669, %v906_v20  ;;  %v935_v20 = vld [vmem:[%s7332_s20 + $0x40] sm:$0xff] }
 0x502   :  { %v6128_v9 = vadd.f32 %v938_v10, %v926_v16  ;;  %v920_v10 = vmul.f32 0.17677669, %v894_v5  ;;  %v919_v16 = vmul.f32 0.17677669, %v892_v29  ;;  %v923_v5 = vmul.f32 0.17677669, %v904_v14 }
 0x503   :  { %v7464_v14 = vpack.i.bf16 %v6065_v6, %v6061_v49 }
 0x504   :  { %v972_v25 = vsel %vm951_vm3, %v6128_v9, -inf  ;;  %v6146_v19 = vadd.f32 %v932_v21, %v920_v10  ;;  %v6158_v37 = vadd.f32 %v931_v23, %v919_v16  ;;  %v7463_v10 = vpack.i.bf16 %v6051_v30, %v6047_v45 }
 0x505   :  { %v973_v60 = vmax.f32 %v6130_v18, %v972_v25  ;;  %v936_v25 = vld [vmem:[%s7332_s20 + $0x48] sm:$0xff]  ;;  %v7465_v21 = vpack.i.bf16 %v6079_v63, %v6075_v0 }
 0x506   :  { %v6154_v24 = vadd.f32 %v936_v25, %v924_v39  ;;  %v960_v36 = vsel %vm951_vm3, %v6146_v19, -inf  ;;  %v4840_v39 = vpop.permute.xlu0 %4839 }
 0x507   :  { %974 = vmax.xlane.f32.xlu1 %v973_v60  ;;  %v961_v29 = vmax.f32 %v6158_v37, %v960_v36  ;;  %v4845_v36 = vpop.permute.xlu1 %4844 }
 0x508   :  { %v968_v60 = vsel %vm951_vm3, %v6154_v24, -inf }
 0x509   :  { %4874 = vrot.lane.b32.xlu0 %v7461_v58, %s5209_s6  ;;  %v6166_v58 = vadd.f32 %v935_v20, %v923_v5 }
 0x50a   :  { %v4855_v16 = vpop.permute.xlu0 %4854 }
 0x50b   :  { %v4850_v20 = vpop.permute.xlu1 %4849 }
 0x50e   :  { %v6181_v25 = vpop.permute.xlu0 %4859 }
 0x512   :  { %v4865_v23 = vpop.permute.xlu0 %4864 }
 0x516   :  { %v4870_v5 = vpop.permute.xlu0 %4869 }
 0x518   :  { %4879 = vrot.lane.b32.xlu1 %v7462_v48, %s5209_s6  ;;  %v969_v48 = vmax.f32 %v6166_v58, %v968_v60 }
 0x528   :  { %962 = vmax.xlane.f32.xlu0 %v961_v29 }
 0x52c   :  { %970 = vmax.xlane.f32.xlu0 %v969_v48 }
 0x542   :  { %4884 = vrot.lane.b32.xlu0 %v7463_v10, %s5209_s6 }
 0x546   :  { %4889 = vrot.lane.b32.xlu0 %v7464_v14, %s5209_s6  ;;  %v4842_v14 = vunpack.i.h.bf16 %v4840_v39 }
 0x54a   :  { %4894 = vrot.lane.b32.xlu0 %v7465_v21, %s5209_s6  ;;  %v4841_v21 = vunpack.i.l.bf16 %v4840_v39 }
 0x580   :  { %v955_v45 = vpop.xlane.xlu0 %954 }
 0x581   :  { %v976_v30 = vsub.f32 %v6091_v1, %v955_v45  ;;  %v977_v29 = vsub.f32 %v6089_v2, %v955_v45  ;;  %v4473_v2 = vpack.c.bf16 %v4842_v14, %v4841_v21  ;;  %v4847_v45 = vunpack.i.h.bf16 %v4845_v36 }
 0x582   :  { %v4872_v14 = vunpack.i.h.bf16 %v4870_v5  ;;  %v4871_v21 = vunpack.i.l.bf16 %v4870_v5 }
 0x583   :  { %v988_v49 = vmul.f32 1.442695, %v976_v30  ;;  %v990_v6 = vmul.f32 1.442695, %v977_v29  ;;  %v4846_v30 = vunpack.i.l.bf16 %v4845_v36  ;;  %v4867_v29 = vunpack.i.h.bf16 %v4865_v23 }
 0x584   :  { %v959_v60 = vpop.xlane.xlu1 %958  ;;  %v4852_v36 = vunpack.i.h.bf16 %v4850_v20 }
 0x585   :  { %5030 = vpow2.f32 %v988_v49  ;;  %v978_v63 = vsub.f32 %v6104_v35, %v959_v60  ;;  %v979_v0 = vsub.f32 %v6102_v12, %v959_v60  ;;  %v4476_v39 = vpack.c.bf16 %v4847_v45, %v4846_v30 }
 0x586   :  { %5032 = vpow2.f32 %v990_v6  ;;  %v4866_v49 = vunpack.i.l.bf16 %v4865_v23  ;;  %v4851_v6 = vunpack.i.l.bf16 %v4850_v20  ;;  %v4862_v20 = vunpack.i.h.bf16 %v6181_v25 }
 0x587   :  { %v992_v48 = vmul.f32 1.442695, %v978_v63  ;;  %v994_v10 = vmul.f32 1.442695, %v979_v0  ;;  %v4857_v0 = vunpack.i.h.bf16 %v4855_v16  ;;  %v4861_v45 = vunpack.i.l.bf16 %v6181_v25 }
 0x588   :  { %v4479_v60 = vpack.c.bf16 %v4867_v29, %v4866_v49  ;;  %v4482_v63 = vpack.c.bf16 %v4852_v36, %v4851_v6  ;;  %v4488_v30 = vpack.c.bf16 %v4872_v14, %v4871_v21 }
 0x589   :  { %5034 = vpow2.f32 %v992_v48  ;;  %v4856_v48 = vunpack.i.l.bf16 %v4855_v16  ;;  %v4491_v16 = vpack.c.bf16 %v4862_v20, %v4861_v45 }
 0x58a   :  { %5036 = vpow2.f32 %v994_v10 }
 0x58b   :  { %v4485_v23 = vpack.c.bf16 %v4857_v0, %v4856_v48 }
 0x58c   :  { %v967_v10 = vpop.xlane.xlu1 %966 }
 0x58d   :  { %v983_v25 = vsub.f32 %v6115_v27, %v967_v10  ;;  %v982_v14 = vsub.f32 %v6117_v4, %v967_v10 }
 0x58f   :  { %v6187_v38 = vpop.eup %5030  ;;  %v1002_v45 = vmul.f32 1.442695, %v983_v25 }
 0x590   :  { %v6189_v1 = vpop.eup %5032 }
 0x591   :  { %3842 = vmatprep.mubr.msk.f32.mxu0 %vm951_vm3, %v6189_v1 }
 0x592   :  { %1095 = vmatmul.mubr.f32.vlgmr.msra.gmra.mrb[6].mxu0 %v6187_v38 }
 0x593   :  { %v6194_v35 = vpop.eup %5034  ;;  %4474 = vmatpush1.bf16.msra.mxu0 %v4473_v2 }
 0x594   :  { %v6196_v12 = vpop.eup %5036  ;;  %4475 = vmatprep.subr.bf16.mxu0 %v7430_v44  ;;  %v975_v2 = vpop.xlane.xlu1 %974 }
 0x595   :  { %3843 = vmatprep.mubr.msk.f32.mxu0 %vm951_vm3, %v6196_v12  ;;  %v987_v27 = vsub.f32 %v6128_v9, %v975_v2  ;;  %v986_v4 = vsub.f32 %v6130_v18, %v975_v2 }
 0x596   :  { %1100 = vmatmul.mubr.f32.gmra.mrb[8].mxu0 %v6194_v35 }
 0x597   :  { %4477 = vmatpush1.bf16.msra.mxu0 %v4476_v39  ;;  %v4875_v39 = vpop.permute.xlu0 %4874  ;;  %v1008_v25 = vmul.f32 1.442695, %v986_v4 }
 0x598   :  { %4478 = vmatprep.subr.bf16.mxu0 %v7430_v44  ;;  %v4877_v29 = vunpack.i.h.bf16 %v4875_v39  ;;  %v4876_v49 = vunpack.i.l.bf16 %v4875_v39  ;;  %v4880_v36 = vpop.permute.xlu1 %4879 }
 0x599   :  { %v4882_v6 = vunpack.i.h.bf16 %v4880_v36 }
 0x59a   :  { %v4494_v5 = vpack.c.bf16 %v4877_v29, %v4876_v49 }
 0x59b   :  { %4480 = vmatpush1.bf16.msra.mxu0 %v4479_v60  ;;  %v4881_v60 = vunpack.i.l.bf16 %v4880_v36 }
 0x59c   :  { %4481 = vmatprep.subr.bf16.mxu0 %v7430_v44 }
 0x59f   :  { %4483 = vmatpush1.bf16.msra.mxu0 %v4482_v63  ;;  %v4497_v63 = vpack.c.bf16 %v4882_v6, %v4881_v60  ;;  %v1010_v6 = vmul.f32 1.442695, %v987_v27 }
 0x5a0   :  { %4484 = vmatprep.subr.bf16.mxu0 %v7430_v44 }
 0x5a3   :  { %4486 = vmatpush1.bf16.msra.mxu0 %v4485_v23 }
 0x5a4   :  { %4487 = vmatprep.subr.bf16.mxu0 %v7430_v44 }
 0x5a7   :  { %4489 = vmatpush1.bf16.msra.mxu0 %v4488_v30 }
 0x5a8   :  { %4490 = vmatprep.subr.bf16.mxu0 %v7430_v44 }
 0x5ab   :  { %4492 = vmatpush1.bf16.msra.mxu0 %v4491_v16  ;;  %v1000_v16 = vmul.f32 1.442695, %v982_v14 }
 0x5ac   :  { %4493 = vmatprep.subr.bf16.mxu0 %v7430_v44 }
 0x5af   :  { %4495 = vmatpush1.bf16.msra.mxu0 %v4494_v5 }
 0x5b0   :  { %4496 = vmatprep.subr.bf16.mxu0 %v7430_v44 }
 0x5b3   :  { %4498 = vmatpush1.bf16.msra.mxu0 %v4497_v63 }
 0x5b4   :  { %4499 = vmatprep.subr.bf16.mxu0 %v7430_v44 }
 0x5b5   :  { %v963_v0 = vpop.xlane.xlu0 %962 }
 0x5b6   :  { %v980_v48 = vsub.f32 %v6158_v37, %v963_v0  ;;  %v981_v23 = vsub.f32 %v6146_v19, %v963_v0 }
 0x5b8   :  { %v996_v21 = vmul.f32 1.442695, %v980_v48  ;;  %v998_v20 = vmul.f32 1.442695, %v981_v23 }
 0x5b9   :  { %v971_v30 = vpop.xlane.xlu0 %970 }
 0x5ba   :  { %5038 = vpow2.f32 %v996_v21  ;;  %v985_v39 = vsub.f32 %v6154_v24, %v971_v30  ;;  %v984_v29 = vsub.f32 %v6166_v58, %v971_v30 }
 0x5bb   :  { %5040 = vpow2.f32 %v998_v20 }
 0x5bc   :  { %5042 = vpow2.f32 %v1002_v45  ;;  %v1006_v49 = vmul.f32 1.442695, %v985_v39  ;;  %v1004_v10 = vmul.f32 1.442695, %v984_v29 }
 0x5bd   :  { %v4885_v37 = vpop.permute.xlu0 %4884  ;;  %5044 = vpow2.f32 %v1000_v16  ;;  %v1331_v16 = vld [vmem:[%s7333_s7 + $0x18] sm:$0xff] }
 0x5be   :  { %v4887_v36 = vunpack.i.h.bf16 %v4885_v37  ;;  %v4886_v19 = vunpack.i.l.bf16 %v4885_v37  ;;  %5046 = vpow2.f32 %v1006_v49 }
 0x5bf   :  { %5048 = vpow2.f32 %v1004_v10 }
 0x5c0   :  { %v4500_v5 = vpack.c.bf16 %v4887_v36, %v4886_v19  ;;  %5050 = vpow2.f32 %v1010_v6 }
 0x5c1   :  { %v4890_v60 = vpop.permute.xlu0 %4889  ;;  %5052 = vpow2.f32 %v1008_v25 }
 0x5c2   :  { %v4892_v24 = vunpack.i.h.bf16 %v4890_v60  ;;  %v4891_v63 = vunpack.i.l.bf16 %v4890_v60  ;;  %4501 = vmatpush1.bf16.msra.mxu0 %v4500_v5 }
 0x5c3   :  { %4502 = vmatprep.subr.bf16.mxu0 %v7430_v44 }
 0x5c4   :  { %v5039_v58 = vpop.eup %5038  ;;  %v4503_v9 = vpack.c.bf16 %v4892_v24, %v4891_v63 }
 0x5c5   :  { %v5041_v0 = vpop.eup %5040  ;;  %v4895_v48 = vpop.permute.xlu0 %4894 }
 0x5c6   :  { %3844 = vmatprep.mubr.msk.f32.mxu0 %vm951_vm3, %v5041_v0  ;;  %v4897_v18 = vunpack.i.h.bf16 %v4895_v48  ;;  %v4896_v2 = vunpack.i.l.bf16 %v4895_v48  ;;  %4504 = vmatpush1.bf16.msra.mxu0 %v4503_v9  ;;  %v5043_v23 = vpop.eup %5042 }
 0x5c7   :  { %1105 = vmatmul.mubr.f32.gmra.mrb[10].mxu0 %v5039_v58  ;;  %4505 = vmatprep.subr.bf16.mxu0 %v7430_v44  ;;  %v5045_v21 = vpop.eup %5044 }
 0x5c8   :  { %v4506_v14 = vpack.c.bf16 %v4897_v18, %v4896_v2  ;;  %3845 = vmatprep.mubr.msk.f32.mxu0 %vm951_vm3, %v5043_v23  ;;  %v5047_v20 = vpop.eup %5046 }
 0x5c9   :  { %v5049_v45 = vpop.eup %5048 }
 0x5ca   :  { %4507 = vmatpush1.bf16.msra.mxu0 %v4506_v14  ;;  %v5051_v30 = vpop.eup %5050 }
 0x5cb   :  { %1110 = vmatmul.mubr.f32.gmra.mrb[12].mxu0 %v5045_v21  ;;  %v5053_v39 = vpop.eup %5052 }
 0x5cc   :  { %3846 = vmatprep.mubr.msk.f32.mxu0 %vm951_vm3, %v5047_v20 }
 0x5cf   :  { %1115 = vmatmul.mubr.f32.gmra.mrb[14].mxu0 %v5049_v45 }
 0x5d0   :  { %3847 = vmatprep.mubr.msk.f32.mxu0 %vm951_vm3, %v5051_v30 }
 0x5d3   :  { %1120 = vmatmul.mubr.f32.gmra.mrb[16].mxu0 %v5053_v39 }
 0x5d4   :  { %3848 = vmatprep.mubr.msk.f32.mxu0 %vm951_vm3, %v6189_v1  ;;  %v1329_v1 = vld [vmem:[%s7333_s7 + $0x8] sm:$0xff] }
 0x5d7   :  { %1286 = vmatmul.mubr.f32.vlgmr.msra.gmra.mrb[18].mxu0 %v6187_v38  ;;  %v1328_v38 = vld [vmem:[%s7333_s7] sm:$0xff] }
 0x5d8   :  { %3849 = vmatprep.mubr.msk.f32.mxu0 %vm951_vm3, %v6196_v12  ;;  %v1330_v12 = vld [vmem:[%s7333_s7 + $0x10] sm:$0xff] }
 0x5d9   :  { %v4512_v29 = vpack.c.bf16 %v1331_v16, %v1330_v12 }
 0x5db   :  { %1291 = vmatmul.mubr.f32.gmra.mrb[20].mxu0 %v6194_v35  ;;  %v4508_v35 = vpack.c.bf16 %v1329_v1, %v1328_v38 }
 0x5dc   :  { %3850 = vmatprep.mubr.msk.f32.mxu0 %vm951_vm3, %v5041_v0 }
 0x5dd   :  { %4509 = vmatprep.subr.bf16.mxu1 %v4508_v35 }
 0x5de   :  { %4511 = vmatpush3.bf16.msra.mxu1 %v4508_v35 }
 0x5df   :  { %1296 = vmatmul.mubr.f32.gmra.mrb[22].mxu0 %v5039_v58  ;;  %4513 = vmatprep.subr.bf16.mxu1 %v4512_v29 }
 0x5e0   :  { %3851 = vmatprep.mubr.msk.f32.mxu0 %vm951_vm3, %v5043_v23 }
 0x5e2   :  { %4515 = vmatpush3.bf16.msra.mxu1 %v4512_v29 }
 0x5e3   :  { %1301 = vmatmul.mubr.f32.gmra.mrb[24].mxu0 %v5045_v21 }
 0x5e4   :  { %3852 = vmatprep.mubr.msk.f32.mxu0 %vm951_vm3, %v5047_v20 }
 0x5e7   :  { %1306 = vmatmul.mubr.f32.gmra.mrb[26].mxu0 %v5049_v45 }
 0x5e8   :  { %3853 = vmatprep.mubr.msk.f32.mxu0 %vm951_vm3, %v5051_v30 }
 0x5eb   :  { %1311 = vmatmul.mubr.f32.gmra.mrb[28].mxu0 %v5053_v39 }
 0x665   :  { %v1096_v27 = vpop.f32.mrb[6].mxu0 }
 0x666   :  { %v1098_v49 = vpop.f32.mrb[7].mxu0  ;;  %5054 = vrcp.f32 %v1096_v27 }
 0x669   :  { %v1101_v37 = vpop.f32.mrb[8].mxu0 }
 0x66a   :  { %v1103_v36 = vpop.f32.mrb[9].mxu0  ;;  %5056 = vrcp.f32 %v1101_v37 }
 0x670   :  { %v5055_v58 = vpop.eup %5054 }
 0x674   :  { %v5057_v48 = vpop.eup %5056 }
 0x69a   :  { %v1106_v19 = vpop.f32.mrb[10].mxu0 }
 0x69b   :  { %v1108_v4 = vpop.f32.mrb[11].mxu0  ;;  %5058 = vrcp.f32 %v1106_v19 }
 0x69c   :  { %v3860_v4 = vld [vmem:[%s7334_s8] ss:$0 sm:$0xff] }
 0x69e   :  { %v1111_v10 = vpop.f32.mrb[12].mxu0 }
 0x69f   :  { %v1113_v5 = vpop.f32.mrb[13].mxu0  ;;  %5060 = vrcp.f32 %v1111_v10 }
 0x6a2   :  { %v1116_v6 = vpop.f32.mrb[14].mxu0 }
 0x6a3   :  { %v1118_v60 = vpop.f32.mrb[15].mxu0  ;;  %5062 = vrcp.f32 %v1116_v6 }
 0x6a5   :  { %v5059_v14 = vpop.eup %5058 }
 0x6a6   :  { %v1121_v24 = vpop.f32.mrb[16].mxu0 }
 0x6a7   :  { %v1123_v63 = vpop.f32.mrb[17].mxu0  ;;  %5064 = vrcp.f32 %v1121_v24 }
 0x6a9   :  { %v5061_v30 = vpop.eup %5060 }
 0x6aa   :  { %v1287_v25 = vpop.f32.mrb[18].mxu0 }
 0x6ab   :  { %v1317_v9 = vmul.f32 %v5055_v58, %v1287_v25  ;;  %v1289_v0 = vpop.f32.mrb[19].mxu0 }
 0x6ad   :  { %4163 = vmatprep.mubr.msk.f32.mxu1 %vm215_vm1, %v1317_v9  ;;  %v5063_v35 = vpop.eup %5062 }
 0x6ae   :  { %v1292_v18 = vpop.f32.mrb[20].mxu0 }
 0x6af   :  { %v1319_v2 = vmul.f32 %v5057_v48, %v1292_v18  ;;  %v1294_v23 = vpop.f32.mrb[21].mxu0 }
 0x6b1   :  { %4164 = vmatmul.mubr.msk.f32.vlgmr.msra.gmra.mrb[18].mxu1 %vm215_vm1, %v1319_v2  ;;  %v5065_v27 = vpop.eup %5064 }
 0x6b2   :  { %v1297_v21 = vpop.f32.mrb[22].mxu0 }
 0x6b3   :  { %v1321_v20 = vmul.f32 %v5059_v14, %v1297_v21  ;;  %v1299_v45 = vpop.f32.mrb[23].mxu0 }
 0x6b5   :  { %4166 = vmatprep.mubr.msk.f32.mxu1 %vm215_vm1, %v1321_v20 }
 0x6b6   :  { %v1302_v39 = vpop.f32.mrb[24].mxu0 }
 0x6b7   :  { %v1323_v38 = vmul.f32 %v5061_v30, %v1302_v39  ;;  %v1304_v1 = vpop.f32.mrb[25].mxu0 }
 0x6b9   :  { %4167 = vmatmul.mubr.msk.f32.gmra.mrb[20].mxu1 %vm215_vm1, %v1323_v38 }
 0x6ba   :  { %v1307_v12 = vpop.f32.mrb[26].mxu0 }
 0x6bb   :  { %v1325_v16 = vmul.f32 %v5063_v35, %v1307_v12  ;;  %v1309_v29 = vpop.f32.mrb[27].mxu0 }
 0x6bd   :  { %4169 = vmatprep.mubr.msk.f32.mxu1 %vm215_vm1, %v1325_v16 }
 0x6be   :  { %v1312_v49 = vpop.f32.mrb[28].mxu0 }
 0x6bf   :  { %v1327_v37 = vmul.f32 %v5065_v27, %v1312_v49  ;;  %v1314_v36 = vpop.f32.mrb[29].mxu0 }
 0x6c1   :  { %4170 = vmatmul.mubr.msk.f32.gmra.mrb[22].mxu1 %vm215_vm1, %v1327_v37 }
 0x784   :  { %v4165_v19 = vpop.f32.mrb[18].mxu1 }
 0x785   :  { %v1446_v10 = vadd.f32 %v4165_v19, %v5381_v28  ;;  %v1416_v5 = vpop.f32.mrb[19].mxu1 }
 0x786   :  { %v1445_v6 = vadd.f32 %v1416_v5, %v5373_v22 }
 0x787   :  { %v6259_v60 = vadd.f32 %v3860_v4, %v1446_v10 }
 0x788   :  { %v6261_v24 = vadd.f32 %v3860_v4, %v1445_v6 }
 0x789   :  { %v1469_v63 = vsel %vm215_vm1, %v6259_v60, 0.0 }
 0x78a   :  { %1470 = vadd.xlane.f32.xlu1 %v1469_v63  ;;  %v1466_v58 = vsel %vm215_vm1, %v6261_v24, 0.0 }
 0x78b   :  { %1467 = vadd.xlane.f32.xlu0 %v1466_v58 }
 0x78c   :  { %v4168_v25 = vpop.f32.mrb[20].mxu1 }
 0x78d   :  { %v1426_v9 = vpop.f32.mrb[21].mxu1  ;;  %v1448_v0 = vadd.f32 %v4168_v25, %v5385_v31 }
 0x78e   :  { %v1447_v28 = vadd.f32 %v1426_v9, %v5387_v32 }
 0x78f   :  { %v6271_v22 = vadd.f32 %v3860_v4, %v1448_v0 }
 0x790   :  { %v6269_v48 = vadd.f32 %v3860_v4, %v1447_v28 }
 0x791   :  { %v1475_v20 = vsel %vm215_vm1, %v6271_v22, 0.0 }
 0x792   :  { %v1472_v18 = vsel %vm215_vm1, %v6269_v48, 0.0 }
 0x793   :  { %1473 = vadd.xlane.f32.xlu0 %v1472_v18 }
 0x794   :  { %v4171_v2 = vpop.f32.mrb[22].mxu1 }
 0x795   :  { %v1450_v23 = vadd.f32 %v4171_v2, %v5399_v41  ;;  %v1436_v14 = vpop.f32.mrb[23].mxu1 }
 0x796   :  { %v1449_v21 = vadd.f32 %v1436_v14, %v5401_v42 }
 0x797   :  { %v6279_v31 = vadd.f32 %v3860_v4, %v1450_v23  ;;  %1476 = vadd.xlane.f32.xlu0 %v1475_v20 }
 0x798   :  { %v6281_v32 = vadd.f32 %v3860_v4, %v1449_v21 }
 0x799   :  { %v1481_v45 = vsel %vm215_vm1, %v6279_v31, 0.0 }
 0x79a   :  { %1482 = vadd.xlane.f32.xlu1 %v1481_v45  ;;  %v1478_v30 = vsel %vm215_vm1, %v6281_v32, 0.0  ;;  %v1568_v45 = vld [vmem:[%s7335_s11] sm:$0xff] }
 0x79b   :  { %1479 = vadd.xlane.f32.xlu0 %v1478_v30  ;;  %v1569_v30 = vld [vmem:[%s7335_s11 + $0x8] sm:$0xff] }
 0x817   :  { %v1471_v41 = vpop.xlane.xlu1 %1470 }
 0x818   :  { %v1485_v39 = vmul.f32 0.03125, %v1471_v41  ;;  %v1468_v38 = vpop.xlane.xlu0 %1467  ;;  %v4516_v41 = vpack.c.bf16 %v1569_v30, %v1568_v45 }
 0x819   :  { %v1484_v42 = vmul.f32 0.03125, %v1468_v38  ;;  %v1571_v38 = vld [vmem:[%s7335_s11 + $0x18] sm:$0xff] }
 0x81a   :  { %v1491_v1 = vsub.f32 %v6259_v60, %v1485_v39  ;;  %4517 = vmatprep.subr.bf16.mxu1 %v4516_v41  ;;  %v1570_v39 = vld [vmem:[%s7335_s11 + $0x10] sm:$0xff] }
 0x81b   :  { %v6289_v35 = vsub.f32 %v6261_v24, %v1484_v42  ;;  %4519 = vmatpush3.bf16.msra.mxu1 %v4516_v41  ;;  %v4520_v42 = vpack.c.bf16 %v1571_v38, %v1570_v39 }
 0x81c   :  { %v1497_v12 = vmul.f32 %v1491_v1, %v1491_v1 }
 0x81d   :  { %v1496_v16 = vmul.f32 %v6289_v35, %v6289_v35  ;;  %4521 = vmatprep.subr.bf16.mxu1 %v4520_v42 }
 0x81e   :  { %v1505_v29 = vsel %vm215_vm1, %v1497_v12, 0.0 }
 0x81f   :  { %1506 = vadd.xlane.f32.xlu1 %v1505_v29  ;;  %v1502_v27 = vsel %vm215_vm1, %v1496_v16, 0.0  ;;  %4523 = vmatpush3.bf16.msra.mxu1 %v4520_v42 }
 0x820   :  { %v1474_v49 = vpop.xlane.xlu0 %1473  ;;  %1503 = vadd.xlane.f32.xlu0 %v1502_v27 }
 0x821   :  { %v1486_v37 = vmul.f32 0.03125, %v1474_v49 }
 0x823   :  { %v6296_v36 = vsub.f32 %v6269_v48, %v1486_v37 }
 0x824   :  { %v1477_v19 = vpop.xlane.xlu0 %1476 }
 0x825   :  { %v1487_v4 = vmul.f32 0.03125, %v1477_v19  ;;  %v1498_v10 = vmul.f32 %v6296_v36, %v6296_v36 }
 0x827   :  { %v6301_v5 = vsub.f32 %v6271_v22, %v1487_v4  ;;  %v1483_v6 = vpop.xlane.xlu1 %1482  ;;  %v1508_v63 = vsel %vm215_vm1, %v1498_v10, 0.0 }
 0x828   :  { %v1489_v58 = vmul.f32 0.03125, %v1483_v6  ;;  %1509 = vadd.xlane.f32.xlu0 %v1508_v63  ;;  %v1480_v25 = vpop.xlane.xlu0 %1479 }
 0x829   :  { %v1488_v9 = vmul.f32 0.03125, %v1480_v25  ;;  %v1499_v0 = vmul.f32 %v6301_v5, %v6301_v5  ;;  %v3861_v25 = vld [vmem:[%s7336_s9] ss:$0 sm:$0xff] }
 0x82a   :  { %v6307_v28 = vsub.f32 %v6279_v31, %v1489_v58 }
 0x82b   :  { %v6310_v18 = vsub.f32 %v6281_v32, %v1488_v9  ;;  %v1511_v2 = vsel %vm215_vm1, %v1499_v0, 0.0 }
 0x82c   :  { %1512 = vadd.xlane.f32.xlu1 %v1511_v2  ;;  %v1501_v23 = vmul.f32 %v6307_v28, %v6307_v28 }
 0x82d   :  { %v1500_v14 = vmul.f32 %v6310_v18, %v6310_v18 }
 0x82e   :  { %v1517_v21 = vsel %vm215_vm1, %v1501_v23, 0.0 }
 0x82f   :  { %v1514_v20 = vsel %vm215_vm1, %v1500_v14, 0.0 }
 0x830   :  { %1518 = vadd.xlane.f32.xlu1 %v1517_v21  ;;  %1515 = vadd.xlane.f32.xlu0 %v1514_v20  ;;  %v3862_v20 = vld [vmem:[%s7337_s10] ss:$0 sm:$0xff] }
 0x8ac   :  { %v1507_v12 = vpop.xlane.xlu1 %1506 }
 0x8ad   :  { %v1521_v16 = vmul.f32 0.03125, %v1507_v12  ;;  %v1504_v29 = vpop.xlane.xlu0 %1503 }
 0x8ae   :  { %v1520_v27 = vmul.f32 0.03125, %v1504_v29 }
 0x8af   :  { %v1527_v49 = vadd.f32 1e-05, %v1521_v16 }
 0x8b0   :  { %v1526_v37 = vadd.f32 1e-05, %v1520_v27 }
 0x8b1   :  { %5066 = vrsqrt.f32 %v1527_v49 }
 0x8b2   :  { %5068 = vrsqrt.f32 %v1526_v37 }
 0x8b5   :  { %v1510_v19 = vpop.xlane.xlu0 %1509 }
 0x8b6   :  { %v1522_v4 = vmul.f32 0.03125, %v1510_v19 }
 0x8b8   :  { %v1528_v10 = vadd.f32 1e-05, %v1522_v4 }
 0x8b9   :  { %v1513_v6 = vpop.xlane.xlu1 %1512 }
 0x8ba   :  { %5070 = vrsqrt.f32 %v1528_v10  ;;  %v1523_v63 = vmul.f32 0.03125, %v1513_v6 }
 0x8bb   :  { %v5067_v58 = vpop.eup %5066 }
 0x8bc   :  { %v5069_v9 = vpop.eup %5068  ;;  %v1539_v0 = vmul.f32 %v5067_v58, %v1491_v1  ;;  %v1529_v2 = vadd.f32 1e-05, %v1523_v63 }
 0x8bd   :  { %v1519_v23 = vpop.xlane.xlu1 %1518  ;;  %v1516_v14 = vpop.xlane.xlu0 %1515  ;;  %v1538_v21 = vmul.f32 %v5069_v9, %v6289_v35 }
 0x8be   :  { %v1551_v45 = vmul.f32 %v3861_v25, %v1539_v0  ;;  %5072 = vrsqrt.f32 %v1529_v2  ;;  %v1525_v30 = vmul.f32 0.03125, %v1519_v23  ;;  %v1524_v41 = vmul.f32 0.03125, %v1516_v14 }
 0x8bf   :  { %v1550_v39 = vmul.f32 %v3861_v25, %v1538_v21  ;;  %v1858_v21 = vld [vmem:[%s7338_s13 + $0x20] sm:$0xff] }
 0x8c0   :  { %v1531_v38 = vadd.f32 1e-05, %v1525_v30  ;;  %v1530_v42 = vadd.f32 1e-05, %v1524_v41  ;;  %v1563_v16 = vadd.f32 %v3862_v20, %v1551_v45  ;;  %v1860_v30 = vld [vmem:[%s7338_s13 + $0x30] sm:$0xff]  ;;  %v1861_v41 = vld [vmem:[%s7338_s13 + $0x38] sm:$0xff] }
 0x8c1   :  { %v1562_v12 = vadd.f32 %v3862_v20, %v1550_v39  ;;  %v4536_v39 = vpack.c.bf16 %v1861_v41, %v1860_v30 }
 0x8c2   :  { %5074 = vrsqrt.f32 %v1531_v38  ;;  %v1862_v38 = vld [vmem:[%s7338_s13 + $0x40] sm:$0xff] }
 0x8c3   :  { %5076 = vrsqrt.f32 %v1530_v42  ;;  %4180 = vmatprep.mubr.msk.f32.mxu1 %vm215_vm1, %v1562_v12  ;;  %v1863_v42 = vld [vmem:[%s7338_s13 + $0x48] sm:$0xff] }
 0x8c4   :  { %v5071_v1 = vpop.eup %5070  ;;  %4181 = vmatmul.mubr.msk.f32.vlgmr.msra.gmra.mrb[24].mxu1 %vm215_vm1, %v1563_v16  ;;  %v4540_v12 = vpack.c.bf16 %v1863_v42, %v1862_v38  ;;  %v1864_v16 = vld [vmem:[%s7338_s13 + $0x50] sm:$0xff] }
 0x8c5   :  { %v1540_v35 = vmul.f32 %v5071_v1, %v6296_v36  ;;  %v1865_v1 = vld [vmem:[%s7338_s13 + $0x58] sm:$0xff] }
 0x8c7   :  { %v1552_v29 = vmul.f32 %v3861_v25, %v1540_v35  ;;  %v4544_v35 = vpack.c.bf16 %v1865_v1, %v1864_v16 }
 0x8c8   :  { %v5073_v27 = vpop.eup %5072 }
 0x8c9   :  { %v1564_v49 = vadd.f32 %v3862_v20, %v1552_v29  ;;  %v1541_v37 = vmul.f32 %v5073_v27, %v6301_v5  ;;  %v1854_v5 = vld [vmem:[%s7338_s13] sm:$0xff]  ;;  %v1867_v27 = vld [vmem:[%s7338_s13 + $0x68] sm:$0xff] }
 0x8ca   :  { %v1866_v29 = vld [vmem:[%s7338_s13 + $0x60] sm:$0xff] }
 0x8cb   :  { %4183 = vmatprep.mubr.msk.f32.mxu1 %vm215_vm1, %v1564_v49  ;;  %v1553_v19 = vmul.f32 %v3861_v25, %v1541_v37  ;;  %v4548_v49 = vpack.c.bf16 %v1867_v27, %v1866_v29  ;;  %v1868_v37 = vld [vmem:[%s7338_s13 + $0x70] sm:$0xff] }
 0x8cc   :  { %v5075_v4 = vpop.eup %5074 }
 0x8cd   :  { %v5077_v10 = vpop.eup %5076  ;;  %v1565_v6 = vadd.f32 %v3862_v20, %v1553_v19  ;;  %v1543_v63 = vmul.f32 %v5075_v4, %v6307_v28  ;;  %v1855_v28 = vld [vmem:[%s7338_s13 + $0x8] sm:$0xff]  ;;  %v1869_v19 = vld [vmem:[%s7338_s13 + $0x78] sm:$0xff] }
 0x8ce   :  { %v1542_v58 = vmul.f32 %v5077_v10, %v6310_v18  ;;  %v4524_v23 = vpack.c.bf16 %v1855_v28, %v1854_v5  ;;  %v1856_v18 = vld [vmem:[%s7338_s13 + $0x10] sm:$0xff]  ;;  %v4552_v4 = vpack.c.bf16 %v1869_v19, %v1868_v37  ;;  %v3863_v10 = vld [vmem:[%s7339_s12] ss:$0 sm:$0xff] }
 0x8cf   :  { %4184 = vmatmul.mubr.msk.f32.gmra.mrb[26].mxu1 %vm215_vm1, %v1565_v6  ;;  %v1555_v9 = vmul.f32 %v3861_v25, %v1543_v63 }
 0x8d0   :  { %v1554_v0 = vmul.f32 %v3861_v25, %v1542_v58  ;;  %4525 = vmatprep.subr.bf16.mxu1 %v4524_v23  ;;  %v1857_v25 = vld [vmem:[%s7338_s13 + $0x18] sm:$0xff] }
 0x8d1   :  { %v1567_v36 = vadd.f32 %v3862_v20, %v1555_v9  ;;  %4527 = vmatpush3.bf16.msra.mxu1 %v4524_v23  ;;  %v4528_v14 = vpack.c.bf16 %v1857_v25, %v1856_v18 }
 0x8d2   :  { %v1566_v2 = vadd.f32 %v3862_v20, %v1554_v0  ;;  %v1859_v20 = vld [vmem:[%s7338_s13 + $0x28] sm:$0xff] }
 0x8d3   :  { %4529 = vmatprep.subr.bf16.mxu1 %v4528_v14  ;;  %v4532_v45 = vpack.c.bf16 %v1859_v20, %v1858_v21 }
 0x8d4   :  { %4186 = vmatprep.mubr.msk.f32.mxu1 %vm215_vm1, %v1566_v2 }
 0x8d5   :  { %4187 = vmatmul.mubr.msk.f32.gmra.mrb[28].mxu1 %vm215_vm1, %v1567_v36 }
 0x8d6   :  { %4531 = vmatpush3.bf16.msra.mxu1 %v4528_v14 }
 0x8d7   :  { %4533 = vmatprep.subr.bf16.mxu1 %v4532_v45 }
 0x8da   :  { %4535 = vmatpush3.bf16.msra.mxu1 %v4532_v45 }
 0x8db   :  { %4537 = vmatprep.subr.bf16.mxu1 %v4536_v39 }
 0x8de   :  { %4539 = vmatpush3.bf16.msra.mxu1 %v4536_v39 }
 0x8df   :  { %4541 = vmatprep.subr.bf16.mxu1 %v4540_v12 }
 0x8e2   :  { %4543 = vmatpush3.bf16.msra.mxu1 %v4540_v12 }
 0x8e3   :  { %4545 = vmatprep.subr.bf16.mxu1 %v4544_v35 }
 0x8e6   :  { %4547 = vmatpush3.bf16.msra.mxu1 %v4544_v35 }
 0x8e7   :  { %4549 = vmatprep.subr.bf16.mxu1 %v4548_v49 }
 0x8ea   :  { %4551 = vmatpush3.bf16.msra.mxu1 %v4548_v49 }
 0x8eb   :  { %4553 = vmatprep.subr.bf16.mxu1 %v4552_v4 }
 0x8ee   :  { %4555 = vmatpush3.bf16.msra.mxu1 %v4552_v4 }
 0x8ef   :  { %4612 = vmatprep.subr.bf16.mxu1 %v7430_v44 }
 0x997   :  { %v4182_v6 = vpop.f32.mrb[24].mxu1 }
 0x998   :  { %v6400_v63 = vadd.f32 %v4182_v6, %v3863_v10  ;;  %v1663_v58 = vpop.f32.mrb[25].mxu1 }
 0x999   :  { %v6402_v9 = vadd.f32 %v3863_v10, %v1663_v58 }
 0x99a   :  { %v6405_v0 = vmul.f32 0.70710677, %v6400_v63 }
 0x99b   :  { %v6408_v36 = vmul.f32 0.70710677, %v6402_v9 }
 0x99c   :  { %v1717_v2 = vand.u32 2147483647, %v6405_v0  ;;  %vm1705_vm4 = vcmp.ge.f32.partialorder %v6405_v0, 0.0 }
 0x99d   :  { %v1716_v5 = vand.u32 2147483647, %v6408_v36  ;;  %vm1704_vm5 = vcmp.ge.f32.partialorder %v6408_v36, 0.0 }
 0x99e   :  { %v1723_v28 = vmul.f32 0.3275911, %v1717_v2  ;;  %v1801_v39 = vsub.f32 0.0, %v1717_v2 }
 0x99f   :  { %v1722_v23 = vmul.f32 0.3275911, %v1716_v5  ;;  %v1800_v6 = vsub.f32 0.0, %v1716_v5 }
 0x9a0   :  { %v1729_v18 = vadd.f32 1.0, %v1723_v28  ;;  %v1807_v49 = vmul.f32 %v1801_v39, %v1717_v2 }
 0x9a1   :  { %v1728_v25 = vadd.f32 1.0, %v1722_v23 }
 0x9a2   :  { %5078 = vrcp.f32 %v1729_v18  ;;  %v4185_v14 = vpop.f32.mrb[26].mxu1 }
 0x9a3   :  { %v6412_v21 = vadd.f32 %v4185_v14, %v3863_v10  ;;  %v1673_v20 = vpop.f32.mrb[27].mxu1  ;;  %5080 = vrcp.f32 %v1728_v25  ;;  %v1814_v14 = vmul.f32 1.442695, %v1807_v49 }
 0x9a4   :  { %v6414_v45 = vadd.f32 %v3863_v10, %v1673_v20  ;;  %v1806_v20 = vmul.f32 %v1800_v6, %v1716_v5 }
 0x9a5   :  { %v6417_v30 = vmul.f32 0.70710677, %v6412_v21 }
 0x9a6   :  { %v6420_v41 = vmul.f32 0.70710677, %v6414_v45  ;;  %v1812_v51 = vmul.f32 1.442695, %v1806_v20 }
 0x9a7   :  { %v1719_v38 = vand.u32 2147483647, %v6417_v30  ;;  %vm1707_vm6 = vcmp.ge.f32.partialorder %v6417_v30, 0.0 }
 0x9a8   :  { %v1718_v42 = vand.u32 2147483647, %v6420_v41  ;;  %v4188_v12 = vpop.f32.mrb[28].mxu1  ;;  %vm1706_vm7 = vcmp.ge.f32.partialorder %v6420_v41, 0.0 }
 0x9a9   :  { %v1725_v16 = vmul.f32 0.3275911, %v1719_v38  ;;  %v6424_v1 = vadd.f32 %v4188_v12, %v3863_v10  ;;  %v1683_v35 = vpop.f32.mrb[29].mxu1 }
 0x9aa   :  { %v1724_v29 = vmul.f32 0.3275911, %v1718_v42  ;;  %v6426_v27 = vadd.f32 %v3863_v10, %v1683_v35 }
 0x9ab   :  { %v1731_v37 = vadd.f32 1.0, %v1725_v16  ;;  %v6429_v19 = vmul.f32 0.70710677, %v6424_v1 }
 0x9ac   :  { %v5079_v4 = vpop.eup %5078  ;;  %v1730_v58 = vadd.f32 1.0, %v1724_v29  ;;  %v6432_v28 = vmul.f32 0.70710677, %v6426_v27  ;;  %v1803_v29 = vsub.f32 0.0, %v1719_v38 }
 0x9ad   :  { %v1747_v23 = vmul.f32 1.0614054, %v5079_v4  ;;  %5082 = vrcp.f32 %v1731_v37  ;;  %v6434_v18 = vpop.eup %5080  ;;  %v1721_v25 = vand.u32 2147483647, %v6429_v19  ;;  %vm1709_vm8 = vcmp.ge.f32.partialorder %v6429_v19, 0.0 }
 0x9ae   :  { %5084 = vrcp.f32 %v1730_v58  ;;  %v1720_v2 = vand.u32 2147483647, %v6432_v28  ;;  %v1746_v35 = vmul.f32 1.0614054, %v6434_v18  ;;  %v1802_v58 = vsub.f32 0.0, %v1718_v42 }
 0x9af   :  { %v1753_v10 = vadd.f32 -1.4531521, %v1747_v23  ;;  %v1727_v39 = vmul.f32 0.3275911, %v1721_v25  ;;  %5086 = vpow2.f32 %v1814_v14  ;;  %v1809_v23 = vmul.f32 %v1803_v29, %v1719_v38 }
 0x9b0   :  { %v1726_v16 = vmul.f32 0.3275911, %v1720_v2  ;;  %v1752_v53 = vadd.f32 -1.4531521, %v1746_v35  ;;  %v1804_v38 = vsub.f32 0.0, %v1720_v2  ;;  %vm1708_vm9 = vcmp.ge.f32.partialorder %v6432_v28, 0.0 }
 0x9b1   :  { %v1759_v12 = vmul.f32 %v5079_v4, %v1753_v10  ;;  %v1733_v34 = vadd.f32 1.0, %v1727_v39  ;;  %v1808_v39 = vmul.f32 %v1802_v58, %v1718_v42  ;;  %v7400_v58 = vmov -1.0  }
 0x9b2   :  { %v1732_v37 = vadd.f32 1.0, %v1726_v16  ;;  %v1758_v49 = vmul.f32 %v6434_v18, %v1752_v53  ;;  %v1805_v53 = vsub.f32 0.0, %v1721_v25  ;;  %v1696_v28 = vmul.f32 0.5, %v6426_v27 }
 0x9b3   :  { %v1765_v8 = vadd.f32 1.4214138, %v1759_v12  ;;  %5088 = vrcp.f32 %v1733_v34  ;;  %v1818_v12 = vmul.f32 1.442695, %v1809_v23 }
 0x9b4   :  { %5090 = vrcp.f32 %v1732_v37  ;;  %v1764_v10 = vadd.f32 1.4214138, %v1758_v49  ;;  %v1816_v37 = vmul.f32 1.442695, %v1808_v39  ;;  %v1711_v49 = vsel %vm1705_vm4, 1.0, %v7400_v58 }
 0x9b5   :  { %v1771_v43 = vmul.f32 %v5079_v4, %v1765_v8  ;;  %5092 = vpow2.f32 %v1812_v51  ;;  %v1811_v23 = vmul.f32 %v1805_v53, %v1721_v25 }
 0x9b6   :  { %v1770_v34 = vmul.f32 %v6434_v18, %v1764_v10  ;;  %5094 = vpow2.f32 %v1818_v12 }
 0x9b7   :  { %v6440_v5 = vpop.eup %5082  ;;  %v1777_v6 = vadd.f32 -0.28449672, %v1771_v43  ;;  %5096 = vpow2.f32 %v1816_v37 }
 0x9b8   :  { %v6442_v54 = vpop.eup %5084  ;;  %v1749_v14 = vmul.f32 1.0614054, %v6440_v5  ;;  %v1776_v43 = vadd.f32 -0.28449672, %v1770_v34 }
 0x9b9   :  { %v1783_v20 = vmul.f32 %v5079_v4, %v1777_v6  ;;  %v1748_v8 = vmul.f32 1.0614054, %v6442_v54  ;;  %v5087_v42 = vpop.eup %5086 }
 0x9ba   :  { %v1755_v16 = vadd.f32 -1.4531521, %v1749_v14  ;;  %v1782_v6 = vmul.f32 %v6434_v18, %v1776_v43  ;;  %v1810_v14 = vmul.f32 %v1804_v38, %v1720_v2  ;;  %v1822_v38 = vmul.f32 1.442695, %v1811_v23 }
 0x9bb   :  { %v1789_v35 = vadd.f32 0.2548296, %v1783_v20  ;;  %v1754_v29 = vadd.f32 -1.4531521, %v1748_v8 }
 0x9bc   :  { %v1761_v51 = vmul.f32 %v6440_v5, %v1755_v16  ;;  %v1788_v8 = vadd.f32 0.2548296, %v1782_v6  ;;  %5098 = vpow2.f32 %v1822_v38 }
 0x9bd   :  { %v1795_v0 = vmul.f32 %v5079_v4, %v1789_v35  ;;  %v1760_v10 = vmul.f32 %v6442_v54, %v1754_v29  ;;  %v6452_v47 = vpop.eup %5088 }
 0x9be   :  { %v1767_v20 = vadd.f32 1.4214138, %v1761_v51  ;;  %v6454_v34 = vpop.eup %5090  ;;  %v1751_v55 = vmul.f32 1.0614054, %v6452_v47  ;;  %v1794_v12 = vmul.f32 %v6434_v18, %v1788_v8 }
 0x9bf   :  { %v1825_v39 = vmul.f32 %v5087_v42, %v1795_v0  ;;  %v1766_v16 = vadd.f32 1.4214138, %v1760_v10  ;;  %v1750_v35 = vmul.f32 1.0614054, %v6454_v34  ;;  %v5093_v53 = vpop.eup %5092  ;;  %v1820_v42 = vmul.f32 1.442695, %v1810_v14 }
 0x9c0   :  { %v1773_v4 = vmul.f32 %v6440_v5, %v1767_v20  ;;  %v1757_v2 = vadd.f32 -1.4531521, %v1751_v55  ;;  %v1824_v0 = vmul.f32 %v5093_v53, %v1794_v12  ;;  %v1692_v53 = vmul.f32 0.5, %v6402_v9 }
 0x9c1   :  { %v1831_v43 = vsub.f32 1.0, %v1825_v39  ;;  %v1772_v25 = vmul.f32 %v6442_v54, %v1766_v16  ;;  %v1756_v51 = vadd.f32 -1.4531521, %v1750_v35  ;;  %v7466_v16 = vmov -1.0  }
 0x9c2   :  { %v1779_v29 = vadd.f32 -0.28449672, %v1773_v4  ;;  %v1763_v10 = vmul.f32 %v6452_v47, %v1757_v2  ;;  %v1830_v39 = vsub.f32 1.0, %v1824_v0  ;;  %v1710_v55 = vsel %vm1704_vm5, 1.0, %v7466_v16 }
 0x9c3   :  { %v1778_v6 = vadd.f32 -0.28449672, %v1772_v25  ;;  %v1837_v37 = vmul.f32 %v1831_v43, %v1711_v49  ;;  %v1762_v58 = vmul.f32 %v6454_v34, %v1756_v51  ;;  %5100 = vpow2.f32 %v1820_v42  ;;  %v5095_v43 = vpop.eup %5094 }
 0x9c4   :  { %v1785_v20 = vmul.f32 %v6440_v5, %v1779_v29  ;;  %v1769_v8 = vadd.f32 1.4214138, %v1763_v10  ;;  %v1836_v4 = vmul.f32 %v1830_v39, %v1710_v55  ;;  %v5097_v38 = vpop.eup %5096 }
 0x9c5   :  { %v1784_v18 = vmul.f32 %v6442_v54, %v1778_v6  ;;  %v1768_v14 = vadd.f32 1.4214138, %v1762_v58  ;;  %v1843_v12 = vadd.f32 1.0, %v1837_v37  ;;  %v1693_v58 = vmul.f32 0.5, %v6400_v63 }
 0x9c6   :  { %v1791_v23 = vadd.f32 0.2548296, %v1785_v20  ;;  %v1775_v49 = vmul.f32 %v6452_v47, %v1769_v8  ;;  %v1842_v29 = vadd.f32 1.0, %v1836_v4  ;;  %v1712_v63 = vsel %vm1706_vm7, 1.0, %v7466_v16 }
 0x9c7   :  { %v1790_v35 = vadd.f32 0.2548296, %v1784_v18  ;;  %v1774_v2 = vmul.f32 %v6454_v34, %v1768_v14  ;;  %v1849_v37 = vmul.f32 %v1843_v12, %v1693_v58 }
 0x9c8   :  { %v1797_v25 = vmul.f32 %v6440_v5, %v1791_v23  ;;  %v1781_v51 = vadd.f32 -0.28449672, %v1775_v49  ;;  %v1848_v6 = vmul.f32 %v1842_v29, %v1692_v53  ;;  %v5099_v23 = vpop.eup %5098  ;;  %v1694_v49 = vmul.f32 0.5, %v6414_v45 }
 0x9c9   :  { %v1796_v36 = vmul.f32 %v6442_v54, %v1790_v35  ;;  %v1780_v0 = vadd.f32 -0.28449672, %v1774_v2  ;;  %v1713_v54 = vsel %vm1707_vm6, 1.0, %v7466_v16  ;;  %v1714_v45 = vsel %vm1708_vm9, 1.0, %v7466_v16 }
 0x9ca   :  { %v1827_v42 = vmul.f32 %v5095_v43, %v1797_v25  ;;  %v1787_v5 = vmul.f32 %v6452_v47, %v1781_v51  ;;  %4221 = vmatprep.mubr.f32.mxu1 %v1848_v6  ;;  %v1695_v25 = vmul.f32 0.5, %v6412_v21 }
 0x9cb   :  { %v1826_v10 = vmul.f32 %v5097_v38, %v1796_v36  ;;  %v1786_v9 = vmul.f32 %v6454_v34, %v1780_v0  ;;  %4222 = vmatmul.mubr.f32.vlgmr.msra.gmra.mrb[30].mxu1 %v1849_v37 }
 0x9cc   :  { %v1833_v20 = vsub.f32 1.0, %v1827_v42  ;;  %v1793_v18 = vadd.f32 0.2548296, %v1787_v5  ;;  %4614 = vmatpush1.bf16.msra.mxu1 %v5620_v59 }
 0x9cd   :  { %v1832_v39 = vsub.f32 1.0, %v1826_v10  ;;  %v1792_v8 = vadd.f32 0.2548296, %v1786_v9  ;;  %4615 = vmatprep.subr.bf16.mxu1 %v7430_v44  ;;  %v5101_v35 = vpop.eup %5100 }
 0x9ce   :  { %v1839_v30 = vmul.f32 %v1833_v20, %v1713_v54  ;;  %v1799_v41 = vmul.f32 %v6452_v47, %v1793_v18 }
 0x9cf   :  { %v1838_v55 = vmul.f32 %v1832_v39, %v1712_v63  ;;  %v1798_v4 = vmul.f32 %v6454_v34, %v1792_v8  ;;  %v1715_v34 = vsel %vm1709_vm8, 1.0, %v7466_v16 }
 0x9d0   :  { %v1845_v14 = vadd.f32 1.0, %v1839_v30  ;;  %v1829_v12 = vmul.f32 %v5099_v23, %v1799_v41  ;;  %4617 = vmatpush1.bf16.msra.mxu1 %v5628_v62  ;;  %v1697_v62 = vmul.f32 0.5, %v6424_v1 }
 0x9d1   :  { %v1844_v43 = vadd.f32 1.0, %v1838_v55  ;;  %v1828_v47 = vmul.f32 %v5101_v35, %v1798_v4  ;;  %4618 = vmatprep.subr.bf16.mxu1 %v7430_v44 }
 0x9d2   :  { %v1835_v59 = vsub.f32 1.0, %v1829_v12  ;;  %v1851_v53 = vmul.f32 %v1845_v14, %v1695_v25 }
 0x9d3   :  { %v1850_v2 = vmul.f32 %v1844_v43, %v1694_v49  ;;  %v1834_v29 = vsub.f32 1.0, %v1828_v47 }
 0x9d4   :  { %v1841_v19 = vmul.f32 %v1835_v59, %v1715_v34  ;;  %4620 = vmatpush1.bf16.msra.mxu1 %v5638_v3  ;;  %v3870_v3 = vld [vmem:[%s7340_s14] ss:$0 sm:$0xff] }
 0x9d5   :  { %4224 = vmatprep.mubr.f32.mxu1 %v1850_v2  ;;  %v1840_v36 = vmul.f32 %v1834_v29, %v1714_v45  ;;  %4621 = vmatprep.subr.bf16.mxu1 %v7430_v44 }
 0x9d6   :  { %4225 = vmatmul.mubr.f32.gmra.mrb[32].mxu1 %v1851_v53  ;;  %v1847_v21 = vadd.f32 1.0, %v1841_v19 }
 0x9d7   :  { %v1846_v51 = vadd.f32 1.0, %v1840_v36 }
 0x9d8   :  { %v1853_v58 = vmul.f32 %v1847_v21, %v1697_v62  ;;  %4623 = vmatpush1.bf16.msra.mxu1 %v5670_v17 }
 0x9d9   :  { %v1852_v38 = vmul.f32 %v1846_v51, %v1696_v28  ;;  %4624 = vmatprep.subr.bf16.mxu1 %v7430_v44 }
 0x9db   :  { %4227 = vmatprep.mubr.f32.mxu1 %v1852_v38  ;;  %v3875_v38 = vld [vmem:[%s7412_s24 + $0x20] sm:$0xff] }
 0x9dc   :  { %4228 = vmatmul.mubr.f32.gmra.mrb[34].mxu1 %v1853_v58  ;;  %v3876_v58 = vld [vmem:[%s7412_s24 + $0x28] sm:$0xff] }
 0x9dd   :  { %4626 = vmatpush1.bf16.msra.mxu1 %v5698_v11 }
 0x9de   :  { %4627 = vmatprep.subr.bf16.mxu1 %v7430_v44 }
 0x9e1   :  { %4629 = vmatpush1.bf16.msra.mxu1 %v5727_v7 }
 0x9e2   :  { %4630 = vmatprep.subr.bf16.mxu1 %v7430_v44 }
 0x9e5   :  { %4632 = vmatpush1.bf16.msra.mxu1 %v5742_v61 }
 0x9e6   :  { %4633 = vmatprep.subr.bf16.mxu1 %v7430_v44 }
 0x9e9   :  { %4635 = vmatpush1.bf16.msra.mxu1 %v5756_v40 }
 0x9ea   :  { %4636 = vmatprep.subr.bf16.mxu1 %v7430_v44 }
 0x9ed   :  { %4638 = vmatpush1.bf16.msra.mxu1 %v5775_v57 }
 0x9ee   :  { %4639 = vmatprep.subr.bf16.mxu1 %v7430_v44 }
 0x9f1   :  { %4641 = vmatpush1.bf16.msra.mxu1 %v5785_v15 }
 0x9f2   :  { %4642 = vmatprep.subr.bf16.mxu1 %v7430_v44 }
 0x9f5   :  { %4644 = vmatpush1.bf16.msra.mxu1 %v5793_v50 }
 0x9f6   :  { %4645 = vmatprep.subr.bf16.mxu1 %v7430_v44 }
 0x9f9   :  { %4647 = vmatpush1.bf16.msra.mxu1 %v5801_v13 }
 0x9fa   :  { %4648 = vmatprep.subr.bf16.mxu1 %v7430_v44 }
 0xa9e   :  { %v4223_v7 = vpop.f32.mrb[30].mxu1 }
 0xa9f   :  { %v1966_v57 = vadd.f32 %v4223_v7, %v6259_v60  ;;  %v1936_v17 = vpop.f32.mrb[31].mxu1  ;;  %v4556_v7 = vpack.c.bf16 %v3876_v58, %v3875_v38 }
 0xaa0   :  { %v1965_v11 = vadd.f32 %v1936_v17, %v6261_v24 }
 0xaa1   :  { %v6520_v61 = vadd.f32 %v3870_v3, %v1966_v57  ;;  %4557 = vmatprep.subr.bf16.mxu0 %v4556_v7  ;;  %v3878_v57 = vld [vmem:[%s7412_s24 + $0x38] sm:$0xff] }
 0xaa2   :  { %v6522_v40 = vadd.f32 %v3870_v3, %v1965_v11  ;;  %4559 = vmatpush3.bf16.msra.mxu0 %v4556_v7 }
 0xaa3   :  { %v1991_v50 = vsel %vm215_vm1, %v6520_v61, 0.0 }
 0xaa4   :  { %1992 = vadd.xlane.f32.xlu1 %v1991_v50  ;;  %v1988_v13 = vsel %vm215_vm1, %v6522_v40, 0.0 }
 0xaa5   :  { %1989 = vadd.xlane.f32.xlu0 %v1988_v13 }
 0xaa9   :  { %v4226_v15 = vpop.f32.mrb[32].mxu1 }
 0xaaa   :  { %v1968_v1 = vadd.f32 %v4226_v15, %v6271_v22  ;;  %v1946_v27 = vpop.f32.mrb[33].mxu1 }
 0xaab   :  { %v1967_v60 = vadd.f32 %v1946_v27, %v6269_v48 }
 0xaac   :  { %v6530_v42 = vadd.f32 %v3870_v3, %v1968_v1 }
 0xaad   :  { %v6532_v24 = vadd.f32 %v3870_v3, %v1967_v60 }
 0xaae   :  { %v1997_v0 = vsel %vm215_vm1, %v6530_v42, 0.0 }
 0xaaf   :  { %1998 = vadd.xlane.f32.xlu1 %v1997_v0  ;;  %v1994_v6 = vsel %vm215_vm1, %v6532_v24, 0.0  ;;  %v4229_v10 = vpop.f32.mrb[34].mxu1 }
 0xab0   :  { %1995 = vadd.xlane.f32.xlu0 %v1994_v6  ;;  %v1970_v5 = vadd.f32 %v4229_v10, %v6279_v31  ;;  %v1956_v37 = vpop.f32.mrb[35].mxu1 }
 0xab1   :  { %v1969_v22 = vadd.f32 %v1956_v37, %v6281_v32 }
 0xab2   :  { %v6540_v20 = vadd.f32 %v3870_v3, %v1970_v5 }
 0xab3   :  { %v6542_v48 = vadd.f32 %v3870_v3, %v1969_v22  ;;  %v3877_v3 = vld [vmem:[%s7412_s24 + $0x30] sm:$0xff] }
 0xab4   :  { %v2003_v9 = vsel %vm215_vm1, %v6540_v20, 0.0  ;;  %v4560_v17 = vpack.c.bf16 %v3878_v57, %v3877_v3  ;;  %v7468_v57 = vld [vmem:[#allocation2_spill] sm:$0xff] }
 0xab5   :  { %2004 = vadd.xlane.f32.xlu1 %v2003_v9  ;;  %v2000_v54 = vsel %vm215_vm1, %v6542_v48, 0.0  ;;  %v3873_v9 = vld [vmem:[%s7330_s4 + $0x1] ss:$0 sm:$0xff] }
 0xab6   :  { %2001 = vadd.xlane.f32.xlu0 %v2000_v54  ;;  %4561 = vmatprep.subr.bf16.mxu0 %v4560_v17 }
 0xab7   :  { %4563 = vmatpush3.bf16.msra.mxu0 %v4560_v17  ;;  %v7469_v17 = vld [vmem:[#allocation14_spill] sm:$0xff] }
 0xab8   :  { %4564 = vmatprep.subr.bf16.mxu0 %v7430_v44 }
 0xb31   :  { %v1993_v39 = vpop.xlane.xlu1 %1992 }
 0xb32   :  { %v2007_v18 = vmul.f32 0.03125, %v1993_v39  ;;  %v1990_v63 = vpop.xlane.xlu0 %1989 }
 0xb33   :  { %v2006_v30 = vmul.f32 0.03125, %v1990_v63 }
 0xb34   :  { %v6549_v31 = vsub.f32 %v6520_v61, %v2007_v18 }
 0xb35   :  { %v6552_v32 = vsub.f32 %v6522_v40, %v2006_v30 }
 0xb36   :  { %v2019_v8 = vmul.f32 %v6549_v31, %v6549_v31 }
 0xb37   :  { %v2018_v55 = vmul.f32 %v6552_v32, %v6552_v32 }
 0xb38   :  { %v2027_v41 = vsel %vm215_vm1, %v2019_v8, 0.0  ;;  %v3874_v8 = vld [vmem:[%s7331_s5 + $0x1] ss:$0 sm:$0xff] }
 0xb39   :  { %2028 = vadd.xlane.f32.xlu1 %v2027_v41  ;;  %v2024_v23 = vsel %vm215_vm1, %v2018_v55, 0.0 }
 0xb3a   :  { %2025 = vadd.xlane.f32.xlu0 %v2024_v23 }
 0xb3c   :  { %v1999_v14 = vpop.xlane.xlu1 %1998 }
 0xb3d   :  { %v2009_v4 = vmul.f32 0.03125, %v1999_v14  ;;  %v1996_v35 = vpop.xlane.xlu0 %1995 }
 0xb3e   :  { %v2008_v49 = vmul.f32 0.03125, %v1996_v35 }
 0xb3f   :  { %v6561_v43 = vsub.f32 %v6530_v42, %v2009_v4 }
 0xb40   :  { %v6564_v12 = vsub.f32 %v6532_v24, %v2008_v49 }
 0xb41   :  { %v2021_v25 = vmul.f32 %v6561_v43, %v6561_v43 }
 0xb42   :  { %v2020_v47 = vmul.f32 %v6564_v12, %v6564_v12  ;;  %v2005_v2 = vpop.xlane.xlu1 %2004 }
 0xb43   :  { %v2033_v59 = vsel %vm215_vm1, %v2021_v25, 0.0  ;;  %v2011_v34 = vmul.f32 0.03125, %v2005_v2  ;;  %v2002_v53 = vpop.xlane.xlu0 %2001 }
 0xb44   :  { %2034 = vadd.xlane.f32.xlu1 %v2033_v59  ;;  %v2030_v29 = vsel %vm215_vm1, %v2020_v47, 0.0  ;;  %v2010_v45 = vmul.f32 0.03125, %v2002_v53 }
 0xb45   :  { %2031 = vadd.xlane.f32.xlu0 %v2030_v29  ;;  %v6573_v19 = vsub.f32 %v6540_v20, %v2011_v34 }
 0xb46   :  { %v6576_v36 = vsub.f32 %v6542_v48, %v2010_v45 }
 0xb47   :  { %v2023_v21 = vmul.f32 %v6573_v19, %v6573_v19 }
 0xb48   :  { %v2022_v28 = vmul.f32 %v6576_v36, %v6576_v36 }
 0xb49   :  { %v2039_v51 = vsel %vm215_vm1, %v2023_v21, 0.0 }
 0xb4a   :  { %2040 = vadd.xlane.f32.xlu1 %v2039_v51  ;;  %v2036_v62 = vsel %vm215_vm1, %v2022_v28, 0.0 }
 0xb4b   :  { %2037 = vadd.xlane.f32.xlu0 %v2036_v62 }
 0xbc6   :  { %v2029_v11 = vpop.xlane.xlu1 %2028 }
 0xbc7   :  { %v2043_v50 = vmul.f32 0.03125, %v2029_v11  ;;  %v2026_v13 = vpop.xlane.xlu0 %2025  ;;  %v7470_v11 = vld [vmem:[#allocation8_spill] sm:$0xff] }
 0xbc8   :  { %v2042_v15 = vmul.f32 0.03125, %v2026_v13 }
 0xbc9   :  { %v2049_v1 = vadd.f32 1e-05, %v2043_v50 }
 0xbca   :  { %v2048_v27 = vadd.f32 1e-05, %v2042_v15  ;;  %v7471_v15 = vld [vmem:[#allocation5_spill] sm:$0xff] }
 0xbcb   :  { %5102 = vrsqrt.f32 %v2049_v1 }
 0xbcc   :  { %5104 = vrsqrt.f32 %v2048_v27  ;;  %v7472_v27 = vld [vmem:[#allocation15_spill] sm:$0xff] }
 0xbd1   :  { %v2035_v60 = vpop.xlane.xlu1 %2034 }
 0xbd2   :  { %v2045_v0 = vmul.f32 0.03125, %v2035_v60  ;;  %v2032_v6 = vpop.xlane.xlu0 %2031 }
 0xbd3   :  { %v2044_v10 = vmul.f32 0.03125, %v2032_v6 }
 0xbd4   :  { %v2051_v5 = vadd.f32 1e-05, %v2045_v0  ;;  %v7473_v0 = vld [vmem:[#allocation9_spill] sm:$0xff] }
 0xbd5   :  { %v2050_v37 = vadd.f32 1e-05, %v2044_v10  ;;  %v5103_v22 = vpop.eup %5102 }
 0xbd6   :  { %5106 = vrsqrt.f32 %v2051_v5  ;;  %v5105_v39 = vpop.eup %5104  ;;  %v2061_v18 = vmul.f32 %v5103_v22, %v6549_v31  ;;  %v7474_v22 = vld [vmem:[#allocation21_spill] sm:$0xff] }
 0xbd7   :  { %5108 = vrsqrt.f32 %v2050_v37  ;;  %v2041_v54 = vpop.xlane.xlu1 %2040  ;;  %v2060_v41 = vmul.f32 %v5105_v39, %v6552_v32 }
 0xbd8   :  { %v2047_v63 = vmul.f32 0.03125, %v2041_v54  ;;  %v2038_v30 = vpop.xlane.xlu0 %2037  ;;  %v2073_v23 = vmul.f32 %v3873_v9, %v2061_v18 }
 0xbd9   :  { %v2046_v55 = vmul.f32 0.03125, %v2038_v30  ;;  %v2072_v35 = vmul.f32 %v3873_v9, %v2060_v41  ;;  %v7476_v30 = vld [vmem:[#allocation35_spill] sm:$0xff] }
 0xbda   :  { %v2053_v14 = vadd.f32 1e-05, %v2047_v63  ;;  %v2085_v49 = vadd.f32 %v3874_v8, %v2073_v23  ;;  %v7478_v23 = vld [vmem:[#allocation41_spill] sm:$0xff] }
 0xbdb   :  { %v2052_v4 = vadd.f32 1e-05, %v2046_v55  ;;  %v2084_v25 = vadd.f32 %v3874_v8, %v2072_v35  ;;  %v7477_v55 = vld [vmem:[#allocation40_spill] sm:$0xff] }
 0xbdc   :  { %5110 = vrsqrt.f32 %v2053_v14 }
 0xbdd   :  { %5112 = vrsqrt.f32 %v2052_v4  ;;  %4238 = vmatprep.mubr.msk.f32.mxu0 %vm215_vm1, %v2084_v25 }
 0xbde   :  { %4239 = vmatmul.mubr.msk.f32.vlgmr.msra.gmra.mrb[30].mxu0 %vm215_vm1, %v2085_v49 }
 0xbe0   :  { %v5107_v47 = vpop.eup %5106 }
 0xbe1   :  { %v5109_v31 = vpop.eup %5108  ;;  %v2063_v2 = vmul.f32 %v5107_v47, %v6561_v43  ;;  %v7479_v47 = vld [vmem:[#allocation10_spill] sm:$0xff] }
 0xbe2   :  { %v2062_v59 = vmul.f32 %v5109_v31, %v6564_v12  ;;  %v7467_v12 = vmov 0.0  }
 0xbe3   :  { %v2075_v34 = vmul.f32 %v3873_v9, %v2063_v2  ;;  %v7480_v2 = vld [vmem:[#allocation4_spill] sm:$0xff] }
 0xbe4   :  { %v2074_v32 = vmul.f32 %v3873_v9, %v2062_v59 }
 0xbe5   :  { %v2087_v53 = vadd.f32 %v3874_v8, %v2075_v34  ;;  %v7481_v34 = vld [vmem:[#allocation23_spill] sm:$0xff] }
 0xbe6   :  { %v2086_v29 = vadd.f32 %v3874_v8, %v2074_v32  ;;  %v5111_v45 = vpop.eup %5110 }
 0xbe7   :  { %v5113_v21 = vpop.eup %5112  ;;  %v2065_v28 = vmul.f32 %v5111_v45, %v6573_v19  ;;  %v7483_v45 = vld [vmem:[#allocation11_spill] sm:$0xff] }
 0xbe8   :  { %4241 = vmatprep.mubr.msk.f32.mxu0 %vm215_vm1, %v2086_v29  ;;  %v2064_v51 = vmul.f32 %v5113_v21, %v6576_v36 }
 0xbe9   :  { %4242 = vmatmul.mubr.msk.f32.gmra.mrb[32].mxu0 %vm215_vm1, %v2087_v53  ;;  %v2077_v62 = vmul.f32 %v3873_v9, %v2065_v28  ;;  %v7482_v53 = vld [vmem:[#allocation16_spill] sm:$0xff]  ;;  %v7484_v28 = vld [vmem:[#allocation3_spill] sm:$0xff] }
 0xbea   :  { %v2076_v38 = vmul.f32 %v3873_v9, %v2064_v51 }
 0xbeb   :  { %v2089_v58 = vadd.f32 %v3874_v8, %v2077_v62  ;;  %v7485_v62 = vld [vmem:[#allocation22_spill] sm:$0xff] }
 0xbec   :  { %v2088_v43 = vadd.f32 %v3874_v8, %v2076_v38 }
 0xbee   :  { %4244 = vmatprep.mubr.msk.f32.mxu0 %vm215_vm1, %v2088_v43 }
 0xbef   :  { %4245 = vmatmul.mubr.msk.f32.gmra.mrb[34].mxu0 %vm215_vm1, %v2089_v58  ;;  %v7486_v58 = vld [vmem:[#allocation17_spill] sm:$0xff] }
 0xbf0   :  { %2458 = vmatprep.mubr.f32.mxu0 %v7467_v12 }
 0xcb1   :  { %v6616_v7 = vpop.f32.mrb[30].mxu0 }
 0xcb2   :  { %v6618_v3 = vpop.f32.mrb[31].mxu0  ;;  %v2209_v19 = vmul.f32 %v6616_v7, %v7468_v57  ;;  %v2221_v36 = vmul.f32 %v6616_v7, %v7469_v17  ;;  %v6626_v50 = vmul.f32 %v6616_v7, %v7470_v11  ;;  %v6630_v13 = vmul.f32 %v6616_v7, %v5930_v52  ;;  %v7487_v57 = vld [vmem:[#allocation26_spill] sm:$0xff]  ;;  %v7488_v17 = vld [vmem:[#allocation27_spill] sm:$0xff] }
 0xcb3   :  { %v2208_v1 = vmul.f32 %v6618_v3, %v7471_v15  ;;  %v2220_v60 = vmul.f32 %v6618_v3, %v7472_v27  ;;  %v6638_v6 = vmul.f32 %v6618_v3, %v7473_v0  ;;  %v6642_v10 = vmul.f32 %v6618_v3, %v5928_v56  ;;  %v7489_v11 = vld [vmem:[#allocation30_spill] sm:$0xff] }
 0xcb4   :  { %v6646_v5 = vmul.f32 %v6618_v3, %v5952_v26  ;;  %v6650_v52 = vmul.f32 %v6616_v7, %v5961_v33  ;;  %v6654_v37 = vmul.f32 %v6618_v3, %v5826_v46  ;;  %v6658_v9 = vmul.f32 %v6616_v7, %v7474_v22  ;;  %v7475_v46 = vld [vmem:[#allocation34_spill] sm:$0xff] }
 0xcb5   :  { %v4898_v54 = vpack.i.bf16 %v2209_v19, %v2208_v1  ;;  %v4928_v39 = vpack.i.bf16 %v2221_v36, %v2220_v60  ;;  %v4913_v56 = vpack.i.bf16 %v6626_v50, %v6638_v6  ;;  %v4958_v26 = vpack.i.bf16 %v6630_v13, %v6642_v10  ;;  %v7490_v1 = vld [vmem:[#allocation31_spill] sm:$0xff] }
 0xcb6   :  { %v4968_v33 = vpack.i.bf16 %v6650_v52, %v6646_v5  ;;  %v4943_v18 = vpack.i.bf16 %v6658_v9, %v6654_v37  ;;  %v6670_v63 = vmul.f32 %v6618_v3, %v7475_v46  ;;  %v6674_v8 = vmul.f32 %v6616_v7, %v7476_v30 }
 0xcb7   :  { %4899 = vrot.lane.b32.xlu0 %v4898_v54, %s5208_s19  ;;  %v6679_v41 = vmul.f32 %v6618_v3, %v7477_v55  ;;  %v6683_v14 = vmul.f32 %v6616_v7, %v7478_v23  ;;  %v7491_v55 = vld [vmem:[#allocation36_spill] sm:$0xff] }
 0xcb8   :  { %v7511_v50 = vpack.i.bf16 %v6674_v8, %v6670_v63 }
 0xcbc   :  { %v6687_v35 = vpop.f32.mrb[32].mxu0 }
 0xcbd   :  { %v6691_v25 = vpop.f32.mrb[33].mxu0  ;;  %v2217_v31 = vmul.f32 %v6687_v35, %v7479_v47  ;;  %v2211_v59 = vmul.f32 %v6687_v35, %v7480_v2  ;;  %v2229_v32 = vmul.f32 %v6687_v35, %v7481_v34  ;;  %v2223_v29 = vmul.f32 %v6687_v35, %v7482_v53  ;;  %v7492_v47 = vld [vmem:[#allocation37_spill] sm:$0xff]  ;;  %v7494_v53 = vld [vmem:[#allocation43_spill] sm:$0xff] }
 0xcbe   :  { %v2216_v21 = vmul.f32 %v6691_v25, %v7483_v45  ;;  %v2210_v51 = vmul.f32 %v6691_v25, %v7484_v28  ;;  %v2228_v38 = vmul.f32 %v6691_v25, %v7485_v62  ;;  %v2222_v43 = vmul.f32 %v6691_v25, %v7486_v58 }
 0xcbf   :  { %v2234_v19 = vmul.f32 %v6691_v25, %v7487_v57  ;;  %v2235_v36 = vmul.f32 %v6687_v35, %v7488_v17  ;;  %v2240_v15 = vmul.f32 %v6691_v25, %v7489_v11  ;;  %v2241_v27 = vmul.f32 %v6687_v35, %v7490_v1 }
 0xcc0   :  { %v4918_v60 = vpack.i.bf16 %v2217_v31, %v2216_v21  ;;  %v4903_v0 = vpack.i.bf16 %v2211_v59, %v2210_v51  ;;  %v4948_v22 = vpack.i.bf16 %v2229_v32, %v2228_v38  ;;  %v4933_v54 = vpack.i.bf16 %v2223_v29, %v2222_v43  ;;  %v7493_v59 = vld [vmem:[#allocation42_spill] sm:$0xff]  ;;  %v7496_v51 = vld [vmem:[#allocation20_spill] sm:$0xff] }
 0xcc1   :  { %v4963_v46 = vpack.i.bf16 %v2235_v36, %v2234_v19  ;;  %v4973_v30 = vpack.i.bf16 %v2241_v27, %v2240_v15  ;;  %v6719_v23 = vmul.f32 %v6691_v25, %v7491_v55  ;;  %v6723_v2 = vmul.f32 %v6687_v35, %v7492_v47  ;;  %v7495_v21 = vld [vmem:[#allocation6_spill] sm:$0xff]  ;;  %v7497_v38 = vld [vmem:[#allocation12_spill] sm:$0xff]  ;;  %v7499_v19 = vld [vmem:[#allocation7_spill] sm:$0xff] }
 0xcc2   :  { %4919 = vrot.lane.b32.xlu0 %v4918_v60, %s5208_s19  ;;  %4904 = vrot.lane.b32.xlu1 %v4903_v0, %s5208_s19  ;;  %v6727_v34 = vpop.f32.mrb[34].mxu0  ;;  %v6733_v32 = vmul.f32 %v6691_v25, %v7493_v59  ;;  %v6737_v29 = vmul.f32 %v6687_v35, %v7494_v53  ;;  %v7498_v43 = vld [vmem:[#allocation24_spill] sm:$0xff]  ;;  %v7500_v36 = vld [vmem:[#allocation18_spill] sm:$0xff]  ;;  %v7501_v15 = vld [vmem:[#allocation13_spill] sm:$0xff] }
 0xcc3   :  { %v6739_v45 = vpop.f32.mrb[35].mxu0  ;;  %v2213_v28 = vmul.f32 %v6727_v34, %v7495_v21  ;;  %v2225_v62 = vmul.f32 %v6727_v34, %v7496_v51  ;;  %v2219_v58 = vmul.f32 %v6727_v34, %v7497_v38  ;;  %v2231_v57 = vmul.f32 %v6727_v34, %v7498_v43  ;;  %v7502_v27 = vld [vmem:[#allocation25_spill] sm:$0xff]  ;;  %v7503_v0 = vld [vmem:[#allocation32_spill] sm:$0xff]  ;;  %v7507_v31 = vld [vmem:[#allocation38_spill] sm:$0xff] }
 0xcc4   :  { %v2212_v17 = vmul.f32 %v6739_v45, %v7499_v19  ;;  %v2224_v11 = vmul.f32 %v6739_v45, %v7500_v36  ;;  %v2218_v1 = vmul.f32 %v6739_v45, %v7501_v15  ;;  %v2230_v60 = vmul.f32 %v6739_v45, %v7502_v27  ;;  %v7504_v47 = vld [vmem:[#allocation33_spill] sm:$0xff]  ;;  %v7505_v53 = vld [vmem:[#allocation28_spill] sm:$0xff] }
 0xcc5   :  { %v2242_v55 = vmul.f32 %v6739_v45, %v7503_v0  ;;  %v2243_v59 = vmul.f32 %v6727_v34, %v7504_v47  ;;  %v2236_v21 = vmul.f32 %v6739_v45, %v7505_v53  ;;  %v7506_v51 = vld [vmem:[#allocation29_spill] sm:$0xff]  ;;  %v7508_v0 = vld [vmem:[#allocation39_spill] sm:$0xff]  ;;  %v5008_v47 = vpack.i.bf16 %v6737_v29, %v6733_v32  ;;  %v7509_v53 = vld [vmem:[#allocation44_spill] sm:$0xff] }
 0xcc6   :  { %4929 = vrot.lane.b32.xlu0 %v4928_v39, %s5208_s19  ;;  %v2237_v38 = vmul.f32 %v6727_v34, %v7506_v51  ;;  %v4908_v43 = vpack.i.bf16 %v2213_v28, %v2212_v17  ;;  %v4938_v19 = vpack.i.bf16 %v2225_v62, %v2224_v11  ;;  %v4923_v36 = vpack.i.bf16 %v2219_v58, %v2218_v1  ;;  %v7510_v62 = vld [vmem:[#allocation45_spill] sm:$0xff] }
 0xcc7   :  { %v4953_v15 = vpack.i.bf16 %v2231_v57, %v2230_v60  ;;  %v4988_v49 = vpack.i.bf16 %v2243_v59, %v2242_v55  ;;  %v6768_v39 = vmul.f32 %v6739_v45, %v7507_v31  ;;  %v6772_v4 = vmul.f32 %v6727_v34, %v7508_v0 }
 0xcc8   :  { %v4983_v27 = vpack.i.bf16 %v2237_v38, %v2236_v21  ;;  %4909 = vrot.lane.b32.xlu1 %v4908_v43, %s5208_s19  ;;  %v6779_v28 = vmul.f32 %v6739_v45, %v7509_v53  ;;  %v6783_v58 = vmul.f32 %v6727_v34, %v7510_v62 }
 0xcc9   :  { %v4998_v31 = vpack.i.bf16 %v6772_v4, %v6768_v39 }
 0xcca   :  { %4939 = vrot.lane.b32.xlu0 %v4938_v19, %s5208_s19  ;;  %v5013_v57 = vpack.i.bf16 %v6783_v58, %v6779_v28 }
 0xccc   :  { %4914 = vrot.lane.b32.xlu1 %v4913_v56, %s5208_s19 }
 0xcce   :  { %4949 = vrot.lane.b32.xlu0 %v4948_v22, %s5208_s19 }
 0xcd0   :  { %4924 = vrot.lane.b32.xlu1 %v4923_v36, %s5208_s19 }
 0xcd2   :  { %4959 = vrot.lane.b32.xlu0 %v4958_v26, %s5209_s6 }
 0xcd4   :  { %4934 = vrot.lane.b32.xlu1 %v4933_v54, %s5208_s19 }
 0xcd6   :  { %4969 = vrot.lane.b32.xlu0 %v4968_v33, %s5209_s6 }
 0xcd8   :  { %4944 = vrot.lane.b32.xlu1 %v4943_v18, %s5208_s19 }
 0xcda   :  { %4979 = vrot.lane.b32.xlu0 %v7511_v50, %s5209_s6 }
 0xcdc   :  { %4954 = vrot.lane.b32.xlu1 %v4953_v15, %s5208_s19 }
 0xcde   :  { %4989 = vrot.lane.b32.xlu0 %v4988_v49, %s5209_s6 }
 0xce0   :  { %4964 = vrot.lane.b32.xlu1 %v4963_v46, %s5209_s6 }
 0xce4   :  { %4974 = vrot.lane.b32.xlu1 %v4973_v30, %s5209_s6 }
 0xce8   :  { %4984 = vrot.lane.b32.xlu1 %v4983_v27, %s5209_s6 }
 0xd29   :  { %v4900_v13 = vpop.permute.xlu0 %4899 }
 0xd2a   :  { %v4902_v6 = vunpack.i.h.bf16 %v4900_v13  ;;  %v4901_v10 = vunpack.i.l.bf16 %v4900_v13 }
 0xd2c   :  { %v4565_v5 = vpack.c.bf16 %v4902_v6, %v4901_v10 }
 0xd2e   :  { %4567 = vmatpush1.bf16.xpose.msk.msra.mxu0 %vm5811_vm2, %v4565_v5 }
 0xd2f   :  { %4568 = vmatprep.subr.bf16.mxu0 %v7430_v44 }
 0xd34   :  { %v4905_v37 = vpop.permute.xlu1 %4904  ;;  %v4920_v30 = vpop.permute.xlu0 %4919 }
 0xd35   :  { %v4907_v9 = vunpack.i.h.bf16 %v4905_v37  ;;  %v4906_v56 = vunpack.i.l.bf16 %v4905_v37  ;;  %v4922_v17 = vunpack.i.h.bf16 %v4920_v30  ;;  %v4921_v11 = vunpack.i.l.bf16 %v4920_v30 }
 0xd37   :  { %v4569_v26 = vpack.c.bf16 %v4907_v9, %v4906_v56  ;;  %v4581_v1 = vpack.c.bf16 %v4922_v17, %v4921_v11 }
 0xd38   :  { %v4930_v51 = vpop.permute.xlu0 %4929 }
 0xd39   :  { %4571 = vmatpush1.bf16.xpose.msk.msra.mxu0 %vm5811_vm2, %v4569_v26  ;;  %v4932_v38 = vunpack.i.h.bf16 %v4930_v51  ;;  %v4931_v43 = vunpack.i.l.bf16 %v4930_v51 }
 0xd3a   :  { %4572 = vmatprep.subr.bf16.mxu0 %v7430_v44  ;;  %v4910_v33 = vpop.permute.xlu1 %4909 }
 0xd3b   :  { %v4912_v18 = vunpack.i.h.bf16 %v4910_v33  ;;  %v4911_v63 = vunpack.i.l.bf16 %v4910_v33  ;;  %v4589_v19 = vpack.c.bf16 %v4932_v38, %v4931_v43 }
 0xd3c   :  { %v4940_v53 = vpop.permute.xlu0 %4939 }
 0xd3d   :  { %v4573_v8 = vpack.c.bf16 %v4912_v18, %v4911_v63  ;;  %v4942_v62 = vunpack.i.h.bf16 %v4940_v53  ;;  %v4941_v50 = vunpack.i.l.bf16 %v4940_v53  ;;  %v5199_v53 = vld [vmem:[%s7332_s20 + $0x20] sm:$0xff] }
 0xd3e   :  { %v4915_v49 = vpop.permute.xlu1 %4914 }
 0xd3f   :  { %v4917_v22 = vunpack.i.h.bf16 %v4915_v49  ;;  %v4916_v54 = vunpack.i.l.bf16 %v4915_v49  ;;  %v4597_v13 = vpack.c.bf16 %v4942_v62, %v4941_v50 }
 0xd40   :  { %v4950_v9 = vpop.permute.xlu0 %4949 }
 0xd41   :  { %4575 = vmatpush1.bf16.xpose.msk.msra.mxu0 %vm5811_vm2, %v4573_v8  ;;  %v4577_v46 = vpack.c.bf16 %v4917_v22, %v4916_v54  ;;  %v4952_v56 = vunpack.i.h.bf16 %v4950_v9  ;;  %v4951_v26 = vunpack.i.l.bf16 %v4950_v9 }
 0xd42   :  { %4576 = vmatprep.subr.bf16.mxu0 %v7430_v44  ;;  %v4925_v60 = vpop.permute.xlu1 %4924 }
 0xd43   :  { %v4927_v55 = vunpack.i.h.bf16 %v4925_v60  ;;  %v4926_v59 = vunpack.i.l.bf16 %v4925_v60  ;;  %v4605_v33 = vpack.c.bf16 %v4952_v56, %v4951_v26  ;;  %v7513_v56 = vpack.i.bf16 %v6723_v2, %v6719_v23  ;;  %v5201_v23 = vld [vmem:[%s7332_s20 + $0x30] sm:$0xff] }
 0xd44   :  { %v7514_v26 = vpack.i.bf16 %v6683_v14, %v6679_v41  ;;  %v5202_v14 = vld [vmem:[%s7332_s20 + $0x48] sm:$0xff] }
 0xd45   :  { %v4585_v21 = vpack.c.bf16 %v4927_v55, %v4926_v59  ;;  %v5197_v59 = vld [vmem:[%s7332_s20 + $0x10] sm:$0xff] }
 0xd46   :  { %v4935_v36 = vpop.permute.xlu1 %4934 }
 0xd47   :  { %v4937_v15 = vunpack.i.h.bf16 %v4935_v36  ;;  %v4936_v27 = vunpack.i.l.bf16 %v4935_v36 }
 0xd49   :  { %4579 = vmatpush1.bf16.xpose.msk.msra.mxu0 %vm5811_vm2, %v4577_v46  ;;  %v4593_v0 = vpack.c.bf16 %v4937_v15, %v4936_v27  ;;  %v5198_v15 = vld [vmem:[%s7332_s20 + $0x28] sm:$0xff] }
 0xd4a   :  { %4580 = vmatprep.subr.bf16.mxu0 %v7430_v44  ;;  %v4945_v6 = vpop.permute.xlu1 %4944 }
 0xd4b   :  { %v4947_v10 = vunpack.i.h.bf16 %v4945_v6  ;;  %v4946_v5 = vunpack.i.l.bf16 %v4945_v6 }
 0xd4d   :  { %v4601_v37 = vpack.c.bf16 %v4947_v10, %v4946_v5 }
 0xd4e   :  { %v4955_v18 = vpop.permute.xlu1 %4954 }
 0xd4f   :  { %v4957_v63 = vunpack.i.h.bf16 %v4955_v18  ;;  %v4956_v8 = vunpack.i.l.bf16 %v4955_v18  ;;  %v5200_v18 = vld [vmem:[%s7332_s20 + $0x38] sm:$0xff] }
 0xd51   :  { %4583 = vmatpush1.bf16.xpose.msk.msra.mxu0 %vm5811_vm2, %v4581_v1  ;;  %v4609_v49 = vpack.c.bf16 %v4957_v63, %v4956_v8  ;;  %v5196_v1 = vld [vmem:[%s7332_s20 + $0x18] sm:$0xff] }
 0xd52   :  { %4584 = vmatprep.subr.bf16.mxu0 %v7430_v44 }
 0xd59   :  { %4587 = vmatpush1.bf16.xpose.msk.msra.mxu0 %vm5811_vm2, %v4585_v21 }
 0xd5a   :  { %4588 = vmatprep.subr.bf16.mxu0 %v7430_v44 }
 0xd61   :  { %4591 = vmatpush1.bf16.xpose.msk.msra.mxu0 %vm5811_vm2, %v4589_v19 }
 0xd62   :  { %4592 = vmatprep.subr.bf16.mxu0 %v7430_v44 }
 0xd69   :  { %4595 = vmatpush1.bf16.xpose.msk.msra.mxu0 %vm5811_vm2, %v4593_v0 }
 0xd6a   :  { %4596 = vmatprep.subr.bf16.mxu0 %v7430_v44 }
 0xd71   :  { %4599 = vmatpush1.bf16.xpose.msk.msra.mxu0 %vm5811_vm2, %v4597_v13 }
 0xd72   :  { %4600 = vmatprep.subr.bf16.mxu0 %v7430_v44 }
 0xd79   :  { %4603 = vmatpush1.bf16.xpose.msk.msra.mxu0 %vm5811_vm2, %v4601_v37 }
 0xd7a   :  { %4604 = vmatprep.subr.bf16.mxu0 %v7430_v44 }
 0xd81   :  { %4607 = vmatpush1.bf16.xpose.msk.msra.mxu0 %vm5811_vm2, %v4605_v33 }
 0xd82   :  { %4608 = vmatprep.subr.bf16.mxu0 %v7430_v44 }
 0xd89   :  { %4611 = vmatpush1.bf16.xpose.msk.msra.mxu0 %vm5811_vm2, %v4609_v49 }
 0xd90   :  { %3909 = vmatmul.mubr.msk.f32.vlgmr.msra.gmra.mrb[36].mxu0 %vm215_vm1, %v6618_v3 }
 0xd91   :  { %2464 = vmatprep.mubr.f32.mxu0 %v7467_v12 }
 0xd94   :  { %3910 = vmatmul.mubr.msk.f32.gmra.mrb[38].mxu0 %vm215_vm1, %v6616_v7 }
 0xd95   :  { %2470 = vmatprep.mubr.f32.mxu0 %v7467_v12 }
 0xd98   :  { %3911 = vmatmul.mubr.msk.f32.gmra.mrb[40].mxu0 %vm215_vm1, %v6691_v25  ;;  %v5194_v25 = vld [vmem:[%s7332_s20 + $0x8] sm:$0xff] }
 0xd99   :  { %2476 = vmatprep.mubr.f32.mxu0 %v7467_v12 }
 0xd9c   :  { %3912 = vmatmul.mubr.msk.f32.gmra.mrb[42].mxu0 %vm215_vm1, %v6687_v35 }
 0xd9d   :  { %2482 = vmatprep.mubr.f32.mxu0 %v7467_v12 }
 0xda0   :  { %3913 = vmatmul.mubr.msk.f32.gmra.mrb[44].mxu0 %vm215_vm1, %v6739_v45  ;;  %v5195_v45 = vld [vmem:[%s7332_s20] sm:$0xff] }
 0xda1   :  { %2488 = vmatprep.mubr.f32.mxu0 %v7467_v12 }
 0xda4   :  { %3914 = vmatmul.mubr.msk.f32.gmra.mrb[46].mxu0 %vm215_vm1, %v6727_v34 }
 0xe63   :  { %v2460_v7 = vpop.f32.mrb[36].mxu0 }
 0xe64   :  { %v2495_v3 = vmul.f32 0.17677669, %v2460_v7  ;;  %v2462_v52 = vpop.f32.mrb[37].mxu0 }
 0xe65   :  { %v2496_v22 = vmul.f32 0.17677669, %v2462_v52 }
 0xe66   :  { %v6878_v46 = vadd.f32 %v5195_v45, %v2495_v3 }
 0xe67   :  { %v6873_v54 = vadd.f32 %v5194_v25, %v2496_v22  ;;  %v2466_v35 = vpop.f32.mrb[38].mxu0 }
 0xe68   :  { %v2497_v12 = vmul.f32 0.17677669, %v2466_v35  ;;  %v2468_v30 = vpop.f32.mrb[39].mxu0  ;;  %v5203_v35 = vld [vmem:[%s7332_s20 + $0x58] sm:$0xff] }
 0xe69   :  { %v2519_v34 = vsel %vm951_vm3, %v6873_v54, -inf  ;;  %v2498_v17 = vmul.f32 0.17677669, %v2468_v30 }
 0xe6a   :  { %v2520_v11 = vmax.f32 %v6878_v46, %v2519_v34  ;;  %v6891_v21 = vadd.f32 %v5197_v59, %v2497_v12  ;;  %v5204_v12 = vld [vmem:[%s7332_s20 + $0x40] sm:$0xff] }
 0xe6b   :  { %v6886_v60 = vadd.f32 %v5196_v1, %v2498_v17  ;;  %v2472_v55 = vpop.f32.mrb[40].mxu0  ;;  %v5205_v1 = vld [vmem:[%s7332_s20 + $0x50] sm:$0xff] }
 0xe6c   :  { %v2499_v51 = vmul.f32 0.17677669, %v2472_v55  ;;  %2521 = vmax.xlane.f32.xlu0 %v2520_v11  ;;  %v2474_v38 = vpop.f32.mrb[41].mxu0 }
 0xe6d   :  { %v2523_v43 = vsel %vm951_vm3, %v6886_v60, -inf  ;;  %v2500_v19 = vmul.f32 0.17677669, %v2474_v38 }
 0xe6e   :  { %v2524_v36 = vmax.f32 %v6891_v21, %v2523_v43  ;;  %v6904_v62 = vadd.f32 %v5199_v53, %v2499_v51  ;;  %v4960_v51 = vpop.permute.xlu0 %4959  ;;  %v4965_v43 = vpop.permute.xlu1 %4964 }
 0xe6f   :  { %v6899_v27 = vadd.f32 %v5198_v15, %v2500_v19  ;;  %v2478_v0 = vpop.f32.mrb[42].mxu0 }
 0xe70   :  { %2525 = vmax.xlane.f32.xlu1 %v2524_v36  ;;  %v2480_v50 = vpop.f32.mrb[43].mxu0  ;;  %v2501_v8 = vmul.f32 0.17677669, %v2478_v0 }
 0xe71   :  { %v2527_v13 = vsel %vm951_vm3, %v6899_v27, -inf  ;;  %v2502_v33 = vmul.f32 0.17677669, %v2480_v50 }
 0xe72   :  { %v2528_v6 = vmax.f32 %v6904_v62, %v2527_v13  ;;  %v6927_v2 = vadd.f32 %v5201_v23, %v2501_v8  ;;  %v4970_v38 = vpop.permute.xlu0 %4969  ;;  %v4975_v36 = vpop.permute.xlu1 %4974 }
 0xe73   :  { %v2484_v10 = vpop.f32.mrb[44].mxu0  ;;  %v6920_v63 = vadd.f32 %v5200_v18, %v2502_v33  ;;  %v4971_v23 = vunpack.i.l.bf16 %v4970_v38 }
 0xe74   :  { %2529 = vmax.xlane.f32.xlu1 %v2528_v6  ;;  %v2486_v5 = vpop.f32.mrb[45].mxu0  ;;  %v2503_v22 = vmul.f32 0.17677669, %v2484_v10  ;;  %v4962_v10 = vunpack.i.h.bf16 %v4960_v51 }
 0xe75   :  { %v2531_v49 = vsel %vm951_vm3, %v6920_v63, -inf  ;;  %v2504_v7 = vmul.f32 0.17677669, %v2486_v5  ;;  %v4961_v5 = vunpack.i.l.bf16 %v4960_v51 }
 0xe76   :  { %v2532_v41 = vmax.f32 %v6927_v2, %v2531_v49  ;;  %v6945_v30 = vadd.f32 %v5204_v12, %v2503_v22  ;;  %v6968_v19 = vpop.permute.xlu0 %4979  ;;  %v4985_v4 = vpop.permute.xlu1 %4984  ;;  %v4976_v22 = vunpack.i.l.bf16 %v4975_v36 }
 0xe77   :  { %v2490_v37 = vpop.f32.mrb[46].mxu0  ;;  %v6933_v3 = vadd.f32 %v5202_v14, %v2504_v7  ;;  %v4987_v33 = vunpack.i.h.bf16 %v4985_v4  ;;  %v4986_v18 = vunpack.i.l.bf16 %v4985_v4  ;;  %v4972_v7 = vunpack.i.h.bf16 %v4970_v38 }
 0xe78   :  { %v2492_v9 = vpop.f32.mrb[47].mxu0  ;;  %v2505_v34 = vmul.f32 0.17677669, %v2490_v37 }
 0xe79   :  { %v2506_v52 = vmul.f32 0.17677669, %v2492_v9  ;;  %v2535_v25 = vsel %vm951_vm3, %v6933_v3, -inf  ;;  %v4967_v9 = vunpack.i.h.bf16 %v4965_v43  ;;  %v4658_v14 = vpack.c.bf16 %v4972_v7, %v4971_v23 }
 0xe7a   :  { %v2536_v17 = vmax.f32 %v6945_v30, %v2535_v25  ;;  %v6953_v55 = vadd.f32 %v5205_v1, %v2505_v34  ;;  %v6970_v15 = vpop.permute.xlu0 %4989  ;;  %v4982_v34 = vunpack.i.h.bf16 %v6968_v19 }
 0xe7b   :  { %v6940_v45 = vadd.f32 %v5203_v35, %v2506_v52  ;;  %v4977_v52 = vunpack.i.h.bf16 %v4975_v36  ;;  %v4992_v25 = vunpack.i.h.bf16 %v6970_v15  ;;  %v4991_v35 = vunpack.i.l.bf16 %v6970_v15 }
 0xe7d   :  { %v2539_v11 = vsel %vm951_vm3, %v6940_v45, -inf  ;;  %v4661_v12 = vpack.c.bf16 %v4977_v52, %v4976_v22 }
 0xe7e   :  { %v2540_v59 = vmax.f32 %v6953_v55, %v2539_v11  ;;  %v4664_v11 = vpack.c.bf16 %v4992_v25, %v4991_v35 }
 0xe82   :  { %4994 = vrot.lane.b32.xlu0 %v7513_v56, %s5209_s6  ;;  %v4966_v56 = vunpack.i.l.bf16 %v4965_v43 }
 0xe85   :  { %5004 = vrot.lane.b32.xlu1 %v7514_v26, %s5209_s6  ;;  %v4652_v26 = vpack.c.bf16 %v4967_v9, %v4966_v56 }
 0xea1   :  { %2533 = vmax.xlane.f32.xlu0 %v2532_v41  ;;  %v4655_v41 = vpack.c.bf16 %v4987_v33, %v4986_v18 }
 0xea9   :  { %2537 = vmax.xlane.f32.xlu1 %v2536_v17  ;;  %v4981_v17 = vunpack.i.l.bf16 %v6968_v19 }
 0xead   :  { %2541 = vmax.xlane.f32.xlu1 %v2540_v59  ;;  %v4667_v59 = vpack.c.bf16 %v4982_v34, %v4981_v17 }
 0xeb7   :  { %4999 = vrot.lane.b32.xlu0 %v4998_v31, %s5209_s6 }
 0xebb   :  { %5009 = vrot.lane.b32.xlu0 %v5008_v47, %s5209_s6 }
 0xebe   :  { %5014 = vrot.lane.b32.xlu1 %v5013_v57, %s5209_s6 }
 0xef9   :  { %v2522_v39 = vpop.xlane.xlu0 %2521 }
 0xefa   :  { %v2543_v31 = vsub.f32 %v6878_v46, %v2522_v39  ;;  %v2544_v32 = vsub.f32 %v6873_v54, %v2522_v39 }
 0xefc   :  { %v2555_v29 = vmul.f32 1.442695, %v2543_v31  ;;  %v2557_v47 = vmul.f32 1.442695, %v2544_v32 }
 0xefd   :  { %v2526_v0 = vpop.xlane.xlu1 %2525  ;;  %v4995_v1 = vpop.permute.xlu0 %4994 }
 0xefe   :  { %5114 = vpow2.f32 %v2555_v29  ;;  %v2545_v28 = vsub.f32 %v6891_v21, %v2526_v0  ;;  %v2546_v58 = vsub.f32 %v6886_v60, %v2526_v0  ;;  %v4649_v60 = vpack.c.bf16 %v4962_v10, %v4961_v5 }
 0xeff   :  { %5116 = vpow2.f32 %v2557_v47  ;;  %v4997_v51 = vunpack.i.h.bf16 %v4995_v1  ;;  %v4996_v38 = vunpack.i.l.bf16 %v4995_v1 }
 0xf00   :  { %v2559_v57 = vmul.f32 1.442695, %v2545_v28  ;;  %v2561_v53 = vmul.f32 1.442695, %v2546_v58 }
 0xf01   :  { %v2530_v50 = vpop.xlane.xlu1 %2529  ;;  %v4670_v43 = vpack.c.bf16 %v4997_v51, %v4996_v38 }
 0xf02   :  { %5118 = vpow2.f32 %v2559_v57  ;;  %v2547_v13 = vsub.f32 %v6904_v62, %v2530_v50  ;;  %v2548_v6 = vsub.f32 %v6899_v27, %v2530_v50 }
 0xf03   :  { %5120 = vpow2.f32 %v2561_v53 }
 0xf04   :  { %v2563_v46 = vmul.f32 1.442695, %v2547_v13  ;;  %v2565_v54 = vmul.f32 1.442695, %v2548_v6 }
 0xf05   :  { %v5005_v4 = vpop.permute.xlu1 %5004 }
 0xf06   :  { %5122 = vpow2.f32 %v2563_v46  ;;  %v5007_v0 = vunpack.i.h.bf16 %v5005_v4  ;;  %v5006_v28 = vunpack.i.l.bf16 %v5005_v4 }
 0xf07   :  { %5124 = vpow2.f32 %v2565_v54 }
 0xf08   :  { %v6978_v37 = vpop.eup %5114 }
 0xf09   :  { %v6980_v21 = vpop.eup %5116 }
 0xf0a   :  { %3915 = vmatprep.mubr.msk.f32.mxu1 %vm951_vm3, %v6980_v21 }
 0xf0b   :  { %2662 = vmatmul.mubr.f32.vlgmr.msra.gmra.mrb[36].mxu1 %v6978_v37 }
 0xf0c   :  { %v6985_v27 = vpop.eup %5118  ;;  %4650 = vmatpush1.bf16.msra.mxu1 %v4649_v60 }
 0xf0d   :  { %v6987_v62 = vpop.eup %5120  ;;  %4651 = vmatprep.subr.bf16.mxu1 %v7430_v44 }
 0xf0e   :  { %3916 = vmatprep.mubr.msk.f32.mxu1 %vm951_vm3, %v6987_v62 }
 0xf0f   :  { %2667 = vmatmul.mubr.f32.gmra.mrb[38].mxu1 %v6985_v27 }
 0xf10   :  { %v6993_v8 = vpop.eup %5122  ;;  %4653 = vmatpush1.bf16.msra.mxu1 %v4652_v26 }
 0xf11   :  { %v6995_v49 = vpop.eup %5124  ;;  %4654 = vmatprep.subr.bf16.mxu1 %v7430_v44 }
 0xf12   :  { %3917 = vmatprep.mubr.msk.f32.mxu1 %vm951_vm3, %v6995_v49 }
 0xf13   :  { %2672 = vmatmul.mubr.f32.gmra.mrb[40].mxu1 %v6993_v8 }
 0xf14   :  { %4656 = vmatpush1.bf16.msra.mxu1 %v4655_v41 }
 0xf15   :  { %4657 = vmatprep.subr.bf16.mxu1 %v7430_v44 }
 0xf18   :  { %4659 = vmatpush1.bf16.msra.mxu1 %v4658_v14 }
 0xf19   :  { %4660 = vmatprep.subr.bf16.mxu1 %v7430_v44 }
 0xf1c   :  { %4662 = vmatpush1.bf16.msra.mxu1 %v4661_v12 }
 0xf1d   :  { %4663 = vmatprep.subr.bf16.mxu1 %v7430_v44 }
 0xf20   :  { %4665 = vmatpush1.bf16.msra.mxu1 %v4664_v11 }
 0xf21   :  { %4666 = vmatprep.subr.bf16.mxu1 %v7430_v44 }
 0xf24   :  { %4668 = vmatpush1.bf16.msra.mxu1 %v4667_v59 }
 0xf25   :  { %4669 = vmatprep.subr.bf16.mxu1 %v7430_v44 }
 0xf28   :  { %4671 = vmatpush1.bf16.msra.mxu1 %v4670_v43 }
 0xf29   :  { %4672 = vmatprep.subr.bf16.mxu1 %v7430_v44 }
 0xf2e   :  { %v2534_v36 = vpop.xlane.xlu0 %2533 }
 0xf2f   :  { %v2549_v15 = vsub.f32 %v6927_v2, %v2534_v36  ;;  %v2550_v19 = vsub.f32 %v6920_v63, %v2534_v36  ;;  %v4676_v2 = vpack.c.bf16 %v5007_v0, %v5006_v28 }
 0xf31   :  { %v2567_v39 = vmul.f32 1.442695, %v2549_v15  ;;  %v2569_v31 = vmul.f32 1.442695, %v2550_v19 }
 0xf32   :  { %v5000_v32 = vpop.permute.xlu0 %4999 }
 0xf33   :  { %5126 = vpow2.f32 %v2567_v39  ;;  %v5002_v29 = vunpack.i.h.bf16 %v5000_v32  ;;  %v5001_v47 = vunpack.i.l.bf16 %v5000_v32 }
 0xf34   :  { %5128 = vpow2.f32 %v2569_v31 }
 0xf35   :  { %v4673_v58 = vpack.c.bf16 %v5002_v29, %v5001_v47 }
 0xf36   :  { %v5010_v57 = vpop.permute.xlu0 %5009  ;;  %v2538_v53 = vpop.xlane.xlu1 %2537 }
 0xf37   :  { %v2551_v50 = vsub.f32 %v6945_v30, %v2538_v53  ;;  %v2552_v13 = vsub.f32 %v6933_v3, %v2538_v53  ;;  %4674 = vmatpush1.bf16.msra.mxu1 %v4673_v58  ;;  %v5012_v63 = vunpack.i.h.bf16 %v5010_v57  ;;  %v5011_v6 = vunpack.i.l.bf16 %v5010_v57 }
 0xf38   :  { %4675 = vmatprep.subr.bf16.mxu1 %v7430_v44 }
 0xf39   :  { %v2571_v46 = vmul.f32 1.442695, %v2551_v50  ;;  %v2573_v54 = vmul.f32 1.442695, %v2552_v13  ;;  %v4679_v3 = vpack.c.bf16 %v5012_v63, %v5011_v6 }
 0xf3a   :  { %v2542_v10 = vpop.xlane.xlu1 %2541 }
 0xf3b   :  { %5130 = vpow2.f32 %v2571_v46  ;;  %v2553_v5 = vsub.f32 %v6953_v55, %v2542_v10  ;;  %v2554_v60 = vsub.f32 %v6940_v45, %v2542_v10  ;;  %4677 = vmatpush1.bf16.msra.mxu1 %v4676_v2 }
 0xf3c   :  { %5132 = vpow2.f32 %v2573_v54  ;;  %4678 = vmatprep.subr.bf16.mxu1 %v7430_v44 }
 0xf3d   :  { %v5127_v30 = vpop.eup %5126  ;;  %v2575_v9 = vmul.f32 1.442695, %v2553_v5  ;;  %v2577_v56 = vmul.f32 1.442695, %v2554_v60  ;;  %v3938_v60 = vld [vmem:[%s7334_s8 + $0x1] ss:$0 sm:$0xff] }
 0xf3e   :  { %v5129_v26 = vpop.eup %5128  ;;  %v5015_v33 = vpop.permute.xlu1 %5014 }
 0xf3f   :  { %5134 = vpow2.f32 %v2575_v9  ;;  %3918 = vmatprep.mubr.msk.f32.mxu1 %vm951_vm3, %v5129_v26  ;;  %v5017_v18 = vunpack.i.h.bf16 %v5015_v33  ;;  %v5016_v7 = vunpack.i.l.bf16 %v5015_v33  ;;  %4680 = vmatpush1.bf16.msra.mxu1 %v4679_v3 }
 0xf40   :  { %5136 = vpow2.f32 %v2577_v56  ;;  %2677 = vmatmul.mubr.f32.gmra.mrb[42].mxu1 %v5127_v30  ;;  %4681 = vmatprep.subr.bf16.mxu1 %v7430_v44  ;;  %v3927_v44 = vld [vmem:[%s7333_s7 + $0x20] sm:$0xff] }
 0xf41   :  { %v4682_v45 = vpack.c.bf16 %v5017_v18, %v5016_v7 }
 0xf43   :  { %4683 = vmatpush1.bf16.msra.mxu1 %v4682_v45 }
 0xf45   :  { %v5131_v55 = vpop.eup %5130 }
 0xf46   :  { %v5133_v23 = vpop.eup %5132 }
 0xf47   :  { %3919 = vmatprep.mubr.msk.f32.mxu1 %vm951_vm3, %v5133_v23 }
 0xf48   :  { %2682 = vmatmul.mubr.f32.gmra.mrb[44].mxu1 %v5131_v55 }
 0xf49   :  { %v5135_v41 = vpop.eup %5134 }
 0xf4a   :  { %v5137_v14 = vpop.eup %5136 }
 0xf4b   :  { %3920 = vmatprep.mubr.msk.f32.mxu1 %vm951_vm3, %v5137_v14 }
 0xf4c   :  { %2687 = vmatmul.mubr.f32.gmra.mrb[46].mxu1 %v5135_v41 }
 0xf4d   :  { %3921 = vmatprep.mubr.msk.f32.mxu1 %vm951_vm3, %v6980_v21 }
 0xf50   :  { %2853 = vmatmul.mubr.f32.vlgmr.msra.gmra.mrb[48].mxu1 %v6978_v37  ;;  %v3928_v37 = vld [vmem:[%s7333_s7 + $0x28] sm:$0xff] }
 0xf51   :  { %3922 = vmatprep.mubr.msk.f32.mxu1 %vm951_vm3, %v6987_v62  ;;  %v4684_v21 = vpack.c.bf16 %v3928_v37, %v3927_v44  ;;  %v3930_v62 = vld [vmem:[%s7333_s7 + $0x38] sm:$0xff] }
 0xf53   :  { %4685 = vmatprep.subr.bf16.mxu0 %v4684_v21 }
 0xf54   :  { %2858 = vmatmul.mubr.f32.gmra.mrb[50].mxu1 %v6985_v27  ;;  %4687 = vmatpush3.bf16.msra.mxu0 %v4684_v21  ;;  %v3929_v27 = vld [vmem:[%s7333_s7 + $0x30] sm:$0xff] }
 0xf55   :  { %3923 = vmatprep.mubr.msk.f32.mxu1 %vm951_vm3, %v6995_v49 }
 0xf58   :  { %2863 = vmatmul.mubr.f32.gmra.mrb[52].mxu1 %v6993_v8  ;;  %v4688_v8 = vpack.c.bf16 %v3930_v62, %v3929_v27 }
 0xf59   :  { %3924 = vmatprep.mubr.msk.f32.mxu1 %vm951_vm3, %v5129_v26 }
 0xf5a   :  { %4689 = vmatprep.subr.bf16.mxu0 %v4688_v8 }
 0xf5b   :  { %4691 = vmatpush3.bf16.msra.mxu0 %v4688_v8 }
 0xf5c   :  { %2868 = vmatmul.mubr.f32.gmra.mrb[54].mxu1 %v5127_v30 }
 0xf5d   :  { %3925 = vmatprep.mubr.msk.f32.mxu1 %vm951_vm3, %v5133_v23 }
 0xf60   :  { %2873 = vmatmul.mubr.f32.gmra.mrb[56].mxu1 %v5131_v55 }
 0xf61   :  { %3926 = vmatprep.mubr.msk.f32.mxu1 %vm951_vm3, %v5137_v14 }
 0xf64   :  { %2878 = vmatmul.mubr.f32.gmra.mrb[58].mxu1 %v5135_v41 }
 0xfde   :  { %v2663_v49 = vpop.f32.mrb[36].mxu1 }
 0xfdf   :  { %v2665_v52 = vpop.f32.mrb[37].mxu1  ;;  %5138 = vrcp.f32 %v2663_v49 }
 0xfe2   :  { %v2668_v22 = vpop.f32.mrb[38].mxu1 }
 0xfe3   :  { %v2670_v25 = vpop.f32.mrb[39].mxu1  ;;  %5140 = vrcp.f32 %v2668_v22 }
 0xfe6   :  { %v2673_v35 = vpop.f32.mrb[40].mxu1 }
 0xfe7   :  { %v2675_v12 = vpop.f32.mrb[41].mxu1  ;;  %5142 = vrcp.f32 %v2673_v35 }
 0xfe9   :  { %v5139_v38 = vpop.eup %5138 }
 0xfed   :  { %v5141_v19 = vpop.eup %5140 }
 0xff1   :  { %v5143_v32 = vpop.eup %5142 }
0x1013   :  { %v2678_v34 = vpop.f32.mrb[42].mxu1 }
0x1014   :  { %v2680_v17 = vpop.f32.mrb[43].mxu1  ;;  %5144 = vrcp.f32 %v2678_v34 }
0x101b   :  { %v2683_v11 = vpop.f32.mrb[44].mxu1 }
0x101c   :  { %v2685_v1 = vpop.f32.mrb[45].mxu1  ;;  %5146 = vrcp.f32 %v2683_v11 }
0x101e   :  { %v5145_v28 = vpop.eup %5144 }
0x101f   :  { %v2688_v59 = vpop.f32.mrb[46].mxu1 }
0x1020   :  { %v2690_v51 = vpop.f32.mrb[47].mxu1  ;;  %5148 = vrcp.f32 %v2688_v59 }
0x1023   :  { %v2854_v43 = vpop.f32.mrb[48].mxu1 }
0x1024   :  { %v2884_v36 = vmul.f32 %v5139_v38, %v2854_v43  ;;  %v2856_v15 = vpop.f32.mrb[49].mxu1 }
0x1026   :  { %4255 = vmatprep.mubr.msk.f32.mxu0 %vm215_vm1, %v2884_v36  ;;  %v5147_v50 = vpop.eup %5146 }
0x1027   :  { %v2859_v4 = vpop.f32.mrb[50].mxu1 }
0x1028   :  { %v2886_v39 = vmul.f32 %v5141_v19, %v2859_v4  ;;  %v2861_v31 = vpop.f32.mrb[51].mxu1 }
0x1029   :  { %v3944_v31 = vld [vmem:[%s7335_s11 + $0x28] sm:$0xff] }
0x102a   :  { %4256 = vmatmul.mubr.msk.f32.vlgmr.msra.gmra.mrb[48].mxu0 %vm215_vm1, %v2886_v39  ;;  %v5149_v6 = vpop.eup %5148  ;;  %v3943_v39 = vld [vmem:[%s7335_s11 + $0x20] sm:$0xff] }
0x102b   :  { %v2864_v29 = vpop.f32.mrb[52].mxu1 }
0x102c   :  { %v2888_v47 = vmul.f32 %v5143_v32, %v2864_v29  ;;  %v2866_v0 = vpop.f32.mrb[53].mxu1  ;;  %v3945_v32 = vld [vmem:[%s7335_s11 + $0x30] sm:$0xff]  ;;  %v4692_v29 = vpack.c.bf16 %v3944_v31, %v3943_v39  ;;  %v3966_v31 = vld [vmem:[%s7338_s13 + $0xd8] sm:$0xff] }
0x102d   :  { %v3965_v39 = vld [vmem:[%s7338_s13 + $0xd0] sm:$0xff] }
0x102e   :  { %4258 = vmatprep.mubr.msk.f32.mxu0 %vm215_vm1, %v2888_v47  ;;  %v3946_v47 = vld [vmem:[%s7335_s11 + $0x38] sm:$0xff]  ;;  %4693 = vmatprep.subr.bf16.mxu0 %v4692_v29 }
0x102f   :  { %v2869_v58 = vpop.f32.mrb[54].mxu1  ;;  %v4696_v0 = vpack.c.bf16 %v3946_v47, %v3945_v32  ;;  %4695 = vmatpush3.bf16.msra.mxu0 %v4692_v29  ;;  %v4720_v32 = vpack.c.bf16 %v3966_v31, %v3965_v39  ;;  %v3967_v29 = vld [vmem:[%s7338_s13 + $0xe0] sm:$0xff]  ;;  %v3968_v47 = vld [vmem:[%s7338_s13 + $0xe8] sm:$0xff] }
0x1030   :  { %v2890_v57 = vmul.f32 %v5145_v28, %v2869_v58  ;;  %v2871_v53 = vpop.f32.mrb[55].mxu1 }
0x1031   :  { %4697 = vmatprep.subr.bf16.mxu0 %v4696_v0 }
0x1032   :  { %4259 = vmatmul.mubr.msk.f32.gmra.mrb[50].mxu0 %vm215_vm1, %v2890_v57 }
0x1033   :  { %v2874_v13 = vpop.f32.mrb[56].mxu1  ;;  %4699 = vmatpush3.bf16.msra.mxu0 %v4696_v0  ;;  %v3969_v0 = vld [vmem:[%s7338_s13 + $0xf0] sm:$0xff] }
0x1034   :  { %v2892_v2 = vmul.f32 %v5147_v50, %v2874_v13  ;;  %v2876_v63 = vpop.f32.mrb[57].mxu1 }
0x1036   :  { %4261 = vmatprep.mubr.msk.f32.mxu0 %vm215_vm1, %v2892_v2 }
0x1037   :  { %v2879_v46 = vpop.f32.mrb[58].mxu1 }
0x1038   :  { %v2894_v54 = vmul.f32 %v5149_v6, %v2879_v46  ;;  %v2881_v10 = vpop.f32.mrb[59].mxu1 }
0x103a   :  { %4262 = vmatmul.mubr.msk.f32.gmra.mrb[52].mxu0 %vm215_vm1, %v2894_v54 }
0x10fd   :  { %v4257_v5 = vpop.f32.mrb[48].mxu0 }
0x10fe   :  { %v3014_v30 = vadd.f32 %v4257_v5, %v6520_v61  ;;  %v2984_v3 = vpop.f32.mrb[49].mxu0 }
0x10ff   :  { %v3013_v9 = vadd.f32 %v2984_v3, %v6522_v40 }
0x1100   :  { %v3028_v56 = vadd.f32 %v3938_v60, %v3014_v30  ;;  %v7106_v30 = vld [vmem:[%s7336_s9 + $0x1] ss:$0 sm:$0xff] }
0x1101   :  { %v7058_v26 = vadd.f32 %v3938_v60, %v3013_v9 }
0x1102   :  { %v3040_v33 = vsel %vm215_vm1, %v3028_v56, 0.0 }
0x1103   :  { %3041 = vadd.xlane.f32.xlu1 %v3040_v33  ;;  %v3037_v18 = vsel %vm215_vm1, %v7058_v26, 0.0 }
0x1104   :  { %3038 = vadd.xlane.f32.xlu0 %v3037_v18 }
0x1105   :  { %v4260_v7 = vpop.f32.mrb[50].mxu0 }
0x1106   :  { %v2994_v45 = vpop.f32.mrb[51].mxu0  ;;  %v3016_v55 = vadd.f32 %v4260_v7, %v6530_v42 }
0x1107   :  { %v3015_v23 = vadd.f32 %v2994_v45, %v6532_v24  ;;  %v7113_v45 = vld [vmem:[%s7337_s10 + $0x1] ss:$0 sm:$0xff] }
0x1108   :  { %v7065_v41 = vadd.f32 %v3938_v60, %v3016_v55 }
0x1109   :  { %v3029_v61 = vadd.f32 %v3938_v60, %v3015_v23 }
0x110a   :  { %v3046_v27 = vsel %vm215_vm1, %v7065_v41, 0.0 }
0x110b   :  { %v3043_v40 = vsel %vm215_vm1, %v3029_v61, 0.0 }
0x110c   :  { %3044 = vadd.xlane.f32.xlu0 %v3043_v40 }
0x110d   :  { %v4263_v14 = vpop.f32.mrb[52].mxu0 }
0x110e   :  { %v3018_v44 = vadd.f32 %v4263_v14, %v6540_v20  ;;  %v3004_v37 = vpop.f32.mrb[53].mxu0 }
0x110f   :  { %v3017_v21 = vadd.f32 %v3004_v37, %v6542_v48 }
0x1110   :  { %v7072_v62 = vadd.f32 %v3938_v60, %v3018_v44  ;;  %3047 = vadd.xlane.f32.xlu0 %v3046_v27 }
0x1111   :  { %v3031_v42 = vadd.f32 %v3938_v60, %v3017_v21 }
0x1112   :  { %v3052_v4 = vsel %vm215_vm1, %v7072_v62, 0.0 }
0x1113   :  { %v3049_v19 = vsel %vm215_vm1, %v3031_v42, 0.0 }
0x1190   :  { %v3042_v24 = vpop.xlane.xlu1 %3041 }
0x1191   :  { %v3056_v8 = vmul.f32 0.03125, %v3042_v24  ;;  %v3039_v49 = vpop.xlane.xlu0 %3038 }
0x1192   :  { %v3055_v52 = vmul.f32 0.03125, %v3039_v49 }
0x1193   :  { %v3062_v22 = vsub.f32 %v3028_v56, %v3056_v8 }
0x1194   :  { %v3061_v25 = vsub.f32 %v7058_v26, %v3055_v52 }
0x1195   :  { %v3068_v35 = vmul.f32 %v3062_v22, %v3062_v22 }
0x1196   :  { %v3067_v12 = vmul.f32 %v3061_v25, %v3061_v25 }
0x1197   :  { %v3076_v20 = vsel %vm215_vm1, %v3068_v35, 0.0 }
0x1198   :  { %3077 = vadd.xlane.f32.xlu1 %v3076_v20  ;;  %v3073_v48 = vsel %vm215_vm1, %v3067_v12, 0.0  ;;  %v3955_v12 = vld [vmem:[%s7338_s13 + $0x80] sm:$0xff]  ;;  %v3956_v20 = vld [vmem:[%s7338_s13 + $0x88] sm:$0xff] }
0x1199   :  { %3074 = vadd.xlane.f32.xlu0 %v3073_v48  ;;  %v3045_v34 = vpop.xlane.xlu0 %3044  ;;  %v4700_v48 = vpack.c.bf16 %v3956_v20, %v3955_v12 }
0x119a   :  { %v3057_v17 = vmul.f32 0.03125, %v3045_v34  ;;  %v3957_v34 = vld [vmem:[%s7338_s13 + $0x90] sm:$0xff] }
0x119b   :  { %4701 = vmatprep.subr.bf16.mxu1 %v4700_v48 }
0x119c   :  { %v7077_v11 = vsub.f32 %v3029_v61, %v3057_v17  ;;  %4703 = vmatpush3.bf16.msra.mxu1 %v4700_v48  ;;  %v3958_v17 = vld [vmem:[%s7338_s13 + $0x98] sm:$0xff] }
0x119d   :  { %v3048_v1 = vpop.xlane.xlu0 %3047 }
0x119e   :  { %v3058_v59 = vmul.f32 0.03125, %v3048_v1  ;;  %v3069_v51 = vmul.f32 %v7077_v11, %v7077_v11  ;;  %v3959_v1 = vld [vmem:[%s7338_s13 + $0xa0] sm:$0xff] }
0x11a0   :  { %v7082_v38 = vsub.f32 %v7065_v41, %v3058_v59  ;;  %v3079_v43 = vsel %vm215_vm1, %v3069_v51, 0.0  ;;  %v3960_v59 = vld [vmem:[%s7338_s13 + $0xa8] sm:$0xff] }
0x11a1   :  { %3080 = vadd.xlane.f32.xlu0 %v3079_v43  ;;  %v4708_v51 = vpack.c.bf16 %v3960_v59, %v3959_v1  ;;  %v3962_v43 = vld [vmem:[%s7338_s13 + $0xb8] sm:$0xff] }
0x11a2   :  { %v3070_v36 = vmul.f32 %v7082_v38, %v7082_v38 }
0x11a4   :  { %v3082_v15 = vsel %vm215_vm1, %v3070_v36, 0.0 }
0x11a5   :  { %3083 = vadd.xlane.f32.xlu1 %v3082_v15  ;;  %3050 = vadd.xlane.f32.xlu0 %v3049_v19  ;;  %v3963_v15 = vld [vmem:[%s7338_s13 + $0xc0] sm:$0xff]  ;;  %v3964_v19 = vld [vmem:[%s7338_s13 + $0xc8] sm:$0xff] }
0x11a9   :  { %3053 = vadd.xlane.f32.xlu1 %v3052_v4  ;;  %v4716_v4 = vpack.c.bf16 %v3964_v19, %v3963_v15 }
0x1225   :  { %v3078_v28 = vpop.xlane.xlu1 %3077 }
0x1226   :  { %v3092_v58 = vmul.f32 0.03125, %v3078_v28  ;;  %v3075_v57 = vpop.xlane.xlu0 %3074  ;;  %v4724_v28 = vpack.c.bf16 %v3968_v47, %v3967_v29 }
0x1227   :  { %v3091_v53 = vmul.f32 0.03125, %v3075_v57 }
0x1228   :  { %v3098_v50 = vadd.f32 1e-05, %v3092_v58  ;;  %v3970_v58 = vld [vmem:[%s7338_s13 + $0xf8] sm:$0xff] }
0x1229   :  { %v3097_v13 = vadd.f32 1e-05, %v3091_v53  ;;  %v4728_v57 = vpack.c.bf16 %v3970_v58, %v3969_v0 }
0x122a   :  { %5150 = vrsqrt.f32 %v3098_v50 }
0x122b   :  { %5152 = vrsqrt.f32 %v3097_v13 }
0x122e   :  { %v3081_v2 = vpop.xlane.xlu0 %3080 }
0x122f   :  { %v3093_v63 = vmul.f32 0.03125, %v3081_v2 }
0x1231   :  { %v3099_v6 = vadd.f32 1e-05, %v3093_v63 }
0x1232   :  { %v3084_v46 = vpop.xlane.xlu1 %3083  ;;  %v3051_v54 = vpop.xlane.xlu0 %3050 }
0x1233   :  { %5154 = vrsqrt.f32 %v3099_v6  ;;  %v3094_v10 = vmul.f32 0.03125, %v3084_v46  ;;  %v3059_v5 = vmul.f32 0.03125, %v3051_v54 }
0x1234   :  { %v5151_v60 = vpop.eup %5150 }
0x1235   :  { %v5153_v3 = vpop.eup %5152  ;;  %v3110_v9 = vmul.f32 %v5151_v60, %v3062_v22  ;;  %v3100_v56 = vadd.f32 1e-05, %v3094_v10  ;;  %v7108_v33 = vsub.f32 %v3031_v42, %v3059_v5 }
0x1236   :  { %v3054_v18 = vpop.xlane.xlu1 %3053  ;;  %v3109_v7 = vmul.f32 %v5153_v3, %v3061_v25 }
0x1237   :  { %v3122_v55 = vmul.f32 %v7106_v30, %v3110_v9  ;;  %5156 = vrsqrt.f32 %v3100_v56  ;;  %v3060_v23 = vmul.f32 0.03125, %v3054_v18  ;;  %v3071_v61 = vmul.f32 %v7108_v33, %v7108_v33  ;;  %v7197_v18 = vld [vmem:[%s7339_s12 + $0x1] ss:$0 sm:$0xff] }
0x1238   :  { %v3121_v40 = vmul.f32 %v7106_v30, %v3109_v7 }
0x1239   :  { %v7120_v14 = vsub.f32 %v7072_v62, %v3060_v23  ;;  %v3085_v44 = vsel %vm215_vm1, %v3071_v61, 0.0  ;;  %v3134_v21 = vadd.f32 %v7113_v45, %v3122_v55 }
0x123a   :  { %3086 = vadd.xlane.f32.xlu0 %v3085_v44  ;;  %v3133_v37 = vadd.f32 %v7113_v45, %v3121_v40 }
0x123b   :  { %v3072_v27 = vmul.f32 %v7120_v14, %v7120_v14 }
0x123c   :  { %4272 = vmatprep.mubr.msk.f32.mxu0 %vm215_vm1, %v3133_v37 }
0x123d   :  { %v5155_v42 = vpop.eup %5154  ;;  %4273 = vmatmul.mubr.msk.f32.vlgmr.msra.gmra.mrb[54].mxu0 %vm215_vm1, %v3134_v21  ;;  %v3088_v24 = vsel %vm215_vm1, %v3072_v27, 0.0 }
0x123e   :  { %3089 = vadd.xlane.f32.xlu1 %v3088_v24  ;;  %v3111_v62 = vmul.f32 %v5155_v42, %v7077_v11  ;;  %v4704_v11 = vpack.c.bf16 %v3958_v17, %v3957_v34 }
0x1240   :  { %v3123_v8 = vmul.f32 %v7106_v30, %v3111_v62  ;;  %4705 = vmatprep.subr.bf16.mxu1 %v4704_v11 }
0x1241   :  { %v5157_v49 = vpop.eup %5156  ;;  %4707 = vmatpush3.bf16.msra.mxu1 %v4704_v11 }
0x1242   :  { %v3135_v52 = vadd.f32 %v7113_v45, %v3123_v8  ;;  %v3112_v22 = vmul.f32 %v5157_v49, %v7082_v38  ;;  %4709 = vmatprep.subr.bf16.mxu1 %v4708_v51  ;;  %v3961_v38 = vld [vmem:[%s7338_s13 + $0xb0] sm:$0xff] }
0x1243   :  { %v4712_v36 = vpack.c.bf16 %v3962_v43, %v3961_v38 }
0x1244   :  { %4275 = vmatprep.mubr.msk.f32.mxu0 %vm215_vm1, %v3135_v52  ;;  %v3124_v25 = vmul.f32 %v7106_v30, %v3112_v22 }
0x1245   :  { %4711 = vmatpush3.bf16.msra.mxu1 %v4708_v51 }
0x1246   :  { %v3136_v35 = vadd.f32 %v7113_v45, %v3124_v25  ;;  %4713 = vmatprep.subr.bf16.mxu1 %v4712_v36 }
0x1248   :  { %4276 = vmatmul.mubr.msk.f32.gmra.mrb[56].mxu0 %vm215_vm1, %v3136_v35 }
0x1249   :  { %4715 = vmatpush3.bf16.msra.mxu1 %v4712_v36 }
0x124a   :  { %4717 = vmatprep.subr.bf16.mxu1 %v4716_v4 }
0x124d   :  { %4719 = vmatpush3.bf16.msra.mxu1 %v4716_v4 }
0x124e   :  { %4721 = vmatprep.subr.bf16.mxu1 %v4720_v32 }
0x1251   :  { %4723 = vmatpush3.bf16.msra.mxu1 %v4720_v32 }
0x1252   :  { %4725 = vmatprep.subr.bf16.mxu1 %v4724_v28 }
0x1255   :  { %4727 = vmatpush3.bf16.msra.mxu1 %v4724_v28 }
0x1256   :  { %4729 = vmatprep.subr.bf16.mxu1 %v4728_v57 }
0x1259   :  { %4731 = vmatpush3.bf16.msra.mxu1 %v4728_v57 }
0x12c7   :  { %v3087_v53 = vpop.xlane.xlu0 %3086 }
0x12c8   :  { %v3095_v50 = vmul.f32 0.03125, %v3087_v53 }
0x12ca   :  { %v3101_v13 = vadd.f32 1e-05, %v3095_v50 }
0x12cb   :  { %v3090_v2 = vpop.xlane.xlu1 %3089 }
0x12cc   :  { %5158 = vrsqrt.f32 %v3101_v13  ;;  %v3096_v63 = vmul.f32 0.03125, %v3090_v2 }
0x12ce   :  { %v3102_v6 = vadd.f32 1e-05, %v3096_v63 }
0x12d0   :  { %5160 = vrsqrt.f32 %v3102_v6 }
0x12d6   :  { %v5159_v46 = vpop.eup %5158 }
0x12d7   :  { %v3113_v54 = vmul.f32 %v5159_v46, %v7108_v33 }
0x12d9   :  { %v3125_v10 = vmul.f32 %v7106_v30, %v3113_v54 }
0x12da   :  { %v5161_v5 = vpop.eup %5160 }
0x12db   :  { %v3137_v60 = vadd.f32 %v7113_v45, %v3125_v10  ;;  %v3114_v3 = vmul.f32 %v5161_v5, %v7120_v14 }
0x12dd   :  { %4278 = vmatprep.mubr.msk.f32.mxu0 %vm215_vm1, %v3137_v60  ;;  %v3126_v9 = vmul.f32 %v7106_v30, %v3114_v3 }
0x12df   :  { %v3138_v56 = vadd.f32 %v7113_v45, %v3126_v9 }
0x12e1   :  { %4279 = vmatmul.mubr.msk.f32.gmra.mrb[58].mxu0 %vm215_vm1, %v3138_v56 }
0x1310   :  { %v4274_v33 = vpop.f32.mrb[54].mxu0 }
0x1311   :  { %v7200_v7 = vadd.f32 %v4274_v33, %v7197_v18  ;;  %v3236_v55 = vpop.f32.mrb[55].mxu0 }
0x1312   :  { %v7203_v23 = vadd.f32 %v7197_v18, %v3236_v55 }
0x1313   :  { %v7206_v61 = vmul.f32 0.70710677, %v7200_v7 }
0x1314   :  { %v7209_v30 = vmul.f32 0.70710677, %v7203_v23 }
0x1315   :  { %v3290_v45 = vand.u32 2147483647, %v7206_v61  ;;  %vm3278_vm10 = vcmp.ge.f32.partialorder %v7206_v61, 0.0 }
0x1316   :  { %v3289_v40 = vand.u32 2147483647, %v7209_v30  ;;  %vm3277_vm11 = vcmp.ge.f32.partialorder %v7209_v30, 0.0 }
0x1317   :  { %v3296_v14 = vmul.f32 0.3275911, %v3290_v45  ;;  %v3374_v22 = vsub.f32 0.0, %v3290_v45 }
0x1318   :  { %v3295_v44 = vmul.f32 0.3275911, %v3289_v40  ;;  %v3373_v35 = vsub.f32 0.0, %v3289_v40 }
0x1319   :  { %v3302_v37 = vadd.f32 1.0, %v3296_v14  ;;  %v3380_v17 = vmul.f32 %v3374_v22, %v3290_v45 }
0x131a   :  { %v3301_v21 = vadd.f32 1.0, %v3295_v44  ;;  %v3379_v51 = vmul.f32 %v3373_v35, %v3289_v40  ;;  %v3284_v35 = vsel %vm3278_vm10, 1.0, %v7466_v16 }
0x131b   :  { %5162 = vrcp.f32 %v3302_v37  ;;  %v4277_v27 = vpop.f32.mrb[56].mxu0  ;;  %v3387_v36 = vmul.f32 1.442695, %v3380_v17 }
0x131c   :  { %5164 = vrcp.f32 %v3301_v21  ;;  %v7214_v42 = vadd.f32 %v4277_v27, %v7197_v18  ;;  %v3246_v24 = vpop.f32.mrb[57].mxu0  ;;  %v3385_v4 = vmul.f32 1.442695, %v3379_v51  ;;  %v3265_v51 = vmul.f32 0.5, %v7203_v23 }
0x131d   :  { %v7217_v62 = vadd.f32 %v7197_v18, %v3246_v24 }
0x131e   :  { %v7220_v8 = vmul.f32 0.70710677, %v7214_v42 }
0x131f   :  { %v7223_v49 = vmul.f32 0.70710677, %v7217_v62 }
0x1320   :  { %v3292_v52 = vand.u32 2147483647, %v7220_v8  ;;  %vm3280_vm12 = vcmp.ge.f32.partialorder %v7220_v8, 0.0  ;;  %v3268_v8 = vmul.f32 0.5, %v7214_v42  ;;  %v3550_v42 = vld [vmem:[%s7341_s15 + $0x18] sm:$0xff] }
0x1321   :  { %v3291_v25 = vand.u32 2147483647, %v7223_v49  ;;  %vm3279_vm13 = vcmp.ge.f32.partialorder %v7223_v49, 0.0  ;;  %v3547_v49 = vld [vmem:[%s7341_s15] sm:$0xff] }
0x1322   :  { %v3298_v12 = vmul.f32 0.3275911, %v3292_v52  ;;  %v3376_v32 = vsub.f32 0.0, %v3292_v52 }
0x1323   :  { %v3297_v20 = vmul.f32 0.3275911, %v3291_v25  ;;  %v3375_v29 = vsub.f32 0.0, %v3291_v25 }
0x1324   :  { %v3304_v48 = vadd.f32 1.0, %v3298_v12  ;;  %v3382_v53 = vmul.f32 %v3376_v32, %v3292_v52 }
0x1325   :  { %v5163_v34 = vpop.eup %5162  ;;  %v3303_v11 = vadd.f32 1.0, %v3297_v20  ;;  %v3381_v13 = vmul.f32 %v3375_v29, %v3291_v25 }
0x1326   :  { %v5165_v1 = vpop.eup %5164  ;;  %v3320_v59 = vmul.f32 1.0614054, %v5163_v34  ;;  %5166 = vrcp.f32 %v3304_v48  ;;  %v3391_v60 = vmul.f32 1.442695, %v3382_v53 }
0x1327   :  { %5168 = vrcp.f32 %v3303_v11  ;;  %v3319_v38 = vmul.f32 1.0614054, %v5165_v1  ;;  %v3389_v9 = vmul.f32 1.442695, %v3381_v13 }
0x1328   :  { %v3326_v43 = vadd.f32 -1.4531521, %v3320_v59  ;;  %5170 = vpow2.f32 %v3387_v36 }
0x1329   :  { %v3325_v15 = vadd.f32 -1.4531521, %v3319_v38  ;;  %5172 = vpow2.f32 %v3385_v4 }
0x132a   :  { %v3332_v19 = vmul.f32 %v5163_v34, %v3326_v43  ;;  %5174 = vpow2.f32 %v3391_v60  ;;  %v3266_v43 = vmul.f32 0.5, %v7200_v7  ;;  %v3285_v7 = vsel %vm3279_vm13, 1.0, %v7466_v16 }
0x132b   :  { %v3331_v39 = vmul.f32 %v5165_v1, %v3325_v15  ;;  %5176 = vpow2.f32 %v3389_v9 }
0x132c   :  { %v3338_v31 = vadd.f32 1.4214138, %v3332_v19 }
0x132d   :  { %v3337_v47 = vadd.f32 1.4214138, %v3331_v39 }
0x132e   :  { %v3344_v0 = vmul.f32 %v5163_v34, %v3338_v31 }
0x132f   :  { %v3343_v28 = vmul.f32 %v5165_v1, %v3337_v47 }
0x1330   :  { %v5167_v58 = vpop.eup %5166  ;;  %v3350_v57 = vadd.f32 -0.28449672, %v3344_v0  ;;  %v3286_v0 = vsel %vm3280_vm12, 1.0, %v7466_v16 }
0x1331   :  { %v5169_v50 = vpop.eup %5168  ;;  %v3349_v2 = vadd.f32 -0.28449672, %v3343_v28  ;;  %v3322_v63 = vmul.f32 1.0614054, %v5167_v58 }
0x1332   :  { %v3356_v6 = vmul.f32 %v5163_v34, %v3350_v57  ;;  %v3321_v46 = vmul.f32 1.0614054, %v5169_v50  ;;  %v5171_v40 = vpop.eup %5170 }
0x1333   :  { %v3355_v54 = vmul.f32 %v5165_v1, %v3349_v2  ;;  %v3328_v10 = vadd.f32 -1.4531521, %v3322_v63  ;;  %v5173_v37 = vpop.eup %5172 }
0x1334   :  { %v3362_v5 = vadd.f32 0.2548296, %v3356_v6  ;;  %v3327_v3 = vadd.f32 -1.4531521, %v3321_v46  ;;  %v5175_v4 = vpop.eup %5174  ;;  %v3548_v6 = vld [vmem:[%s7341_s15 + $0x8] sm:$0xff] }
0x1335   :  { %v3361_v56 = vadd.f32 0.2548296, %v3355_v54  ;;  %v3334_v33 = vmul.f32 %v5167_v58, %v3328_v10  ;;  %v5177_v32 = vpop.eup %5176  ;;  %v4732_v46 = vpack.c.bf16 %v3548_v6, %v3547_v49  ;;  %v3972_v6 = vld [vmem:[%s7340_s14 + $0x1] ss:$0 sm:$0xff] }
0x1336   :  { %v3368_v55 = vmul.f32 %v5163_v34, %v3362_v5  ;;  %v3333_v45 = vmul.f32 %v5169_v50, %v3327_v3  ;;  %v3283_v34 = vsel %vm3277_vm11, 1.0, %v7466_v16 }
0x1337   :  { %v3367_v14 = vmul.f32 %v5165_v1, %v3361_v56  ;;  %v3340_v44 = vadd.f32 1.4214138, %v3334_v33  ;;  %4733 = vmatprep.subr.bf16.mxu0 %v4732_v46 }
0x1338   :  { %v3398_v21 = vmul.f32 %v5171_v40, %v3368_v55  ;;  %v3339_v27 = vadd.f32 1.4214138, %v3333_v45  ;;  %4735 = vmatpush3.bf16.msra.mxu0 %v4732_v46 }
0x1339   :  { %v3397_v24 = vmul.f32 %v5173_v37, %v3367_v14  ;;  %v3346_v52 = vmul.f32 %v5167_v58, %v3340_v44 }
0x133a   :  { %v3404_v22 = vsub.f32 1.0, %v3398_v21  ;;  %v3345_v25 = vmul.f32 %v5169_v50, %v3339_v27 }
0x133b   :  { %v3403_v12 = vsub.f32 1.0, %v3397_v24  ;;  %v3352_v20 = vadd.f32 -0.28449672, %v3346_v52 }
0x133c   :  { %v3410_v48 = vmul.f32 %v3404_v22, %v3284_v35  ;;  %v3351_v17 = vadd.f32 -0.28449672, %v3345_v25 }
0x133d   :  { %v3409_v11 = vmul.f32 %v3403_v12, %v3283_v34  ;;  %v3358_v61 = vmul.f32 %v5167_v58, %v3352_v20 }
0x133e   :  { %v3416_v1 = vadd.f32 1.0, %v3410_v48  ;;  %v3357_v59 = vmul.f32 %v5169_v50, %v3351_v17 }
0x133f   :  { %v3415_v30 = vadd.f32 1.0, %v3409_v11  ;;  %v3364_v38 = vadd.f32 0.2548296, %v3358_v61 }
0x1340   :  { %v3363_v36 = vadd.f32 0.2548296, %v3357_v59  ;;  %v3422_v39 = vmul.f32 %v3416_v1, %v3266_v43 }
0x1341   :  { %v3421_v15 = vmul.f32 %v3415_v30, %v3265_v51  ;;  %v3370_v19 = vmul.f32 %v5167_v58, %v3364_v38 }
0x1342   :  { %v3369_v31 = vmul.f32 %v5169_v50, %v3363_v36  ;;  %v3267_v50 = vmul.f32 0.5, %v7217_v62  ;;  %v3549_v62 = vld [vmem:[%s7341_s15 + $0x10] sm:$0xff] }
0x1343   :  { %4313 = vmatprep.mubr.f32.mxu1 %v3421_v15  ;;  %v3400_v29 = vmul.f32 %v5175_v4, %v3370_v19  ;;  %v4736_v54 = vpack.c.bf16 %v3550_v42, %v3549_v62 }
0x1344   :  { %4314 = vmatmul.mubr.f32.vlgmr.msra.gmra.mrb[60].mxu1 %v3422_v39  ;;  %v3399_v47 = vmul.f32 %v5177_v32, %v3369_v31 }
0x1345   :  { %v3406_v23 = vsub.f32 1.0, %v3400_v29  ;;  %4737 = vmatprep.subr.bf16.mxu0 %v4736_v54 }
0x1346   :  { %v3405_v28 = vsub.f32 1.0, %v3399_v47  ;;  %4739 = vmatpush3.bf16.msra.mxu0 %v4736_v54 }
0x1347   :  { %v3412_v57 = vmul.f32 %v3406_v23, %v3286_v0 }
0x1348   :  { %v3411_v58 = vmul.f32 %v3405_v28, %v3285_v7 }
0x1349   :  { %v3418_v53 = vadd.f32 1.0, %v3412_v57 }
0x134a   :  { %v3417_v13 = vadd.f32 1.0, %v3411_v58 }
0x134b   :  { %v3424_v63 = vmul.f32 %v3418_v53, %v3268_v8 }
0x134c   :  { %v3423_v2 = vmul.f32 %v3417_v13, %v3267_v50 }
0x134e   :  { %4316 = vmatprep.mubr.f32.mxu1 %v3423_v2 }
0x134f   :  { %4317 = vmatmul.mubr.f32.gmra.mrb[62].mxu1 %v3424_v63 }
0x13b4   :  { %v4280_v10 = vpop.f32.mrb[58].mxu0 }
0x13b5   :  { %v3262_v5 = vadd.f32 %v4280_v10, %v7197_v18  ;;  %v3256_v60 = vpop.f32.mrb[59].mxu0 }
0x13b6   :  { %v3257_v3 = vadd.f32 %v7197_v18, %v3256_v60  ;;  %v3693_v60 = vld [vmem:[%s7342_s17] sm:$0xff] }
0x13b7   :  { %v3276_v9 = vmul.f32 0.70710677, %v3262_v5  ;;  %v3270_v13 = vmul.f32 0.5, %v3262_v5 }
0x13b8   :  { %v3275_v56 = vmul.f32 0.70710677, %v3257_v3  ;;  %v3269_v53 = vmul.f32 0.5, %v3257_v3  ;;  %v3694_v3 = vld [vmem:[%s7342_s17 + $0x8] sm:$0xff] }
0x13b9   :  { %v3294_v33 = vand.u32 2147483647, %v3276_v9  ;;  %vm3282_vm14 = vcmp.ge.f32.partialorder %v3276_v9, 0.0  ;;  %v4740_v9 = vpack.c.bf16 %v3694_v3, %v3693_v60 }
0x13ba   :  { %v3293_v55 = vand.u32 2147483647, %v3275_v56  ;;  %vm3281_vm15 = vcmp.ge.f32.partialorder %v3275_v56, 0.0  ;;  %v3288_v23 = vsel %vm3282_vm14, 1.0, %v7466_v16 }
0x13bb   :  { %v3300_v45 = vmul.f32 0.3275911, %v3294_v33  ;;  %v3378_v37 = vsub.f32 0.0, %v3294_v33  ;;  %v3287_v28 = vsel %vm3281_vm15, 1.0, %v7466_v16  ;;  %4741 = vmatprep.subr.bf16.mxu0 %v4740_v9 }
0x13bc   :  { %v3299_v40 = vmul.f32 0.3275911, %v3293_v55  ;;  %v3377_v21 = vsub.f32 0.0, %v3293_v55 }
0x13bd   :  { %v3306_v14 = vadd.f32 1.0, %v3300_v45  ;;  %v3384_v24 = vmul.f32 %v3378_v37, %v3294_v33  ;;  %v3697_v33 = vld [vmem:[%s7342_s17 + $0x20] sm:$0xff] }
0x13be   :  { %v3305_v44 = vadd.f32 1.0, %v3299_v40  ;;  %v3383_v22 = vmul.f32 %v3377_v21, %v3293_v55  ;;  %v3698_v55 = vld [vmem:[%s7342_s17 + $0x28] sm:$0xff]  ;;  %v3699_v40 = vld [vmem:[%s7342_s17 + $0x30] sm:$0xff]  ;;  %v3701_v37 = vld [vmem:[%s7342_s17 + $0x40] sm:$0xff] }
0x13bf   :  { %5178 = vrcp.f32 %v3306_v14  ;;  %v3395_v18 = vmul.f32 1.442695, %v3384_v24  ;;  %v4748_v45 = vpack.c.bf16 %v3698_v55, %v3697_v33  ;;  %v3700_v14 = vld [vmem:[%s7342_s17 + $0x38] sm:$0xff]  ;;  %v3702_v21 = vld [vmem:[%s7342_s17 + $0x48] sm:$0xff]  ;;  %v3703_v24 = vld [vmem:[%s7342_s17 + $0x50] sm:$0xff] }
0x13c0   :  { %5180 = vrcp.f32 %v3305_v44  ;;  %v3393_v48 = vmul.f32 1.442695, %v3383_v22  ;;  %v4752_v44 = vpack.c.bf16 %v3700_v14, %v3699_v40 }
0x13c1   :  { %5182 = vpow2.f32 %v3395_v18 }
0x13c2   :  { %5184 = vpow2.f32 %v3393_v48 }
0x13c9   :  { %v5179_v27 = vpop.eup %5178 }
0x13ca   :  { %v5181_v52 = vpop.eup %5180  ;;  %v3324_v25 = vmul.f32 1.0614054, %v5179_v27 }
0x13cb   :  { %v3323_v35 = vmul.f32 1.0614054, %v5181_v52  ;;  %v5183_v4 = vpop.eup %5182 }
0x13cc   :  { %v3330_v12 = vadd.f32 -1.4531521, %v3324_v25  ;;  %v5185_v31 = vpop.eup %5184  ;;  %v3705_v25 = vld [vmem:[%s7342_s17 + $0x60] sm:$0xff] }
0x13cd   :  { %v3329_v20 = vadd.f32 -1.4531521, %v3323_v35  ;;  %v3706_v35 = vld [vmem:[%s7342_s17 + $0x68] sm:$0xff] }
0x13ce   :  { %v3336_v34 = vmul.f32 %v5179_v27, %v3330_v12  ;;  %v3707_v12 = vld [vmem:[%s7342_s17 + $0x70] sm:$0xff]  ;;  %v4764_v18 = vpack.c.bf16 %v3706_v35, %v3705_v25  ;;  %v3976_v25 = vld [vmem:[%s7344_s18] ss:$0 sm:$0xff] }
0x13cf   :  { %v3335_v17 = vmul.f32 %v5181_v52, %v3329_v20  ;;  %v3708_v20 = vld [vmem:[%s7342_s17 + $0x78] sm:$0xff] }
0x13d0   :  { %v3342_v11 = vadd.f32 1.4214138, %v3336_v34  ;;  %v4768_v48 = vpack.c.bf16 %v3708_v20, %v3707_v12 }
0x13d1   :  { %v3341_v61 = vadd.f32 1.4214138, %v3335_v17 }
0x13d2   :  { %v3348_v1 = vmul.f32 %v5179_v27, %v3342_v11  ;;  %v3973_v11 = vld [vmem:[%s7343_s16] ss:$0 sm:$0xff] }
0x13d3   :  { %v3347_v59 = vmul.f32 %v5181_v52, %v3341_v61 }
0x13d4   :  { %v3354_v51 = vadd.f32 -0.28449672, %v3348_v1 }
0x13d5   :  { %v3353_v30 = vadd.f32 -0.28449672, %v3347_v59 }
0x13d6   :  { %v3360_v38 = vmul.f32 %v5179_v27, %v3354_v51 }
0x13d7   :  { %v3359_v43 = vmul.f32 %v5181_v52, %v3353_v30 }
0x13d8   :  { %v3366_v36 = vadd.f32 0.2548296, %v3360_v38 }
0x13d9   :  { %v3365_v15 = vadd.f32 0.2548296, %v3359_v43 }
0x13da   :  { %v3372_v19 = vmul.f32 %v5179_v27, %v3366_v36  ;;  %v4756_v27 = vpack.c.bf16 %v3702_v21, %v3701_v37 }
0x13db   :  { %v3371_v39 = vmul.f32 %v5181_v52, %v3365_v15  ;;  %v3704_v52 = vld [vmem:[%s7342_s17 + $0x58] sm:$0xff] }
0x13dc   :  { %v3402_v32 = vmul.f32 %v5183_v4, %v3372_v19  ;;  %v4760_v22 = vpack.c.bf16 %v3704_v52, %v3703_v24 }
0x13dd   :  { %v3401_v29 = vmul.f32 %v5185_v31, %v3371_v39 }
0x13de   :  { %v3408_v47 = vsub.f32 1.0, %v3402_v32 }
0x13df   :  { %v3407_v0 = vsub.f32 1.0, %v3401_v29 }
0x13e0   :  { %v3414_v7 = vmul.f32 %v3408_v47, %v3288_v23 }
0x13e1   :  { %v3413_v57 = vmul.f32 %v3407_v0, %v3287_v28 }
0x13e2   :  { %v3420_v58 = vadd.f32 1.0, %v3414_v7 }
0x13e3   :  { %v3419_v50 = vadd.f32 1.0, %v3413_v57 }
0x13e4   :  { %v3426_v2 = vmul.f32 %v3420_v58, %v3270_v13 }
0x13e5   :  { %v3425_v8 = vmul.f32 %v3419_v50, %v3269_v53 }
0x13e7   :  { %4319 = vmatprep.mubr.f32.mxu1 %v3425_v8 }
0x13e8   :  { %4320 = vmatmul.mubr.f32.gmra.mrb[64].mxu1 %v3426_v2 }
0x1417   :  { %v4315_v63 = vpop.f32.mrb[60].mxu1 }
0x1418   :  { %v3510_v49 = vpop.f32.mrb[61].mxu1 }
0x1419   :  { %v3535_v46 = vadd.f32 %v3510_v49, %v7058_v26  ;;  %v3695_v26 = vld [vmem:[%s7342_s17 + $0x10] sm:$0xff] }
0x141b   :  { %v3545_v62 = vadd.f32 %v3972_v6, %v3535_v46 }
0x141d   :  { %4330 = vmatprep.mubr.msk.f32.mxu0 %vm215_vm1, %v3545_v62 }
0x1422   :  { %v4318_v42 = vpop.f32.mrb[62].mxu1 }
0x1423   :  { %v3536_v54 = vadd.f32 %v4318_v42, %v7065_v41  ;;  %v3519_v10 = vpop.f32.mrb[63].mxu1  ;;  %v3696_v41 = vld [vmem:[%s7342_s17 + $0x18] sm:$0xff] }
0x1424   :  { %v4744_v56 = vpack.c.bf16 %v3696_v41, %v3695_v26 }
0x1425   :  { %v3546_v5 = vadd.f32 %v3972_v6, %v3536_v54 }
0x1427   :  { %4331 = vmatmul.mubr.msk.f32.vlgmr.msra.gmra.mrb[60].mxu0 %vm215_vm1, %v3546_v5 }
0x1428   :  { %4743 = vmatpush3.bf16.msra.mxu0 %v4740_v9 }
0x1429   :  { %4745 = vmatprep.subr.bf16.mxu0 %v4744_v56 }
0x142c   :  { %4747 = vmatpush3.bf16.msra.mxu0 %v4744_v56 }
0x142d   :  { %4749 = vmatprep.subr.bf16.mxu0 %v4748_v45 }
0x1430   :  { %4751 = vmatpush3.bf16.msra.mxu0 %v4748_v45 }
0x1431   :  { %4753 = vmatprep.subr.bf16.mxu0 %v4752_v44 }
0x1434   :  { %4755 = vmatpush3.bf16.msra.mxu0 %v4752_v44 }
0x1435   :  { %4757 = vmatprep.subr.bf16.mxu0 %v4756_v27 }
0x1438   :  { %4759 = vmatpush3.bf16.msra.mxu0 %v4756_v27 }
0x1439   :  { %4761 = vmatprep.subr.bf16.mxu0 %v4760_v22 }
0x143c   :  { %4763 = vmatpush3.bf16.msra.mxu0 %v4760_v22 }
0x143d   :  { %4765 = vmatprep.subr.bf16.mxu0 %v4764_v18 }
0x1440   :  { %4767 = vmatpush3.bf16.msra.mxu0 %v4764_v18 }
0x1441   :  { %4769 = vmatprep.subr.bf16.mxu0 %v4768_v48 }
0x1444   :  { %4771 = vmatpush3.bf16.msra.mxu0 %v4768_v48 }
0x14bb   :  { %v4321_v34 = vpop.f32.mrb[64].mxu1 }
0x14bc   :  { %v3528_v17 = vpop.f32.mrb[65].mxu1 }
0x14fa   :  { %v4332_v61 = vpop.f32.mrb[60].mxu0 }
0x14fb   :  { %v3636_v1 = vadd.f32 %v4332_v61, %v3973_v11  ;;  %v3630_v59 = vpop.f32.mrb[61].mxu0 }
0x14fc   :  { %v3631_v51 = vadd.f32 %v3973_v11, %v3630_v59 }
0x14fd   :  { %v3642_v30 = vmul.f32 0.70710677, %v3636_v1  ;;  %v3640_v24 = vmul.f32 0.5, %v3636_v1 }
0x14fe   :  { %v3641_v38 = vmul.f32 0.70710677, %v3631_v51  ;;  %v3639_v21 = vmul.f32 0.5, %v3631_v51 }
0x14ff   :  { %v3648_v43 = vand.u32 2147483647, %v3642_v30  ;;  %vm3644_vm0 = vcmp.ge.f32.partialorder %v3642_v30, 0.0 }
0x1500   :  { %v3647_v36 = vand.u32 2147483647, %v3641_v38  ;;  %vm3643_vm1 = vcmp.ge.f32.partialorder %v3641_v38, 0.0  ;;  %v3646_v55 = vsel %vm3644_vm0, 1.0, %v7466_v16 }
0x1501   :  { %v3650_v15 = vmul.f32 0.3275911, %v3648_v43  ;;  %v3676_v31 = vsub.f32 0.0, %v3648_v43  ;;  %v3645_v14 = vsel %vm3643_vm1, 1.0, %v7466_v16 }
0x1502   :  { %v3649_v19 = vmul.f32 0.3275911, %v3647_v36  ;;  %v3675_v32 = vsub.f32 0.0, %v3647_v36 }
0x1503   :  { %v3652_v4 = vadd.f32 1.0, %v3650_v15  ;;  %v3678_v47 = vmul.f32 %v3676_v31, %v3648_v43 }
0x1504   :  { %v3651_v39 = vadd.f32 1.0, %v3649_v19  ;;  %v3677_v28 = vmul.f32 %v3675_v32, %v3647_v36 }
0x1505   :  { %5186 = vrcp.f32 %v3652_v4  ;;  %v3681_v58 = vmul.f32 1.442695, %v3678_v47 }
0x1506   :  { %5188 = vrcp.f32 %v3651_v39  ;;  %v3679_v13 = vmul.f32 1.442695, %v3677_v28 }
0x1507   :  { %5190 = vpow2.f32 %v3681_v58 }
0x1508   :  { %5192 = vpow2.f32 %v3679_v13 }
0x150f   :  { %v5187_v29 = vpop.eup %5186 }
0x1510   :  { %v5189_v23 = vpop.eup %5188  ;;  %v3658_v0 = vmul.f32 1.0614054, %v5187_v29 }
0x1511   :  { %v3657_v7 = vmul.f32 1.0614054, %v5189_v23  ;;  %v5191_v3 = vpop.eup %5190 }
0x1512   :  { %v3660_v57 = vadd.f32 -1.4531521, %v3658_v0  ;;  %v5193_v26 = vpop.eup %5192 }
0x1513   :  { %v3659_v53 = vadd.f32 -1.4531521, %v3657_v7 }
0x1514   :  { %v3662_v50 = vmul.f32 %v5187_v29, %v3660_v57 }
0x1515   :  { %v3661_v8 = vmul.f32 %v5189_v23, %v3659_v53 }
0x1516   :  { %v3664_v2 = vadd.f32 1.4214138, %v3662_v50 }
0x1517   :  { %v3663_v63 = vadd.f32 1.4214138, %v3661_v8 }
0x1518   :  { %v3666_v49 = vmul.f32 %v5187_v29, %v3664_v2 }
0x1519   :  { %v3665_v6 = vmul.f32 %v5189_v23, %v3663_v63 }
0x151a   :  { %v3668_v46 = vadd.f32 -0.28449672, %v3666_v49 }
0x151b   :  { %v3667_v62 = vadd.f32 -0.28449672, %v3665_v6 }
0x151c   :  { %v3670_v42 = vmul.f32 %v5187_v29, %v3668_v46 }
0x151d   :  { %v3669_v54 = vmul.f32 %v5189_v23, %v3667_v62 }
0x151e   :  { %v3672_v10 = vadd.f32 0.2548296, %v3670_v42 }
0x151f   :  { %v3671_v5 = vadd.f32 0.2548296, %v3669_v54 }
0x1520   :  { %v3674_v60 = vmul.f32 %v5187_v29, %v3672_v10 }
0x1521   :  { %v3673_v9 = vmul.f32 %v5189_v23, %v3671_v5 }
0x1522   :  { %v3684_v41 = vmul.f32 %v5191_v3, %v3674_v60 }
0x1523   :  { %v3683_v56 = vmul.f32 %v5193_v26, %v3673_v9 }
0x1524   :  { %v3686_v33 = vsub.f32 1.0, %v3684_v41 }
0x1525   :  { %v3685_v45 = vsub.f32 1.0, %v3683_v56 }
0x1526   :  { %v3688_v40 = vmul.f32 %v3686_v33, %v3646_v55 }
0x1527   :  { %v3687_v44 = vmul.f32 %v3685_v45, %v3645_v14 }
0x1528   :  { %v3690_v37 = vadd.f32 1.0, %v3688_v40 }
0x1529   :  { %v3689_v27 = vadd.f32 1.0, %v3687_v44 }
0x152a   :  { %v3692_v22 = vmul.f32 %v3690_v37, %v3640_v24 }
0x152b   :  { %v3691_v52 = vmul.f32 %v3689_v27, %v3639_v21 }
0x152d   :  { %4365 = vmatprep.mubr.f32.mxu0 %v3691_v52 }
0x152e   :  { %4366 = vmatmul.mubr.f32.vlgmr.msra.gmra.mrb[62].mxu0 %v3692_v22 }
0x1601   :  { %v4367_v35 = vpop.f32.mrb[62].mxu0 }
0x1602   :  { %v3788_v12 = vadd.f32 %v4367_v35, %v3976_v25  ;;  %v3782_v18 = vpop.f32.mrb[63].mxu0 }
0x1603   :  { %v3783_v20 = vadd.f32 %v3976_v25, %v3782_v18 }
0x1604   :  { %3792 = vst [vmem:[%s7345_s21 + $0x8] sm:$0xff] %v3788_v12 }
0x1605   :  { %3791 = vst [vmem:[%s7345_s21] sm:$0xff] %v3783_v20 }

</bundles_post_ra>
